<compile_context>
chip_gen: v7x
topology: tpu7x:2x2x1
jax: 0.10.0
libtpu: 0.0.40
codegen_flags: <defaults>
</compile_context>

<pallas_src>
import jax
import jax.numpy as jnp
from jax.experimental import pallas as pl
from jax.experimental.pallas import tpu as pltpu

# ---------------------------------------------------------------------------
# model hyper-parameters (small, consistent with the module's __init__)
# ---------------------------------------------------------------------------
N_CLASS = 40
ENC_DIM = 32
EMB_DIM = 16
DEC_DIM = 32
ATTN_DIM = 32
CNN_CHANNELS = 8
NUM_LAYERS = 1

# lane-padded class dim: output projection + logit stores become full 128-lane ops
N_CLASS_PAD = 128 * ((N_CLASS + 127) // 128)

VMEM_SPEC = pl.BlockSpec(memory_space=pltpu.MemorySpace.VMEM)


# ---------------------------------------------------------------------------
# Pallas kernels
# ---------------------------------------------------------------------------
def _conv_relu_pool_kernel(p_ref, w_ref, b_ref, o_ref):
    """Fused 3x3 conv (as im2col matmul) + bias + ReLU + 2x2 max-pool.

    p_ref: (4, N, K)  -- 4 pooled-quadrant patch sets, N = B*Ho*Wo, K = 9*C_in
    w_ref: (K, C_out), b_ref: (1, C_out), o_ref: (N, C_out)
    """
    P = p_ref[...]
    Q, N, K = P.shape
    c_out = w_ref.shape[1]
    y = jnp.dot(P.reshape(Q * N, K), w_ref[...], preferred_element_type=jnp.float32)
    y = jnp.maximum(y + b_ref[...], 0.0).reshape(Q, N, c_out)
    o_ref[...] = jnp.maximum(jnp.maximum(y[0], y[1]), jnp.maximum(y[2], y[3]))


def _decoder_fused_kernel(emb_ref, v_ref,
                          wih_ref, bih_ref, wic_ref, bic_ref,
                          wav_ref, ba_ref, wah_ref, va_ref,
                          wg_ref, bg_ref, wo_ref, bo_ref,
                          out_ref):
    """Encoder head (h0/c0 + hoisted V@Wav) + full T-step attention-LSTM decode.

    One pallas_call: every operand is VMEM-resident, h/c are carried as values
    across a statically unrolled time loop, and each step stores one
    lane-aligned (B, N_CLASS_PAD) log-softmax slab into the output.
    """
    V = v_ref[...]                                   # (B, L, E)
    B, L, E = V.shape
    D = wah_ref.shape[0]
    A = wah_ref.shape[1]
    npad = wo_ref.shape[1]
    T = emb_ref.shape[0]

    # ---- init_decoder_hidden_state: mean -> Linear -> tanh ------------------
    mean = jnp.mean(V, axis=1)                       # (B, E)
    h = jnp.tanh(jnp.dot(mean, wih_ref[...],
                         preferred_element_type=jnp.float32) + bih_ref[...])
    c = jnp.tanh(jnp.dot(mean, wic_ref[...],
                         preferred_element_type=jnp.float32) + bic_ref[...])

    # ---- attention pre-projection, hoisted out of the time loop -------------
    att_v = jnp.dot(V.reshape(B * L, E), wav_ref[...],
                    preferred_element_type=jnp.float32).reshape(B, L, A)
    att_v = att_v + ba_ref[...][None, :, :]          # (B, L, A), bias folded in

    # hoist weight loads / reshapes out of the unrolled loop
    wah = wah_ref[...]
    va = va_ref[...].reshape(1, 1, A)
    wg = wg_ref[...]
    bg = bg_ref[...]
    wo = wo_ref[...]
    bo = bo_ref[...]

    # TODO(synk): for very long target sequences switch this static unroll to a
    # lax.fori_loop with a dynamic pl.ds store (T here is small and static).
    for t in range(T):
        e = emb_ref[t]                               # (B, EMB)

        # --- Bahdanau attention (V @ Wav precomputed once above) -------------
        att_h = jnp.dot(h, wah, preferred_element_type=jnp.float32)    # (B, A)
        t_act = jnp.tanh(att_v + att_h[:, None, :])                    # (B, L, A)
        scores = jnp.sum(t_act * va, axis=-1)                          # (B, L)
        scores = scores - jnp.max(scores, axis=-1, keepdims=True)
        p = jnp.exp(scores)
        inv = pl.reciprocal(jnp.sum(p, axis=-1, keepdims=True), approx=True)
        alpha = p * inv                                                # (B, L)
        context = jnp.sum(alpha[:, :, None] * V, axis=1)               # (B, E)

        # --- LSTM cell: single fused gate matmul on [e | context | h] --------
        x_cat = jnp.concatenate([e, context, h], axis=1)               # (B, EMB+E+D)
        gates = jnp.dot(x_cat, wg, preferred_element_type=jnp.float32) + bg
        i = jax.nn.sigmoid(gates[:, 0:D])
        f = jax.nn.sigmoid(gates[:, D:2 * D])
        g = jnp.tanh(gates[:, 2 * D:3 * D])
        o = jax.nn.sigmoid(gates[:, 3 * D:4 * D])
        c = f * c + i * g
        h = o * jnp.tanh(c)

        # --- output projection on [h | context] + log-softmax ----------------
        # (padded class columns carry bias -1e9 -> exp underflows to 0, so the
        #  log-softmax over the real N_CLASS columns is exact)
        hc = jnp.concatenate([h, context], axis=1)                     # (B, D+E)
        logits = jnp.dot(hc, wo, preferred_element_type=jnp.float32) + bo
        m = jnp.max(logits, axis=-1, keepdims=True)
        lse = m + jnp.log(jnp.sum(jnp.exp(logits - m), axis=-1, keepdims=True))
        out_ref[:, pl.ds(t * npad, npad)] = logits - lse               # lane-dense store


# ---------------------------------------------------------------------------
# glue: im2col / pooling layout, parameter setup, forward wrapper
# ---------------------------------------------------------------------------
def conv3x3_relu_pool(x, w_mat, b):
    """3x3 'same' conv + ReLU + 2x2 max-pool, fused into one Pallas kernel.

    The im2col gather (pure layout, stride-2 slices per pool quadrant) runs in
    the wrapper; compute runs in a single kernel call.
    """
    B, H, W, C = x.shape
    Ho, Wo = H // 2, W // 2
    xp = jnp.pad(x, ((0, 0), (1, 1), (1, 1), (0, 0)))
    quads = []
    for pi in range(2):
        for pj in range(2):
            cols = []
            for di in range(3):
                for dj in range(3):
                    cols.append(xp[:, pi + di::2, pj + dj::2, :][:, :Ho, :Wo, :])
            quads.append(jnp.concatenate(cols, axis=-1).reshape(B * Ho * Wo, 9 * C))
    patches = jnp.stack(quads, axis=0)                     # (4, B*Ho*Wo, 9*C)
    out_c = w_mat.shape[1]
    y2d = pl.pallas_call(
        _conv_relu_pool_kernel,
        out_shape=jax.ShapeDtypeStruct((B * Ho * Wo, out_c), jnp.float32),
        in_specs=[VMEM_SPEC] * 3,
        out_specs=VMEM_SPEC,
    )(patches, w_mat, b.reshape(1, out_c))
    return y2d.reshape(B, Ho, Wo, out_c)


def init_params(key):
    ks = jax.random.split(key, 20)
    s = 0.1

    def n(k, shape):
        return (s * jax.random.normal(k, shape)).astype(jnp.float32)

    p = {
        # encoder (conv_encoder style)
        'conv1_w': n(ks[0], (9 * 1, CNN_CHANNELS)),
        'conv1_b': n(ks[1], (CNN_CHANNELS,)),
        'conv2_w': n(ks[2], (9 * CNN_CHANNELS, ENC_DIM)),
        'conv2_b': n(ks[3], (ENC_DIM,)),
        # init_h / init_c Linear(enc_dim, dec_dim * num_layers)
        'init_h_w': n(ks[4], (ENC_DIM, DEC_DIM * NUM_LAYERS)),
        'init_h_b': n(ks[5], (1, DEC_DIM * NUM_LAYERS)),
        'init_c_w': n(ks[6], (ENC_DIM, DEC_DIM * NUM_LAYERS)),
        'init_c_b': n(ks[7], (1, DEC_DIM * NUM_LAYERS)),
        # decoder embedding
        'embedding': n(ks[8], (N_CLASS, EMB_DIM)),
        # Bahdanau attention
        'wav': n(ks[9], (ENC_DIM, ATTN_DIM)),
        'wah': n(ks[10], (DEC_DIM, ATTN_DIM)),
        'ba': n(ks[11], (1, ATTN_DIM)),
        'va': n(ks[12], (1, ATTN_DIM)),
        # LSTM cell, gate order (i, f, g, o); inputs [emb, context, hidden]
        'we': n(ks[13], (EMB_DIM, 4 * DEC_DIM)),
        'wc': n(ks[14], (ENC_DIM, 4 * DEC_DIM)),
        'wh': n(ks[15], (DEC_DIM, 4 * DEC_DIM)),
        'bg': n(ks[16], (1, 4 * DEC_DIM)),
        # output projection on [h, context]
        'woh': n(ks[17], (DEC_DIM, N_CLASS)),
        'woc': n(ks[18], (ENC_DIM, N_CLASS)),
        'bo': n(ks[19], (1, N_CLASS)),
    }
    return p


def image2latex_forward(params, x, y, y_len):
    """Mirrors Image2Latex.forward(x, y, y_len) -> (B, T, n_class).

    y_len is unused, exactly as in the PyTorch forward (loop runs over T = y.size(1)).
    """
    del y_len
    # ---- encoder (conv -> relu -> pool, twice) ------------------------------
    x_nhwc = jnp.transpose(x, (0, 2, 3, 1))                  # NCHW -> NHWC
    f1 = conv3x3_relu_pool(x_nhwc, params['conv1_w'], params['conv1_b'])
    f2 = conv3x3_relu_pool(f1, params['conv2_w'], params['conv2_b'])
    B, Hp, Wp, E = f2.shape
    L = Hp * Wp
    encoder_out = f2.reshape(B, L, E)                        # (B, L, enc_dim)

    # ---- decoder: encoder head + T-step LSTM fused in ONE pallas_call -------
    # (NUM_LAYERS == 1, so h_flat.view(bs, 1, -1).transpose(0, 1)[0] == h_flat;
    #  the init Linear output is therefore used directly as the layer-0 state.)
    T = y.shape[1]
    emb_all = jnp.take(params['embedding'], y, axis=0)       # (B, T, emb_dim)
    emb_tbe = jnp.transpose(emb_all, (1, 0, 2))              # (T, B, emb_dim)

    # stack the LSTM / output-projection weights so the step does 1 dot each;
    # pad the class dim to 128 lanes (padded bias = -1e9 so softmax is exact).
    wg = jnp.concatenate([params['we'], params['wc'], params['wh']], axis=0)
    wo = jnp.concatenate([params['woh'], params['woc']], axis=0)
    wo_pad = jnp.zeros((DEC_DIM + ENC_DIM, N_CLASS_PAD),
                       jnp.float32).at[:, :N_CLASS].set(wo)
    bo_pad = jnp.full((1, N_CLASS_PAD), -1e9,
                      jnp.float32).at[:, :N_CLASS].set(params['bo'])

    x_in = EMB_DIM + ENC_DIM + DEC_DIM
    flops_step = 2 * B * (DEC_DIM * ATTN_DIM + x_in * 4 * DEC_DIM
                          + (DEC_DIM + ENC_DIM) * N_CLASS_PAD) + 6 * B * L * ATTN_DIM
    cost = pl.CostEstimate(
        flops=T * flops_step + 2 * B * L * ENC_DIM * ATTN_DIM + 4 * B * ENC_DIM * DEC_DIM,
        transcendentals=T * B * (L * ATTN_DIM + L + 6 * DEC_DIM + N_CLASS_PAD),
        bytes_accessed=4 * (emb_tbe.size + encoder_out.size + wg.size + wo_pad.size
                            + B * T * N_CLASS_PAD))

    out2d = pl.pallas_call(
        _decoder_fused_kernel,
        out_shape=jax.ShapeDtypeStruct((B, T * N_CLASS_PAD), jnp.float32),
        in_specs=[VMEM_SPEC] * 14,
        out_specs=VMEM_SPEC,
        cost_estimate=cost,
    )(emb_tbe, encoder_out,
      params['init_h_w'], params['init_h_b'],
      params['init_c_w'], params['init_c_b'],
      params['wav'], params['ba'], params['wah'], params['va'],
      wg, params['bg'], wo_pad, bo_pad)

    # (B, T*N_CLASS_PAD) -> (B, T, n_class)
    return out2d.reshape(B, T, N_CLASS_PAD)[:, :, :N_CLASS]


# ---------------------------------------------------------------------------
if __name__ == "__main__":
    key = jax.random.PRNGKey(0)
    k_param, k_x, k_y = jax.random.split(key, 3)

    params = init_params(k_param)

    B, C, H, W = 2, 1, 16, 16
    T = 8
    x = jax.random.normal(k_x, (B, C, H, W), dtype=jnp.float32)
    y = jax.random.randint(k_y, (B, T), 0, N_CLASS, dtype=jnp.int32)
    y_len = jnp.full((B,), T, dtype=jnp.int32)

    fwd = jax.jit(image2latex_forward)
    preds = fwd(params, x, y, y_len)
    jax.block_until_ready(preds)

    assert preds.shape == (B, T, N_CLASS), preds.shape
    assert bool(jnp.all(jnp.isfinite(preds)))
    print("KERNEL_OK")
</pallas_src>

<mosaic_0001>
module attributes {stable_mosaic.version = 11 : i64} {
  func.func @_conv_relu_pool_kernel(%arg0: memref<4x128x9xf32, #tpu.memory_space<vmem>>, %arg1: memref<9x8xf32, #tpu.memory_space<vmem>>, %arg2: memref<1x8xf32, #tpu.memory_space<vmem>>, %arg3: memref<128x8xf32, #tpu.memory_space<vmem>>) attributes {dimension_semantics = [], scalar_prefetch = 0 : i64, scratch_operands = 0 : i64, tpu.core_type = #tpu.core_type<tc>} {
    %c0 = arith.constant 0 : index
    %c0_0 = arith.constant 0 : index
    %c0_1 = arith.constant 0 : index
    %0 = vector.load %arg0[%c0, %c0_0, %c0_1] : memref<4x128x9xf32, #tpu.memory_space<vmem>>, vector<4x128x9xf32>
    %1 = vector.shape_cast %0 : vector<4x128x9xf32> to vector<512x9xf32>
    %c0_2 = arith.constant 0 : index
    %c0_3 = arith.constant 0 : index
    %2 = vector.load %arg1[%c0_2, %c0_3] : memref<9x8xf32, #tpu.memory_space<vmem>>, vector<9x8xf32>
    %cst = arith.constant dense<0.000000e+00> : vector<512x8xf32>
    %3 = tpu.matmul %1, %2, %cst {dimension_numbers = #tpu.dot_dimension_numbers<[1], [0], [0], [1], [0, 0, 1, 1], [], []>} : vector<512x9xf32>, vector<9x8xf32>, vector<512x8xf32> -> vector<512x8xf32>
    %c0_4 = arith.constant 0 : index
    %c0_5 = arith.constant 0 : index
    %4 = vector.load %arg2[%c0_4, %c0_5] : memref<1x8xf32, #tpu.memory_space<vmem>>, vector<1x8xf32>
    %5 = vector.broadcast %4 : vector<1x8xf32> to vector<512x8xf32>
    %6 = arith.addf %3, %5 : vector<512x8xf32>
    %cst_6 = arith.constant 0.000000e+00 : f32
    %7 = vector.broadcast %cst_6 : f32 to vector<512x8xf32>
    %8 = arith.maximumf %6, %7 : vector<512x8xf32>
    %9 = vector.shape_cast %8 : vector<512x8xf32> to vector<4x128x8xf32>
    %10 = vector.extract_strided_slice %9 {offsets = [0, 0, 0], sizes = [1, 128, 8], strides = [1, 1, 1]} : vector<4x128x8xf32> to vector<1x128x8xf32>
    %11 = vector.shape_cast %10 : vector<1x128x8xf32> to vector<128x8xf32>
    %12 = vector.extract_strided_slice %9 {offsets = [1, 0, 0], sizes = [1, 128, 8], strides = [1, 1, 1]} : vector<4x128x8xf32> to vector<1x128x8xf32>
    %13 = vector.shape_cast %12 : vector<1x128x8xf32> to vector<128x8xf32>
    %14 = arith.maximumf %11, %13 : vector<128x8xf32>
    %15 = vector.extract_strided_slice %9 {offsets = [2, 0, 0], sizes = [1, 128, 8], strides = [1, 1, 1]} : vector<4x128x8xf32> to vector<1x128x8xf32>
    %16 = vector.shape_cast %15 : vector<1x128x8xf32> to vector<128x8xf32>
    %17 = vector.extract_strided_slice %9 {offsets = [3, 0, 0], sizes = [1, 128, 8], strides = [1, 1, 1]} : vector<4x128x8xf32> to vector<1x128x8xf32>
    %18 = vector.shape_cast %17 : vector<1x128x8xf32> to vector<128x8xf32>
    %19 = arith.maximumf %16, %18 : vector<128x8xf32>
    %20 = arith.maximumf %14, %19 : vector<128x8xf32>
    %c0_7 = arith.constant 0 : index
    %c0_8 = arith.constant 0 : index
    %21 = vector.load %arg3[%c0_7, %c0_8] : memref<128x8xf32, #tpu.memory_space<vmem>>, vector<128x8xf32>
    tpu.vector_store %arg3[%c0_7, %c0_8], %20 {strides = array<i32>} : memref<128x8xf32, #tpu.memory_space<vmem>>, vector<128x8xf32>,
    return
  }
}

module attributes {stable_mosaic.version = 11 : i64} {
  func.func @_conv_relu_pool_kernel(%arg0: memref<4x32x72xf32, #tpu.memory_space<vmem>>, %arg1: memref<72x32xf32, #tpu.memory_space<vmem>>, %arg2: memref<1x32xf32, #tpu.memory_space<vmem>>, %arg3: memref<32x32xf32, #tpu.memory_space<vmem>>) attributes {dimension_semantics = [], scalar_prefetch = 0 : i64, scratch_operands = 0 : i64, tpu.core_type = #tpu.core_type<tc>} {
    %c0 = arith.constant 0 : index
    %c0_0 = arith.constant 0 : index
    %c0_1 = arith.constant 0 : index
    %0 = vector.load %arg0[%c0, %c0_0, %c0_1] : memref<4x32x72xf32, #tpu.memory_space<vmem>>, vector<4x32x72xf32>
    %1 = vector.shape_cast %0 : vector<4x32x72xf32> to vector<128x72xf32>
    %c0_2 = arith.constant 0 : index
    %c0_3 = arith.constant 0 : index
    %2 = vector.load %arg1[%c0_2, %c0_3] : memref<72x32xf32, #tpu.memory_space<vmem>>, vector<72x32xf32>
    %cst = arith.constant dense<0.000000e+00> : vector<128x32xf32>
    %3 = tpu.matmul %1, %2, %cst {dimension_numbers = #tpu.dot_dimension_numbers<[1], [0], [0], [1], [0, 0, 1, 1], [], []>} : vector<128x72xf32>, vector<72x32xf32>, vector<128x32xf32> -> vector<128x32xf32>
    %c0_4 = arith.constant 0 : index
    %c0_5 = arith.constant 0 : index
    %4 = vector.load %arg2[%c0_4, %c0_5] : memref<1x32xf32, #tpu.memory_space<vmem>>, vector<1x32xf32>
    %5 = vector.broadcast %4 : vector<1x32xf32> to vector<128x32xf32>
    %6 = arith.addf %3, %5 : vector<128x32xf32>
    %cst_6 = arith.constant 0.000000e+00 : f32
    %7 = vector.broadcast %cst_6 : f32 to vector<128x32xf32>
    %8 = arith.maximumf %6, %7 : vector<128x32xf32>
    %9 = vector.shape_cast %8 : vector<128x32xf32> to vector<4x32x32xf32>
    %10 = vector.extract_strided_slice %9 {offsets = [0, 0, 0], sizes = [1, 32, 32], strides = [1, 1, 1]} : vector<4x32x32xf32> to vector<1x32x32xf32>
    %11 = vector.shape_cast %10 : vector<1x32x32xf32> to vector<32x32xf32>
    %12 = vector.extract_strided_slice %9 {offsets = [1, 0, 0], sizes = [1, 32, 32], strides = [1, 1, 1]} : vector<4x32x32xf32> to vector<1x32x32xf32>
    %13 = vector.shape_cast %12 : vector<1x32x32xf32> to vector<32x32xf32>
    %14 = arith.maximumf %11, %13 : vector<32x32xf32>
    %15 = vector.extract_strided_slice %9 {offsets = [2, 0, 0], sizes = [1, 32, 32], strides = [1, 1, 1]} : vector<4x32x32xf32> to vector<1x32x32xf32>
    %16 = vector.shape_cast %15 : vector<1x32x32xf32> to vector<32x32xf32>
    %17 = vector.extract_strided_slice %9 {offsets = [3, 0, 0], sizes = [1, 32, 32], strides = [1, 1, 1]} : vector<4x32x32xf32> to vector<1x32x32xf32>
    %18 = vector.shape_cast %17 : vector<1x32x32xf32> to vector<32x32xf32>
    %19 = arith.maximumf %16, %18 : vector<32x32xf32>
    %20 = arith.maximumf %14, %19 : vector<32x32xf32>
    %c0_7 = arith.constant 0 : index
    %c0_8 = arith.constant 0 : index
    %21 = vector.load %arg3[%c0_7, %c0_8] : memref<32x32xf32, #tpu.memory_space<vmem>>, vector<32x32xf32>
    tpu.vector_store %arg3[%c0_7, %c0_8], %20 {strides = array<i32>} : memref<32x32xf32, #tpu.memory_space<vmem>>, vector<32x32xf32>,
    return
  }
}

module attributes {stable_mosaic.version = 11 : i64} {
  func.func @_decoder_fused_kernel(%arg0: memref<8x2x16xf32, #tpu.memory_space<vmem>>, %arg1: memref<2x16x32xf32, #tpu.memory_space<vmem>>, %arg2: memref<32x32xf32, #tpu.memory_space<vmem>>, %arg3: memref<1x32xf32, #tpu.memory_space<vmem>>, %arg4: memref<32x32xf32, #tpu.memory_space<vmem>>, %arg5: memref<1x32xf32, #tpu.memory_space<vmem>>, %arg6: memref<32x32xf32, #tpu.memory_space<vmem>>, %arg7: memref<1x32xf32, #tpu.memory_space<vmem>>, %arg8: memref<32x32xf32, #tpu.memory_space<vmem>>, %arg9: memref<1x32xf32, #tpu.memory_space<vmem>>, %arg10: memref<80x128xf32, #tpu.memory_space<vmem>>, %arg11: memref<1x128xf32, #tpu.memory_space<vmem>>, %arg12: memref<64x128xf32, #tpu.memory_space<vmem>>, %arg13: memref<1x128xf32, #tpu.memory_space<vmem>>, %arg14: memref<2x1024xf32, #tpu.memory_space<vmem>>) attributes {dimension_semantics = [], scalar_prefetch = 0 : i64, scratch_operands = 0 : i64, tpu.core_type = #tpu.core_type<tc>} {
    %c0 = arith.constant 0 : index
    %c0_0 = arith.constant 0 : index
    %c0_1 = arith.constant 0 : index
    %0 = vector.load %arg1[%c0, %c0_0, %c0_1] : memref<2x16x32xf32, #tpu.memory_space<vmem>>, vector<2x16x32xf32>
    %cst = arith.constant dense<0.000000e+00> : vector<2x32xf32>
    %1 = vector.multi_reduction <add>, %0, %cst [1] : vector<2x16x32xf32> to vector<2x32xf32>
    %cst_2 = arith.constant 1.600000e+01 : f32
    %2 = vector.broadcast %cst_2 : f32 to vector<2x32xf32>
    %3 = arith.divf %1, %2 : vector<2x32xf32>
    %c0_3 = arith.constant 0 : index
    %c0_4 = arith.constant 0 : index
    %4 = vector.load %arg2[%c0_3, %c0_4] : memref<32x32xf32, #tpu.memory_space<vmem>>, vector<32x32xf32>
    %cst_5 = arith.constant dense<0.000000e+00> : vector<2x32xf32>
    %5 = tpu.matmul %3, %4, %cst_5 {dimension_numbers = #tpu.dot_dimension_numbers<[1], [0], [0], [1], [0, 0, 1, 1], [], []>} : vector<2x32xf32>, vector<32x32xf32>, vector<2x32xf32> -> vector<2x32xf32>
    %c0_6 = arith.constant 0 : index
    %c0_7 = arith.constant 0 : index
    %6 = vector.load %arg3[%c0_6, %c0_7] : memref<1x32xf32, #tpu.memory_space<vmem>>, vector<1x32xf32>
    %7 = vector.broadcast %6 : vector<1x32xf32> to vector<2x32xf32>
    %8 = arith.addf %5, %7 : vector<2x32xf32>
    %9 = math.tanh %8 : vector<2x32xf32>
    %c0_8 = arith.constant 0 : index
    %c0_9 = arith.constant 0 : index
    %10 = vector.load %arg4[%c0_8, %c0_9] : memref<32x32xf32, #tpu.memory_space<vmem>>, vector<32x32xf32>
    %cst_10 = arith.constant dense<0.000000e+00> : vector<2x32xf32>
    %11 = tpu.matmul %3, %10, %cst_10 {dimension_numbers = #tpu.dot_dimension_numbers<[1], [0], [0], [1], [0, 0, 1, 1], [], []>} : vector<2x32xf32>, vector<32x32xf32>, vector<2x32xf32> -> vector<2x32xf32>
    %c0_11 = arith.constant 0 : index
    %c0_12 = arith.constant 0 : index
    %12 = vector.load %arg5[%c0_11, %c0_12] : memref<1x32xf32, #tpu.memory_space<vmem>>, vector<1x32xf32>
    %13 = vector.broadcast %12 : vector<1x32xf32> to vector<2x32xf32>
    %14 = arith.addf %11, %13 : vector<2x32xf32>
    %15 = math.tanh %14 : vector<2x32xf32>
    %16 = vector.shape_cast %0 : vector<2x16x32xf32> to vector<32x32xf32>
    %c0_13 = arith.constant 0 : index
    %c0_14 = arith.constant 0 : index
    %17 = vector.load %arg6[%c0_13, %c0_14] : memref<32x32xf32, #tpu.memory_space<vmem>>, vector<32x32xf32>
    %cst_15 = arith.constant dense<0.000000e+00> : vector<32x32xf32>
    %18 = tpu.matmul %16, %17, %cst_15 {dimension_numbers = #tpu.dot_dimension_numbers<[1], [0], [0], [1], [0, 0, 1, 1], [], []>} : vector<32x32xf32>, vector<32x32xf32>, vector<32x32xf32> -> vector<32x32xf32>
    %19 = vector.shape_cast %18 : vector<32x32xf32> to vector<2x16x32xf32>
    %c0_16 = arith.constant 0 : index
    %c0_17 = arith.constant 0 : index
    %20 = vector.load %arg7[%c0_16, %c0_17] : memref<1x32xf32, #tpu.memory_space<vmem>>, vector<1x32xf32>
    %21 = vector.shape_cast %20 : vector<1x32xf32> to vector<1x1x32xf32>
    %22 = vector.broadcast %21 : vector<1x1x32xf32> to vector<2x16x32xf32>
    %23 = arith.addf %19, %22 : vector<2x16x32xf32>
    %c0_18 = arith.constant 0 : index
    %c0_19 = arith.constant 0 : index
    %24 = vector.load %arg8[%c0_18, %c0_19] : memref<32x32xf32, #tpu.memory_space<vmem>>, vector<32x32xf32>
    %c0_20 = arith.constant 0 : index
    %c0_21 = arith.constant 0 : index
    %25 = vector.load %arg9[%c0_20, %c0_21] : memref<1x32xf32, #tpu.memory_space<vmem>>, vector<1x32xf32>
    %26 = vector.shape_cast %25 : vector<1x32xf32> to vector<1x1x32xf32>
    %c0_22 = arith.constant 0 : index
    %c0_23 = arith.constant 0 : index
    %27 = vector.load %arg10[%c0_22, %c0_23] : memref<80x128xf32, #tpu.memory_space<vmem>>, vector<80x128xf32>
    %c0_24 = arith.constant 0 : index
    %c0_25 = arith.constant 0 : index
    %28 = vector.load %arg11[%c0_24, %c0_25] : memref<1x128xf32, #tpu.memory_space<vmem>>, vector<1x128xf32>
    %c0_26 = arith.constant 0 : index
    %c0_27 = arith.constant 0 : index
    %29 = vector.load %arg12[%c0_26, %c0_27] : memref<64x128xf32, #tpu.memory_space<vmem>>, vector<64x128xf32>
    %c0_28 = arith.constant 0 : index
    %c0_29 = arith.constant 0 : index
    %30 = vector.load %arg13[%c0_28, %c0_29] : memref<1x128xf32, #tpu.memory_space<vmem>>, vector<1x128xf32>
    %c0_30 = arith.constant 0 : index
    %c0_31 = arith.constant 0 : index
    %c0_32 = arith.constant 0 : index
    %31 = vector.load %arg0[%c0_30, %c0_31, %c0_32] : memref<8x2x16xf32, #tpu.memory_space<vmem>>, vector<1x2x16xf32>
    %32 = vector.shape_cast %31 : vector<1x2x16xf32> to vector<2x16xf32>
    %cst_33 = arith.constant dense<0.000000e+00> : vector<2x32xf32>
    %33 = tpu.matmul %9, %24, %cst_33 {dimension_numbers = #tpu.dot_dimension_numbers<[1], [0], [0], [1], [0, 0, 1, 1], [], []>} : vector<2x32xf32>, vector<32x32xf32>, vector<2x32xf32> -> vector<2x32xf32>
    %34 = vector.shape_cast %33 : vector<2x32xf32> to vector<2x1x32xf32>
    %35 = vector.broadcast %34 : vector<2x1x32xf32> to vector<2x16x32xf32>
    %36 = arith.addf %23, %35 : vector<2x16x32xf32>
    %37 = math.tanh %36 : vector<2x16x32xf32>
    %38 = vector.broadcast %26 : vector<1x1x32xf32> to vector<2x16x32xf32>
    %39 = arith.mulf %37, %38 : vector<2x16x32xf32>
    %cst_34 = arith.constant dense<0.000000e+00> : vector<2x16xf32>
    %40 = vector.multi_reduction <add>, %39, %cst_34 [2] : vector<2x16x32xf32> to vector<2x16xf32>
    %cst_35 = arith.constant dense<0xFF800000> : vector<2xf32>
    %41 = vector.multi_reduction <maximumf>, %40, %cst_35 [1] : vector<2x16xf32> to vector<2xf32>
    %42 = vector.shape_cast %41 : vector<2xf32> to vector<2x1xf32>
    %43 = vector.broadcast %42 : vector<2x1xf32> to vector<2x16xf32>
    %44 = arith.subf %40, %43 : vector<2x16xf32>
    %45 = math.exp %44 : vector<2x16xf32>
    %cst_36 = arith.constant dense<0.000000e+00> : vector<2xf32>
    %46 = vector.multi_reduction <add>, %45, %cst_36 [1] : vector<2x16xf32> to vector<2xf32>
    %47 = vector.shape_cast %46 : vector<2xf32> to vector<2x1xf32>
    %48 = tpu.reciprocal %47 {approx = true} : vector<2x1xf32> -> vector<2x1xf32>
    %49 = vector.broadcast %48 : vector<2x1xf32> to vector<2x16xf32>
    %50 = arith.mulf %45, %49 : vector<2x16xf32>
    %51 = vector.shape_cast %50 : vector<2x16xf32> to vector<2x16x1xf32>
    %52 = vector.broadcast %51 : vector<2x16x1xf32> to vector<2x16x32xf32>
    %53 = arith.mulf %52, %0 : vector<2x16x32xf32>
    %cst_37 = arith.constant dense<0.000000e+00> : vector<2x32xf32>
    %54 = vector.multi_reduction <add>, %53, %cst_37 [1] : vector<2x16x32xf32> to vector<2x32xf32>
    %55 = tpu.concatenate %32, %54, %9 in 1 : vector<2x16xf32>, vector<2x32xf32>, vector<2x32xf32> -> vector<2x80xf32>
    %cst_38 = arith.constant dense<0.000000e+00> : vector<2x128xf32>
    %56 = tpu.matmul %55, %27, %cst_38 {dimension_numbers = #tpu.dot_dimension_numbers<[1], [0], [0], [1], [0, 0, 1, 1], [], []>} : vector<2x80xf32>, vector<80x128xf32>, vector<2x128xf32> -> vector<2x128xf32>
    %57 = vector.broadcast %28 : vector<1x128xf32> to vector<2x128xf32>
    %58 = arith.addf %56, %57 : vector<2x128xf32>
    %59 = vector.extract_strided_slice %58 {offsets = [0, 0], sizes = [2, 32], strides = [1, 1]} : vector<2x128xf32> to vector<2x32xf32>
    %60 = arith.negf %59 : vector<2x32xf32>
    %61 = math.exp %60 : vector<2x32xf32>
    %cst_39 = arith.constant 1.000000e+00 : f32
    %62 = vector.broadcast %cst_39 : f32 to vector<2x32xf32>
    %63 = arith.addf %62, %61 : vector<2x32xf32>
    %64 = arith.divf %62, %63 : vector<2x32xf32>
    %65 = vector.extract_strided_slice %58 {offsets = [0, 32], sizes = [2, 32], strides = [1, 1]} : vector<2x128xf32> to vector<2x32xf32>
    %66 = arith.negf %65 : vector<2x32xf32>
    %67 = math.exp %66 : vector<2x32xf32>
    %cst_40 = arith.constant 1.000000e+00 : f32
    %68 = vector.broadcast %cst_40 : f32 to vector<2x32xf32>
    %69 = arith.addf %68, %67 : vector<2x32xf32>
    %70 = arith.divf %68, %69 : vector<2x32xf32>
    %71 = vector.extract_strided_slice %58 {offsets = [0, 64], sizes = [2, 32], strides = [1, 1]} : vector<2x128xf32> to vector<2x32xf32>
    %72 = math.tanh %71 : vector<2x32xf32>
    %73 = vector.extract_strided_slice %58 {offsets = [0, 96], sizes = [2, 32], strides = [1, 1]} : vector<2x128xf32> to vector<2x32xf32>
    %74 = arith.negf %73 : vector<2x32xf32>
    %75 = math.exp %74 : vector<2x32xf32>
    %cst_41 = arith.constant 1.000000e+00 : f32
    %76 = vector.broadcast %cst_41 : f32 to vector<2x32xf32>
    %77 = arith.addf %76, %75 : vector<2x32xf32>
    %78 = arith.divf %76, %77 : vector<2x32xf32>
    %79 = arith.mulf %70, %15 : vector<2x32xf32>
    %80 = arith.mulf %64, %72 : vector<2x32xf32>
    %81 = arith.addf %79, %80 : vector<2x32xf32>
    %82 = math.tanh %81 : vector<2x32xf32>
    %83 = arith.mulf %78, %82 : vector<2x32xf32>
    %84 = tpu.concatenate %83, %54 in 1 : vector<2x32xf32>, vector<2x32xf32> -> vector<2x64xf32>
    %cst_42 = arith.constant dense<0.000000e+00> : vector<2x128xf32>
    %85 = tpu.matmul %84, %29, %cst_42 {dimension_numbers = #tpu.dot_dimension_numbers<[1], [0], [0], [1], [0, 0, 1, 1], [], []>} : vector<2x64xf32>, vector<64x128xf32>, vector<2x128xf32> -> vector<2x128xf32>
    %86 = vector.broadcast %30 : vector<1x128xf32> to vector<2x128xf32>
    %87 = arith.addf %85, %86 : vector<2x128xf32>
    %cst_43 = arith.constant dense<0xFF800000> : vector<2xf32>
    %88 = vector.multi_reduction <maximumf>, %87, %cst_43 [1] : vector<2x128xf32> to vector<2xf32>
    %89 = vector.shape_cast %88 : vector<2xf32> to vector<2x1xf32>
    %90 = vector.broadcast %89 : vector<2x1xf32> to vector<2x128xf32>
    %91 = arith.subf %87, %90 : vector<2x128xf32>
    %92 = math.exp %91 : vector<2x128xf32>
    %cst_44 = arith.constant dense<0.000000e+00> : vector<2xf32>
    %93 = vector.multi_reduction <add>, %92, %cst_44 [1] : vector<2x128xf32> to vector<2xf32>
    %94 = vector.shape_cast %93 : vector<2xf32> to vector<2x1xf32>
    %95 = math.log %94 : vector<2x1xf32>
    %96 = arith.addf %89, %95 : vector<2x1xf32>
    %97 = vector.broadcast %96 : vector<2x1xf32> to vector<2x128xf32>
    %98 = arith.subf %87, %97 : vector<2x128xf32>
    %c0_45 = arith.constant 0 : index
    %c0_46 = arith.constant 0 : index
    %99 = vector.load %arg14[%c0_45, %c0_46] : memref<2x1024xf32, #tpu.memory_space<vmem>>, vector<2x128xf32>
    tpu.vector_store %arg14[%c0_45, %c0_46], %98 {strides = array<i32>} : memref<2x1024xf32, #tpu.memory_space<vmem>>, vector<2x128xf32>,
    %c1 = arith.constant 1 : index
    %c0_47 = arith.constant 0 : index
    %c0_48 = arith.constant 0 : index
    %100 = vector.load %arg0[%c1, %c0_47, %c0_48] : memref<8x2x16xf32, #tpu.memory_space<vmem>>, vector<1x2x16xf32>
    %101 = vector.shape_cast %100 : vector<1x2x16xf32> to vector<2x16xf32>
    %cst_49 = arith.constant dense<0.000000e+00> : vector<2x32xf32>
    %102 = tpu.matmul %83, %24, %cst_49 {dimension_numbers = #tpu.dot_dimension_numbers<[1], [0], [0], [1], [0, 0, 1, 1], [], []>} : vector<2x32xf32>, vector<32x32xf32>, vector<2x32xf32> -> vector<2x32xf32>
    %103 = vector.shape_cast %102 : vector<2x32xf32> to vector<2x1x32xf32>
    %104 = vector.broadcast %103 : vector<2x1x32xf32> to vector<2x16x32xf32>
    %105 = arith.addf %23, %104 : vector<2x16x32xf32>
    %106 = math.tanh %105 : vector<2x16x32xf32>
    %107 = vector.broadcast %26 : vector<1x1x32xf32> to vector<2x16x32xf32>
    %108 = arith.mulf %106, %107 : vector<2x16x32xf32>
    %cst_50 = arith.constant dense<0.000000e+00> : vector<2x16xf32>
    %109 = vector.multi_reduction <add>, %108, %cst_50 [2] : vector<2x16x32xf32> to vector<2x16xf32>
    %cst_51 = arith.constant dense<0xFF800000> : vector<2xf32>
    %110 = vector.multi_reduction <maximumf>, %109, %cst_51 [1] : vector<2x16xf32> to vector<2xf32>
    %111 = vector.shape_cast %110 : vector<2xf32> to vector<2x1xf32>
    %112 = vector.broadcast %111 : vector<2x1xf32> to vector<2x16xf32>
    %113 = arith.subf %109, %112 : vector<2x16xf32>
    %114 = math.exp %113 : vector<2x16xf32>
    %cst_52 = arith.constant dense<0.000000e+00> : vector<2xf32>
    %115 = vector.multi_reduction <add>, %114, %cst_52 [1] : vector<2x16xf32> to vector<2xf32>
    %116 = vector.shape_cast %115 : vector<2xf32> to vector<2x1xf32>
    %117 = tpu.reciprocal %116 {approx = true} : vector<2x1xf32> -> vector<2x1xf32>
    %118 = vector.broadcast %117 : vector<2x1xf32> to vector<2x16xf32>
    %119 = arith.mulf %114, %118 : vector<2x16xf32>
    %120 = vector.shape_cast %119 : vector<2x16xf32> to vector<2x16x1xf32>
    %121 = vector.broadcast %120 : vector<2x16x1xf32> to vector<2x16x32xf32>
    %122 = arith.mulf %121, %0 : vector<2x16x32xf32>
    %cst_53 = arith.constant dense<0.000000e+00> : vector<2x32xf32>
    %123 = vector.multi_reduction <add>, %122, %cst_53 [1] : vector<2x16x32xf32> to vector<2x32xf32>
    %124 = tpu.concatenate %101, %123, %83 in 1 : vector<2x16xf32>, vector<2x32xf32>, vector<2x32xf32> -> vector<2x80xf32>
    %cst_54 = arith.constant dense<0.000000e+00> : vector<2x128xf32>
    %125 = tpu.matmul %124, %27, %cst_54 {dimension_numbers = #tpu.dot_dimension_numbers<[1], [0], [0], [1], [0, 0, 1, 1], [], []>} : vector<2x80xf32>, vector<80x128xf32>, vector<2x128xf32> -> vector<2x128xf32>
    %126 = vector.broadcast %28 : vector<1x128xf32> to vector<2x128xf32>
    %127 = arith.addf %125, %126 : vector<2x128xf32>
    %128 = vector.extract_strided_slice %127 {offsets = [0, 0], sizes = [2, 32], strides = [1, 1]} : vector<2x128xf32> to vector<2x32xf32>
    %129 = arith.negf %128 : vector<2x32xf32>
    %130 = math.exp %129 : vector<2x32xf32>
    %cst_55 = arith.constant 1.000000e+00 : f32
    %131 = vector.broadcast %cst_55 : f32 to vector<2x32xf32>
    %132 = arith.addf %131, %130 : vector<2x32xf32>
    %133 = arith.divf %131, %132 : vector<2x32xf32>
    %134 = vector.extract_strided_slice %127 {offsets = [0, 32], sizes = [2, 32], strides = [1, 1]} : vector<2x128xf32> to vector<2x32xf32>
    %135 = arith.negf %134 : vector<2x32xf32>
    %136 = math.exp %135 : vector<2x32xf32>
    %cst_56 = arith.constant 1.000000e+00 : f32
    %137 = vector.broadcast %cst_56 : f32 to vector<2x32xf32>
    %138 = arith.addf %137, %136 : vector<2x32xf32>
    %139 = arith.divf %137, %138 : vector<2x32xf32>
    %140 = vector.extract_strided_slice %127 {offsets = [0, 64], sizes = [2, 32], strides = [1, 1]} : vector<2x128xf32> to vector<2x32xf32>
    %141 = math.tanh %140 : vector<2x32xf32>
    %142 = vector.extract_strided_slice %127 {offsets = [0, 96], sizes = [2, 32], strides = [1, 1]} : vector<2x128xf32> to vector<2x32xf32>
    %143 = arith.negf %142 : vector<2x32xf32>
    %144 = math.exp %143 : vector<2x32xf32>
    %cst_57 = arith.constant 1.000000e+00 : f32
    %145 = vector.broadcast %cst_57 : f32 to vector<2x32xf32>
    %146 = arith.addf %145, %144 : vector<2x32xf32>
    %147 = arith.divf %145, %146 : vector<2x32xf32>
    %148 = arith.mulf %139, %81 : vector<2x32xf32>
    %149 = arith.mulf %133, %141 : vector<2x32xf32>
    %150 = arith.addf %148, %149 : vector<2x32xf32>
    %151 = math.tanh %150 : vector<2x32xf32>
    %152 = arith.mulf %147, %151 : vector<2x32xf32>
    %153 = tpu.concatenate %152, %123 in 1 : vector<2x32xf32>, vector<2x32xf32> -> vector<2x64xf32>
    %cst_58 = arith.constant dense<0.000000e+00> : vector<2x128xf32>
    %154 = tpu.matmul %153, %29, %cst_58 {dimension_numbers = #tpu.dot_dimension_numbers<[1], [0], [0], [1], [0, 0, 1, 1], [], []>} : vector<2x64xf32>, vector<64x128xf32>, vector<2x128xf32> -> vector<2x128xf32>
    %155 = vector.broadcast %30 : vector<1x128xf32> to vector<2x128xf32>
    %156 = arith.addf %154, %155 : vector<2x128xf32>
    %cst_59 = arith.constant dense<0xFF800000> : vector<2xf32>
    %157 = vector.multi_reduction <maximumf>, %156, %cst_59 [1] : vector<2x128xf32> to vector<2xf32>
    %158 = vector.shape_cast %157 : vector<2xf32> to vector<2x1xf32>
    %159 = vector.broadcast %158 : vector<2x1xf32> to vector<2x128xf32>
    %160 = arith.subf %156, %159 : vector<2x128xf32>
    %161 = math.exp %160 : vector<2x128xf32>
    %cst_60 = arith.constant dense<0.000000e+00> : vector<2xf32>
    %162 = vector.multi_reduction <add>, %161, %cst_60 [1] : vector<2x128xf32> to vector<2xf32>
    %163 = vector.shape_cast %162 : vector<2xf32> to vector<2x1xf32>
    %164 = math.log %163 : vector<2x1xf32>
    %165 = arith.addf %158, %164 : vector<2x1xf32>
    %166 = vector.broadcast %165 : vector<2x1xf32> to vector<2x128xf32>
    %167 = arith.subf %156, %166 : vector<2x128xf32>
    %c0_61 = arith.constant 0 : index
    %c128 = arith.constant 128 : index
    %168 = vector.load %arg14[%c0_61, %c128] : memref<2x1024xf32, #tpu.memory_space<vmem>>, vector<2x128xf32>
    tpu.vector_store %arg14[%c0_61, %c128], %167 {strides = array<i32>} : memref<2x1024xf32, #tpu.memory_space<vmem>>, vector<2x128xf32>,
    %c2 = arith.constant 2 : index
    %c0_62 = arith.constant 0 : index
    %c0_63 = arith.constant 0 : index
    %169 = vector.load %arg0[%c2, %c0_62, %c0_63] : memref<8x2x16xf32, #tpu.memory_space<vmem>>, vector<1x2x16xf32>
    %170 = vector.shape_cast %169 : vector<1x2x16xf32> to vector<2x16xf32>
    %cst_64 = arith.constant dense<0.000000e+00> : vector<2x32xf32>
    %171 = tpu.matmul %152, %24, %cst_64 {dimension_numbers = #tpu.dot_dimension_numbers<[1], [0], [0], [1], [0, 0, 1, 1], [], []>} : vector<2x32xf32>, vector<32x32xf32>, vector<2x32xf32> -> vector<2x32xf32>
    %172 = vector.shape_cast %171 : vector<2x32xf32> to vector<2x1x32xf32>
    %173 = vector.broadcast %172 : vector<2x1x32xf32> to vector<2x16x32xf32>
    %174 = arith.addf %23, %173 : vector<2x16x32xf32>
    %175 = math.tanh %174 : vector<2x16x32xf32>
    %176 = vector.broadcast %26 : vector<1x1x32xf32> to vector<2x16x32xf32>
    %177 = arith.mulf %175, %176 : vector<2x16x32xf32>
    %cst_65 = arith.constant dense<0.000000e+00> : vector<2x16xf32>
    %178 = vector.multi_reduction <add>, %177, %cst_65 [2] : vector<2x16x32xf32> to vector<2x16xf32>
    %cst_66 = arith.constant dense<0xFF800000> : vector<2xf32>
    %179 = vector.multi_reduction <maximumf>, %178, %cst_66 [1] : vector<2x16xf32> to vector<2xf32>
    %180 = vector.shape_cast %179 : vector<2xf32> to vector<2x1xf32>
    %181 = vector.broadcast %180 : vector<2x1xf32> to vector<2x16xf32>
    %182 = arith.subf %178, %181 : vector<2x16xf32>
    %183 = math.exp %182 : vector<2x16xf32>
    %cst_67 = arith.constant dense<0.000000e+00> : vector<2xf32>
    %184 = vector.multi_reduction <add>, %183, %cst_67 [1] : vector<2x16xf32> to vector<2xf32>
    %185 = vector.shape_cast %184 : vector<2xf32> to vector<2x1xf32>
    %186 = tpu.reciprocal %185 {approx = true} : vector<2x1xf32> -> vector<2x1xf32>
    %187 = vector.broadcast %186 : vector<2x1xf32> to vector<2x16xf32>
    %188 = arith.mulf %183, %187 : vector<2x16xf32>
    %189 = vector.shape_cast %188 : vector<2x16xf32> to vector<2x16x1xf32>
    %190 = vector.broadcast %189 : vector<2x16x1xf32> to vector<2x16x32xf32>
    %191 = arith.mulf %190, %0 : vector<2x16x32xf32>
    %cst_68 = arith.constant dense<0.000000e+00> : vector<2x32xf32>
    %192 = vector.multi_reduction <add>, %191, %cst_68 [1] : vector<2x16x32xf32> to vector<2x32xf32>
    %193 = tpu.concatenate %170, %192, %152 in 1 : vector<2x16xf32>, vector<2x32xf32>, vector<2x32xf32> -> vector<2x80xf32>
    %cst_69 = arith.constant dense<0.000000e+00> : vector<2x128xf32>
    %194 = tpu.matmul %193, %27, %cst_69 {dimension_numbers = #tpu.dot_dimension_numbers<[1], [0], [0], [1], [0, 0, 1, 1], [], []>} : vector<2x80xf32>, vector<80x128xf32>, vector<2x128xf32> -> vector<2x128xf32>
    %195 = vector.broadcast %28 : vector<1x128xf32> to vector<2x128xf32>
    %196 = arith.addf %194, %195 : vector<2x128xf32>
    %197 = vector.extract_strided_slice %196 {offsets = [0, 0], sizes = [2, 32], strides = [1, 1]} : vector<2x128xf32> to vector<2x32xf32>
    %198 = arith.negf %197 : vector<2x32xf32>
    %199 = math.exp %198 : vector<2x32xf32>
    %cst_70 = arith.constant 1.000000e+00 : f32
    %200 = vector.broadcast %cst_70 : f32 to vector<2x32xf32>
    %201 = arith.addf %200, %199 : vector<2x32xf32>
    %202 = arith.divf %200, %201 : vector<2x32xf32>
    %203 = vector.extract_strided_slice %196 {offsets = [0, 32], sizes = [2, 32], strides = [1, 1]} : vector<2x128xf32> to vector<2x32xf32>
    %204 = arith.negf %203 : vector<2x32xf32>
    %205 = math.exp %204 : vector<2x32xf32>
    %cst_71 = arith.constant 1.000000e+00 : f32
    %206 = vector.broadcast %cst_71 : f32 to vector<2x32xf32>
    %207 = arith.addf %206, %205 : vector<2x32xf32>
    %208 = arith.divf %206, %207 : vector<2x32xf32>
    %209 = vector.extract_strided_slice %196 {offsets = [0, 64], sizes = [2, 32], strides = [1, 1]} : vector<2x128xf32> to vector<2x32xf32>
    %210 = math.tanh %209 : vector<2x32xf32>
    %211 = vector.extract_strided_slice %196 {offsets = [0, 96], sizes = [2, 32], strides = [1, 1]} : vector<2x128xf32> to vector<2x32xf32>
    %212 = arith.negf %211 : vector<2x32xf32>
    %213 = math.exp %212 : vector<2x32xf32>
    %cst_72 = arith.constant 1.000000e+00 : f32
    %214 = vector.broadcast %cst_72 : f32 to vector<2x32xf32>
    %215 = arith.addf %214, %213 : vector<2x32xf32>
    %216 = arith.divf %214, %215 : vector<2x32xf32>
    %217 = arith.mulf %208, %150 : vector<2x32xf32>
    %218 = arith.mulf %202, %210 : vector<2x32xf32>
    %219 = arith.addf %217, %218 : vector<2x32xf32>
    %220 = math.tanh %219 : vector<2x32xf32>
    %221 = arith.mulf %216, %220 : vector<2x32xf32>
    %222 = tpu.concatenate %221, %192 in 1 : vector<2x32xf32>, vector<2x32xf32> -> vector<2x64xf32>
    %cst_73 = arith.constant dense<0.000000e+00> : vector<2x128xf32>
    %223 = tpu.matmul %222, %29, %cst_73 {dimension_numbers = #tpu.dot_dimension_numbers<[1], [0], [0], [1], [0, 0, 1, 1], [], []>} : vector<2x64xf32>, vector<64x128xf32>, vector<2x128xf32> -> vector<2x128xf32>
    %224 = vector.broadcast %30 : vector<1x128xf32> to vector<2x128xf32>
    %225 = arith.addf %223, %224 : vector<2x128xf32>
    %cst_74 = arith.constant dense<0xFF800000> : vector<2xf32>
    %226 = vector.multi_reduction <maximumf>, %225, %cst_74 [1] : vector<2x128xf32> to vector<2xf32>
    %227 = vector.shape_cast %226 : vector<2xf32> to vector<2x1xf32>
    %228 = vector.broadcast %227 : vector<2x1xf32> to vector<2x128xf32>
    %229 = arith.subf %225, %228 : vector<2x128xf32>
    %230 = math.exp %229 : vector<2x128xf32>
    %cst_75 = arith.constant dense<0.000000e+00> : vector<2xf32>
    %231 = vector.multi_reduction <add>, %230, %cst_75 [1] : vector<2x128xf32> to vector<2xf32>
    %232 = vector.shape_cast %231 : vector<2xf32> to vector<2x1xf32>
    %233 = math.log %232 : vector<2x1xf32>
    %234 = arith.addf %227, %233 : vector<2x1xf32>
    %235 = vector.broadcast %234 : vector<2x1xf32> to vector<2x128xf32>
    %236 = arith.subf %225, %235 : vector<2x128xf32>
    %c0_76 = arith.constant 0 : index
    %c256 = arith.constant 256 : index
    %237 = vector.load %arg14[%c0_76, %c256] : memref<2x1024xf32, #tpu.memory_space<vmem>>, vector<2x128xf32>
    tpu.vector_store %arg14[%c0_76, %c256], %236 {strides = array<i32>} : memref<2x1024xf32, #tpu.memory_space<vmem>>, vector<2x128xf32>,
    %c3 = arith.constant 3 : index
    %c0_77 = arith.constant 0 : index
    %c0_78 = arith.constant 0 : index
    %238 = vector.load %arg0[%c3, %c0_77, %c0_78] : memref<8x2x16xf32, #tpu.memory_space<vmem>>, vector<1x2x16xf32>
    %239 = vector.shape_cast %238 : vector<1x2x16xf32> to vector<2x16xf32>
    %cst_79 = arith.constant dense<0.000000e+00> : vector<2x32xf32>
    %240 = tpu.matmul %221, %24, %cst_79 {dimension_numbers = #tpu.dot_dimension_numbers<[1], [0], [0], [1], [0, 0, 1, 1], [], []>} : vector<2x32xf32>, vector<32x32xf32>, vector<2x32xf32> -> vector<2x32xf32>
    %241 = vector.shape_cast %240 : vector<2x32xf32> to vector<2x1x32xf32>
    %242 = vector.broadcast %241 : vector<2x1x32xf32> to vector<2x16x32xf32>
    %243 = arith.addf %23, %242 : vector<2x16x32xf32>
    %244 = math.tanh %243 : vector<2x16x32xf32>
    %245 = vector.broadcast %26 : vector<1x1x32xf32> to vector<2x16x32xf32>
    %246 = arith.mulf %244, %245 : vector<2x16x32xf32>
    %cst_80 = arith.constant dense<0.000000e+00> : vector<2x16xf32>
    %247 = vector.multi_reduction <add>, %246, %cst_80 [2] : vector<2x16x32xf32> to vector<2x16xf32>
    %cst_81 = arith.constant dense<0xFF800000> : vector<2xf32>
    %248 = vector.multi_reduction <maximumf>, %247, %cst_81 [1] : vector<2x16xf32> to vector<2xf32>
    %249 = vector.shape_cast %248 : vector<2xf32> to vector<2x1xf32>
    %250 = vector.broadcast %249 : vector<2x1xf32> to vector<2x16xf32>
    %251 = arith.subf %247, %250 : vector<2x16xf32>
    %252 = math.exp %251 : vector<2x16xf32>
    %cst_82 = arith.constant dense<0.000000e+00> : vector<2xf32>
    %253 = vector.multi_reduction <add>, %252, %cst_82 [1] : vector<2x16xf32> to vector<2xf32>
    %254 = vector.shape_cast %253 : vector<2xf32> to vector<2x1xf32>
    %255 = tpu.reciprocal %254 {approx = true} : vector<2x1xf32> -> vector<2x1xf32>
    %256 = vector.broadcast %255 : vector<2x1xf32> to vector<2x16xf32>
    %257 = arith.mulf %252, %256 : vector<2x16xf32>
    %258 = vector.shape_cast %257 : vector<2x16xf32> to vector<2x16x1xf32>
    %259 = vector.broadcast %258 : vector<2x16x1xf32> to vector<2x16x32xf32>
    %260 = arith.mulf %259, %0 : vector<2x16x32xf32>
    %cst_83 = arith.constant dense<0.000000e+00> : vector<2x32xf32>
    %261 = vector.multi_reduction <add>, %260, %cst_83 [1] : vector<2x16x32xf32> to vector<2x32xf32>
    %262 = tpu.concatenate %239, %261, %221 in 1 : vector<2x16xf32>, vector<2x32xf32>, vector<2x32xf32> -> vector<2x80xf32>
    %cst_84 = arith.constant dense<0.000000e+00> : vector<2x128xf32>
    %263 = tpu.matmul %262, %27, %cst_84 {dimension_numbers = #tpu.dot_dimension_numbers<[1], [0], [0], [1], [0, 0, 1, 1], [], []>} : vector<2x80xf32>, vector<80x128xf32>, vector<2x128xf32> -> vector<2x128xf32>
    %264 = vector.broadcast %28 : vector<1x128xf32> to vector<2x128xf32>
    %265 = arith.addf %263, %264 : vector<2x128xf32>
    %266 = vector.extract_strided_slice %265 {offsets = [0, 0], sizes = [2, 32], strides = [1, 1]} : vector<2x128xf32> to vector<2x32xf32>
    %267 = arith.negf %266 : vector<2x32xf32>
    %268 = math.exp %267 : vector<2x32xf32>
    %cst_85 = arith.constant 1.000000e+00 : f32
    %269 = vector.broadcast %cst_85 : f32 to vector<2x32xf32>
    %270 = arith.addf %269, %268 : vector<2x32xf32>
    %271 = arith.divf %269, %270 : vector<2x32xf32>
    %272 = vector.extract_strided_slice %265 {offsets = [0, 32], sizes = [2, 32], strides = [1, 1]} : vector<2x128xf32> to vector<2x32xf32>
    %273 = arith.negf %272 : vector<2x32xf32>
    %274 = math.exp %273 : vector<2x32xf32>
    %cst_86 = arith.constant 1.000000e+00 : f32
    %275 = vector.broadcast %cst_86 : f32 to vector<2x32xf32>
    %276 = arith.addf %275, %274 : vector<2x32xf32>
    %277 = arith.divf %275, %276 : vector<2x32xf32>
    %278 = vector.extract_strided_slice %265 {offsets = [0, 64], sizes = [2, 32], strides = [1, 1]} : vector<2x128xf32> to vector<2x32xf32>
    %279 = math.tanh %278 : vector<2x32xf32>
    %280 = vector.extract_strided_slice %265 {offsets = [0, 96], sizes = [2, 32], strides = [1, 1]} : vector<2x128xf32> to vector<2x32xf32>
    %281 = arith.negf %280 : vector<2x32xf32>
    %282 = math.exp %281 : vector<2x32xf32>
    %cst_87 = arith.constant 1.000000e+00 : f32
    %283 = vector.broadcast %cst_87 : f32 to vector<2x32xf32>
    %284 = arith.addf %283, %282 : vector<2x32xf32>
    %285 = arith.divf %283, %284 : vector<2x32xf32>
    %286 = arith.mulf %277, %219 : vector<2x32xf32>
    %287 = arith.mulf %271, %279 : vector<2x32xf32>
    %288 = arith.addf %286, %287 : vector<2x32xf32>
    %289 = math.tanh %288 : vector<2x32xf32>
    %290 = arith.mulf %285, %289 : vector<2x32xf32>
    %291 = tpu.concatenate %290, %261 in 1 : vector<2x32xf32>, vector<2x32xf32> -> vector<2x64xf32>
    %cst_88 = arith.constant dense<0.000000e+00> : vector<2x128xf32>
    %292 = tpu.matmul %291, %29, %cst_88 {dimension_numbers = #tpu.dot_dimension_numbers<[1], [0], [0], [1], [0, 0, 1, 1], [], []>} : vector<2x64xf32>, vector<64x128xf32>, vector<2x128xf32> -> vector<2x128xf32>
    %293 = vector.broadcast %30 : vector<1x128xf32> to vector<2x128xf32>
    %294 = arith.addf %292, %293 : vector<2x128xf32>
    %cst_89 = arith.constant dense<0xFF800000> : vector<2xf32>
    %295 = vector.multi_reduction <maximumf>, %294, %cst_89 [1] : vector<2x128xf32> to vector<2xf32>
    %296 = vector.shape_cast %295 : vector<2xf32> to vector<2x1xf32>
    %297 = vector.broadcast %296 : vector<2x1xf32> to vector<2x128xf32>
    %298 = arith.subf %294, %297 : vector<2x128xf32>
    %299 = math.exp %298 : vector<2x128xf32>
    %cst_90 = arith.constant dense<0.000000e+00> : vector<2xf32>
    %300 = vector.multi_reduction <add>, %299, %cst_90 [1] : vector<2x128xf32> to vector<2xf32>
    %301 = vector.shape_cast %300 : vector<2xf32> to vector<2x1xf32>
    %302 = math.log %301 : vector<2x1xf32>
    %303 = arith.addf %296, %302 : vector<2x1xf32>
    %304 = vector.broadcast %303 : vector<2x1xf32> to vector<2x128xf32>
    %305 = arith.subf %294, %304 : vector<2x128xf32>
    %c0_91 = arith.constant 0 : index
    %c384 = arith.constant 384 : index
    %306 = vector.load %arg14[%c0_91, %c384] : memref<2x1024xf32, #tpu.memory_space<vmem>>, vector<2x128xf32>
    tpu.vector_store %arg14[%c0_91, %c384], %305 {strides = array<i32>} : memref<2x1024xf32, #tpu.memory_space<vmem>>, vector<2x128xf32>,
    %c4 = arith.constant 4 : index
    %c0_92 = arith.constant 0 : index
    %c0_93 = arith.constant 0 : index
    %307 = vector.load %arg0[%c4, %c0_92, %c0_93] : memref<8x2x16xf32, #tpu.memory_space<vmem>>, vector<1x2x16xf32>
    %308 = vector.shape_cast %307 : vector<1x2x16xf32> to vector<2x16xf32>
    %cst_94 = arith.constant dense<0.000000e+00> : vector<2x32xf32>
    %309 = tpu.matmul %290, %24, %cst_94 {dimension_numbers = #tpu.dot_dimension_numbers<[1], [0], [0], [1], [0, 0, 1, 1], [], []>} : vector<2x32xf32>, vector<32x32xf32>, vector<2x32xf32> -> vector<2x32xf32>
    %310 = vector.shape_cast %309 : vector<2x32xf32> to vector<2x1x32xf32>
    %311 = vector.broadcast %310 : vector<2x1x32xf32> to vector<2x16x32xf32>
    %312 = arith.addf %23, %311 : vector<2x16x32xf32>
    %313 = math.tanh %312 : vector<2x16x32xf32>
    %314 = vector.broadcast %26 : vector<1x1x32xf32> to vector<2x16x32xf32>
    %315 = arith.mulf %313, %314 : vector<2x16x32xf32>
    %cst_95 = arith.constant dense<0.000000e+00> : vector<2x16xf32>
    %316 = vector.multi_reduction <add>, %315, %cst_95 [2] : vector<2x16x32xf32> to vector<2x16xf32>
    %cst_96 = arith.constant dense<0xFF800000> : vector<2xf32>
    %317 = vector.multi_reduction <maximumf>, %316, %cst_96 [1] : vector<2x16xf32> to vector<2xf32>
    %318 = vector.shape_cast %317 : vector<2xf32> to vector<2x1xf32>
    %319 = vector.broadcast %318 : vector<2x1xf32> to vector<2x16xf32>
    %320 = arith.subf %316, %319 : vector<2x16xf32>
    %321 = math.exp %320 : vector<2x16xf32>
    %cst_97 = arith.constant dense<0.000000e+00> : vector<2xf32>
    %322 = vector.multi_reduction <add>, %321, %cst_97 [1] : vector<2x16xf32> to vector<2xf32>
    %323 = vector.shape_cast %322 : vector<2xf32> to vector<2x1xf32>
    %324 = tpu.reciprocal %323 {approx = true} : vector<2x1xf32> -> vector<2x1xf32>
    %325 = vector.broadcast %324 : vector<2x1xf32> to vector<2x16xf32>
    %326 = arith.mulf %321, %325 : vector<2x16xf32>
    %327 = vector.shape_cast %326 : vector<2x16xf32> to vector<2x16x1xf32>
    %328 = vector.broadcast %327 : vector<2x16x1xf32> to vector<2x16x32xf32>
    %329 = arith.mulf %328, %0 : vector<2x16x32xf32>
    %cst_98 = arith.constant dense<0.000000e+00> : vector<2x32xf32>
    %330 = vector.multi_reduction <add>, %329, %cst_98 [1] : vector<2x16x32xf32> to vector<2x32xf32>
    %331 = tpu.concatenate %308, %330, %290 in 1 : vector<2x16xf32>, vector<2x32xf32>, vector<2x32xf32> -> vector<2x80xf32>
    %cst_99 = arith.constant dense<0.000000e+00> : vector<2x128xf32>
    %332 = tpu.matmul %331, %27, %cst_99 {dimension_numbers = #tpu.dot_dimension_numbers<[1], [0], [0], [1], [0, 0, 1, 1], [], []>} : vector<2x80xf32>, vector<80x128xf32>, vector<2x128xf32> -> vector<2x128xf32>
    %333 = vector.broadcast %28 : vector<1x128xf32> to vector<2x128xf32>
    %334 = arith.addf %332, %333 : vector<2x128xf32>
    %335 = vector.extract_strided_slice %334 {offsets = [0, 0], sizes = [2, 32], strides = [1, 1]} : vector<2x128xf32> to vector<2x32xf32>
    %336 = arith.negf %335 : vector<2x32xf32>
    %337 = math.exp %336 : vector<2x32xf32>
    %cst_100 = arith.constant 1.000000e+00 : f32
    %338 = vector.broadcast %cst_100 : f32 to vector<2x32xf32>
    %339 = arith.addf %338, %337 : vector<2x32xf32>
    %340 = arith.divf %338, %339 : vector<2x32xf32>
    %341 = vector.extract_strided_slice %334 {offsets = [0, 32], sizes = [2, 32], strides = [1, 1]} : vector<2x128xf32> to vector<2x32xf32>
    %342 = arith.negf %341 : vector<2x32xf32>
    %343 = math.exp %342 : vector<2x32xf32>
    %cst_101 = arith.constant 1.000000e+00 : f32
    %344 = vector.broadcast %cst_101 : f32 to vector<2x32xf32>
    %345 = arith.addf %344, %343 : vector<2x32xf32>
    %346 = arith.divf %344, %345 : vector<2x32xf32>
    %347 = vector.extract_strided_slice %334 {offsets = [0, 64], sizes = [2, 32], strides = [1, 1]} : vector<2x128xf32> to vector<2x32xf32>
    %348 = math.tanh %347 : vector<2x32xf32>
    %349 = vector.extract_strided_slice %334 {offsets = [0, 96], sizes = [2, 32], strides = [1, 1]} : vector<2x128xf32> to vector<2x32xf32>
    %350 = arith.negf %349 : vector<2x32xf32>
    %351 = math.exp %350 : vector<2x32xf32>
    %cst_102 = arith.constant 1.000000e+00 : f32
    %352 = vector.broadcast %cst_102 : f32 to vector<2x32xf32>
    %353 = arith.addf %352, %351 : vector<2x32xf32>
    %354 = arith.divf %352, %353 : vector<2x32xf32>
    %355 = arith.mulf %346, %288 : vector<2x32xf32>
    %356 = arith.mulf %340, %348 : vector<2x32xf32>
    %357 = arith.addf %355, %356 : vector<2x32xf32>
    %358 = math.tanh %357 : vector<2x32xf32>
    %359 = arith.mulf %354, %358 : vector<2x32xf32>
    %360 = tpu.concatenate %359, %330 in 1 : vector<2x32xf32>, vector<2x32xf32> -> vector<2x64xf32>
    %cst_103 = arith.constant dense<0.000000e+00> : vector<2x128xf32>
    %361 = tpu.matmul %360, %29, %cst_103 {dimension_numbers = #tpu.dot_dimension_numbers<[1], [0], [0], [1], [0, 0, 1, 1], [], []>} : vector<2x64xf32>, vector<64x128xf32>, vector<2x128xf32> -> vector<2x128xf32>
    %362 = vector.broadcast %30 : vector<1x128xf32> to vector<2x128xf32>
    %363 = arith.addf %361, %362 : vector<2x128xf32>
    %cst_104 = arith.constant dense<0xFF800000> : vector<2xf32>
    %364 = vector.multi_reduction <maximumf>, %363, %cst_104 [1] : vector<2x128xf32> to vector<2xf32>
    %365 = vector.shape_cast %364 : vector<2xf32> to vector<2x1xf32>
    %366 = vector.broadcast %365 : vector<2x1xf32> to vector<2x128xf32>
    %367 = arith.subf %363, %366 : vector<2x128xf32>
    %368 = math.exp %367 : vector<2x128xf32>
    %cst_105 = arith.constant dense<0.000000e+00> : vector<2xf32>
    %369 = vector.multi_reduction <add>, %368, %cst_105 [1] : vector<2x128xf32> to vector<2xf32>
    %370 = vector.shape_cast %369 : vector<2xf32> to vector<2x1xf32>
    %371 = math.log %370 : vector<2x1xf32>
    %372 = arith.addf %365, %371 : vector<2x1xf32>
    %373 = vector.broadcast %372 : vector<2x1xf32> to vector<2x128xf32>
    %374 = arith.subf %363, %373 : vector<2x128xf32>
    %c0_106 = arith.constant 0 : index
    %c512 = arith.constant 512 : index
    %375 = vector.load %arg14[%c0_106, %c512] : memref<2x1024xf32, #tpu.memory_space<vmem>>, vector<2x128xf32>
    tpu.vector_store %arg14[%c0_106, %c512], %374 {strides = array<i32>} : memref<2x1024xf32, #tpu.memory_space<vmem>>, vector<2x128xf32>,
    %c5 = arith.constant 5 : index
    %c0_107 = arith.constant 0 : index
    %c0_108 = arith.constant 0 : index
    %376 = vector.load %arg0[%c5, %c0_107, %c0_108] : memref<8x2x16xf32, #tpu.memory_space<vmem>>, vector<1x2x16xf32>
    %377 = vector.shape_cast %376 : vector<1x2x16xf32> to vector<2x16xf32>
    %cst_109 = arith.constant dense<0.000000e+00> : vector<2x32xf32>
    %378 = tpu.matmul %359, %24, %cst_109 {dimension_numbers = #tpu.dot_dimension_numbers<[1], [0], [0], [1], [0, 0, 1, 1], [], []>} : vector<2x32xf32>, vector<32x32xf32>, vector<2x32xf32> -> vector<2x32xf32>
    %379 = vector.shape_cast %378 : vector<2x32xf32> to vector<2x1x32xf32>
    %380 = vector.broadcast %379 : vector<2x1x32xf32> to vector<2x16x32xf32>
    %381 = arith.addf %23, %380 : vector<2x16x32xf32>
    %382 = math.tanh %381 : vector<2x16x32xf32>
    %383 = vector.broadcast %26 : vector<1x1x32xf32> to vector<2x16x32xf32>
    %384 = arith.mulf %382, %383 : vector<2x16x32xf32>
    %cst_110 = arith.constant dense<0.000000e+00> : vector<2x16xf32>
    %385 = vector.multi_reduction <add>, %384, %cst_110 [2] : vector<2x16x32xf32> to vector<2x16xf32>
    %cst_111 = arith.constant dense<0xFF800000> : vector<2xf32>
    %386 = vector.multi_reduction <maximumf>, %385, %cst_111 [1] : vector<2x16xf32> to vector<2xf32>
    %387 = vector.shape_cast %386 : vector<2xf32> to vector<2x1xf32>
    %388 = vector.broadcast %387 : vector<2x1xf32> to vector<2x16xf32>
    %389 = arith.subf %385, %388 : vector<2x16xf32>
    %390 = math.exp %389 : vector<2x16xf32>
    %cst_112 = arith.constant dense<0.000000e+00> : vector<2xf32>
    %391 = vector.multi_reduction <add>, %390, %cst_112 [1] : vector<2x16xf32> to vector<2xf32>
    %392 = vector.shape_cast %391 : vector<2xf32> to vector<2x1xf32>
    %393 = tpu.reciprocal %392 {approx = true} : vector<2x1xf32> -> vector<2x1xf32>
    %394 = vector.broadcast %393 : vector<2x1xf32> to vector<2x16xf32>
    %395 = arith.mulf %390, %394 : vector<2x16xf32>
    %396 = vector.shape_cast %395 : vector<2x16xf32> to vector<2x16x1xf32>
    %397 = vector.broadcast %396 : vector<2x16x1xf32> to vector<2x16x32xf32>
    %398 = arith.mulf %397, %0 : vector<2x16x32xf32>
    %cst_113 = arith.constant dense<0.000000e+00> : vector<2x32xf32>
    %399 = vector.multi_reduction <add>, %398, %cst_113 [1] : vector<2x16x32xf32> to vector<2x32xf32>
    %400 = tpu.concatenate %377, %399, %359 in 1 : vector<2x16xf32>, vector<2x32xf32>, vector<2x32xf32> -> vector<2x80xf32>
    %cst_114 = arith.constant dense<0.000000e+00> : vector<2x128xf32>
    %401 = tpu.matmul %400, %27, %cst_114 {dimension_numbers = #tpu.dot_dimension_numbers<[1], [0], [0], [1], [0, 0, 1, 1], [], []>} : vector<2x80xf32>, vector<80x128xf32>, vector<2x128xf32> -> vector<2x128xf32>
    %402 = vector.broadcast %28 : vector<1x128xf32> to vector<2x128xf32>
    %403 = arith.addf %401, %402 : vector<2x128xf32>
    %404 = vector.extract_strided_slice %403 {offsets = [0, 0], sizes = [2, 32], strides = [1, 1]} : vector<2x128xf32> to vector<2x32xf32>
    %405 = arith.negf %404 : vector<2x32xf32>
    %406 = math.exp %405 : vector<2x32xf32>
    %cst_115 = arith.constant 1.000000e+00 : f32
    %407 = vector.broadcast %cst_115 : f32 to vector<2x32xf32>
    %408 = arith.addf %407, %406 : vector<2x32xf32>
    %409 = arith.divf %407, %408 : vector<2x32xf32>
    %410 = vector.extract_strided_slice %403 {offsets = [0, 32], sizes = [2, 32], strides = [1, 1]} : vector<2x128xf32> to vector<2x32xf32>
    %411 = arith.negf %410 : vector<2x32xf32>
    %412 = math.exp %411 : vector<2x32xf32>
    %cst_116 = arith.constant 1.000000e+00 : f32
    %413 = vector.broadcast %cst_116 : f32 to vector<2x32xf32>
    %414 = arith.addf %413, %412 : vector<2x32xf32>
    %415 = arith.divf %413, %414 : vector<2x32xf32>
    %416 = vector.extract_strided_slice %403 {offsets = [0, 64], sizes = [2, 32], strides = [1, 1]} : vector<2x128xf32> to vector<2x32xf32>
    %417 = math.tanh %416 : vector<2x32xf32>
    %418 = vector.extract_strided_slice %403 {offsets = [0, 96], sizes = [2, 32], strides = [1, 1]} : vector<2x128xf32> to vector<2x32xf32>
    %419 = arith.negf %418 : vector<2x32xf32>
    %420 = math.exp %419 : vector<2x32xf32>
    %cst_117 = arith.constant 1.000000e+00 : f32
    %421 = vector.broadcast %cst_117 : f32 to vector<2x32xf32>
    %422 = arith.addf %421, %420 : vector<2x32xf32>
    %423 = arith.divf %421, %422 : vector<2x32xf32>
    %424 = arith.mulf %415, %357 : vector<2x32xf32>
    %425 = arith.mulf %409, %417 : vector<2x32xf32>
    %426 = arith.addf %424, %425 : vector<2x32xf32>
    %427 = math.tanh %426 : vector<2x32xf32>
    %428 = arith.mulf %423, %427 : vector<2x32xf32>
    %429 = tpu.concatenate %428, %399 in 1 : vector<2x32xf32>, vector<2x32xf32> -> vector<2x64xf32>
    %cst_118 = arith.constant dense<0.000000e+00> : vector<2x128xf32>
    %430 = tpu.matmul %429, %29, %cst_118 {dimension_numbers = #tpu.dot_dimension_numbers<[1], [0], [0], [1], [0, 0, 1, 1], [], []>} : vector<2x64xf32>, vector<64x128xf32>, vector<2x128xf32> -> vector<2x128xf32>
    %431 = vector.broadcast %30 : vector<1x128xf32> to vector<2x128xf32>
    %432 = arith.addf %430, %431 : vector<2x128xf32>
    %cst_119 = arith.constant dense<0xFF800000> : vector<2xf32>
    %433 = vector.multi_reduction <maximumf>, %432, %cst_119 [1] : vector<2x128xf32> to vector<2xf32>
    %434 = vector.shape_cast %433 : vector<2xf32> to vector<2x1xf32>
    %435 = vector.broadcast %434 : vector<2x1xf32> to vector<2x128xf32>
    %436 = arith.subf %432, %435 : vector<2x128xf32>
    %437 = math.exp %436 : vector<2x128xf32>
    %cst_120 = arith.constant dense<0.000000e+00> : vector<2xf32>
    %438 = vector.multi_reduction <add>, %437, %cst_120 [1] : vector<2x128xf32> to vector<2xf32>
    %439 = vector.shape_cast %438 : vector<2xf32> to vector<2x1xf32>
    %440 = math.log %439 : vector<2x1xf32>
    %441 = arith.addf %434, %440 : vector<2x1xf32>
    %442 = vector.broadcast %441 : vector<2x1xf32> to vector<2x128xf32>
    %443 = arith.subf %432, %442 : vector<2x128xf32>
    %c0_121 = arith.constant 0 : index
    %c640 = arith.constant 640 : index
    %444 = vector.load %arg14[%c0_121, %c640] : memref<2x1024xf32, #tpu.memory_space<vmem>>, vector<2x128xf32>
    tpu.vector_store %arg14[%c0_121, %c640], %443 {strides = array<i32>} : memref<2x1024xf32, #tpu.memory_space<vmem>>, vector<2x128xf32>,
    %c6 = arith.constant 6 : index
    %c0_122 = arith.constant 0 : index
    %c0_123 = arith.constant 0 : index
    %445 = vector.load %arg0[%c6, %c0_122, %c0_123] : memref<8x2x16xf32, #tpu.memory_space<vmem>>, vector<1x2x16xf32>
    %446 = vector.shape_cast %445 : vector<1x2x16xf32> to vector<2x16xf32>
    %cst_124 = arith.constant dense<0.000000e+00> : vector<2x32xf32>
    %447 = tpu.matmul %428, %24, %cst_124 {dimension_numbers = #tpu.dot_dimension_numbers<[1], [0], [0], [1], [0, 0, 1, 1], [], []>} : vector<2x32xf32>, vector<32x32xf32>, vector<2x32xf32> -> vector<2x32xf32>
    %448 = vector.shape_cast %447 : vector<2x32xf32> to vector<2x1x32xf32>
    %449 = vector.broadcast %448 : vector<2x1x32xf32> to vector<2x16x32xf32>
    %450 = arith.addf %23, %449 : vector<2x16x32xf32>
    %451 = math.tanh %450 : vector<2x16x32xf32>
    %452 = vector.broadcast %26 : vector<1x1x32xf32> to vector<2x16x32xf32>
    %453 = arith.mulf %451, %452 : vector<2x16x32xf32>
    %cst_125 = arith.constant dense<0.000000e+00> : vector<2x16xf32>
    %454 = vector.multi_reduction <add>, %453, %cst_125 [2] : vector<2x16x32xf32> to vector<2x16xf32>
    %cst_126 = arith.constant dense<0xFF800000> : vector<2xf32>
    %455 = vector.multi_reduction <maximumf>, %454, %cst_126 [1] : vector<2x16xf32> to vector<2xf32>
    %456 = vector.shape_cast %455 : vector<2xf32> to vector<2x1xf32>
    %457 = vector.broadcast %456 : vector<2x1xf32> to vector<2x16xf32>
    %458 = arith.subf %454, %457 : vector<2x16xf32>
    %459 = math.exp %458 : vector<2x16xf32>
    %cst_127 = arith.constant dense<0.000000e+00> : vector<2xf32>
    %460 = vector.multi_reduction <add>, %459, %cst_127 [1] : vector<2x16xf32> to vector<2xf32>
    %461 = vector.shape_cast %460 : vector<2xf32> to vector<2x1xf32>
    %462 = tpu.reciprocal %461 {approx = true} : vector<2x1xf32> -> vector<2x1xf32>
    %463 = vector.broadcast %462 : vector<2x1xf32> to vector<2x16xf32>
    %464 = arith.mulf %459, %463 : vector<2x16xf32>
    %465 = vector.shape_cast %464 : vector<2x16xf32> to vector<2x16x1xf32>
    %466 = vector.broadcast %465 : vector<2x16x1xf32> to vector<2x16x32xf32>
    %467 = arith.mulf %466, %0 : vector<2x16x32xf32>
    %cst_128 = arith.constant dense<0.000000e+00> : vector<2x32xf32>
    %468 = vector.multi_reduction <add>, %467, %cst_128 [1] : vector<2x16x32xf32> to vector<2x32xf32>
    %469 = tpu.concatenate %446, %468, %428 in 1 : vector<2x16xf32>, vector<2x32xf32>, vector<2x32xf32> -> vector<2x80xf32>
    %cst_129 = arith.constant dense<0.000000e+00> : vector<2x128xf32>
    %470 = tpu.matmul %469, %27, %cst_129 {dimension_numbers = #tpu.dot_dimension_numbers<[1], [0], [0], [1], [0, 0, 1, 1], [], []>} : vector<2x80xf32>, vector<80x128xf32>, vector<2x128xf32> -> vector<2x128xf32>
    %471 = vector.broadcast %28 : vector<1x128xf32> to vector<2x128xf32>
    %472 = arith.addf %470, %471 : vector<2x128xf32>
    %473 = vector.extract_strided_slice %472 {offsets = [0, 0], sizes = [2, 32], strides = [1, 1]} : vector<2x128xf32> to vector<2x32xf32>
    %474 = arith.negf %473 : vector<2x32xf32>
    %475 = math.exp %474 : vector<2x32xf32>
    %cst_130 = arith.constant 1.000000e+00 : f32
    %476 = vector.broadcast %cst_130 : f32 to vector<2x32xf32>
    %477 = arith.addf %476, %475 : vector<2x32xf32>
    %478 = arith.divf %476, %477 : vector<2x32xf32>
    %479 = vector.extract_strided_slice %472 {offsets = [0, 32], sizes = [2, 32], strides = [1, 1]} : vector<2x128xf32> to vector<2x32xf32>
    %480 = arith.negf %479 : vector<2x32xf32>
    %481 = math.exp %480 : vector<2x32xf32>
    %cst_131 = arith.constant 1.000000e+00 : f32
    %482 = vector.broadcast %cst_131 : f32 to vector<2x32xf32>
    %483 = arith.addf %482, %481 : vector<2x32xf32>
    %484 = arith.divf %482, %483 : vector<2x32xf32>
    %485 = vector.extract_strided_slice %472 {offsets = [0, 64], sizes = [2, 32], strides = [1, 1]} : vector<2x128xf32> to vector<2x32xf32>
    %486 = math.tanh %485 : vector<2x32xf32>
    %487 = vector.extract_strided_slice %472 {offsets = [0, 96], sizes = [2, 32], strides = [1, 1]} : vector<2x128xf32> to vector<2x32xf32>
    %488 = arith.negf %487 : vector<2x32xf32>
    %489 = math.exp %488 : vector<2x32xf32>
    %cst_132 = arith.constant 1.000000e+00 : f32
    %490 = vector.broadcast %cst_132 : f32 to vector<2x32xf32>
    %491 = arith.addf %490, %489 : vector<2x32xf32>
    %492 = arith.divf %490, %491 : vector<2x32xf32>
    %493 = arith.mulf %484, %426 : vector<2x32xf32>
    %494 = arith.mulf %478, %486 : vector<2x32xf32>
    %495 = arith.addf %493, %494 : vector<2x32xf32>
    %496 = math.tanh %495 : vector<2x32xf32>
    %497 = arith.mulf %492, %496 : vector<2x32xf32>
    %498 = tpu.concatenate %497, %468 in 1 : vector<2x32xf32>, vector<2x32xf32> -> vector<2x64xf32>
    %cst_133 = arith.constant dense<0.000000e+00> : vector<2x128xf32>
    %499 = tpu.matmul %498, %29, %cst_133 {dimension_numbers = #tpu.dot_dimension_numbers<[1], [0], [0], [1], [0, 0, 1, 1], [], []>} : vector<2x64xf32>, vector<64x128xf32>, vector<2x128xf32> -> vector<2x128xf32>
    %500 = vector.broadcast %30 : vector<1x128xf32> to vector<2x128xf32>
    %501 = arith.addf %499, %500 : vector<2x128xf32>
    %cst_134 = arith.constant dense<0xFF800000> : vector<2xf32>
    %502 = vector.multi_reduction <maximumf>, %501, %cst_134 [1] : vector<2x128xf32> to vector<2xf32>
    %503 = vector.shape_cast %502 : vector<2xf32> to vector<2x1xf32>
    %504 = vector.broadcast %503 : vector<2x1xf32> to vector<2x128xf32>
    %505 = arith.subf %501, %504 : vector<2x128xf32>
    %506 = math.exp %505 : vector<2x128xf32>
    %cst_135 = arith.constant dense<0.000000e+00> : vector<2xf32>
    %507 = vector.multi_reduction <add>, %506, %cst_135 [1] : vector<2x128xf32> to vector<2xf32>
    %508 = vector.shape_cast %507 : vector<2xf32> to vector<2x1xf32>
    %509 = math.log %508 : vector<2x1xf32>
    %510 = arith.addf %503, %509 : vector<2x1xf32>
    %511 = vector.broadcast %510 : vector<2x1xf32> to vector<2x128xf32>
    %512 = arith.subf %501, %511 : vector<2x128xf32>
    %c0_136 = arith.constant 0 : index
    %c768 = arith.constant 768 : index
    %513 = vector.load %arg14[%c0_136, %c768] : memref<2x1024xf32, #tpu.memory_space<vmem>>, vector<2x128xf32>
    tpu.vector_store %arg14[%c0_136, %c768], %512 {strides = array<i32>} : memref<2x1024xf32, #tpu.memory_space<vmem>>, vector<2x128xf32>,
    %c7 = arith.constant 7 : index
    %c0_137 = arith.constant 0 : index
    %c0_138 = arith.constant 0 : index
    %514 = vector.load %arg0[%c7, %c0_137, %c0_138] : memref<8x2x16xf32, #tpu.memory_space<vmem>>, vector<1x2x16xf32>
    %515 = vector.shape_cast %514 : vector<1x2x16xf32> to vector<2x16xf32>
    %cst_139 = arith.constant dense<0.000000e+00> : vector<2x32xf32>
    %516 = tpu.matmul %497, %24, %cst_139 {dimension_numbers = #tpu.dot_dimension_numbers<[1], [0], [0], [1], [0, 0, 1, 1], [], []>} : vector<2x32xf32>, vector<32x32xf32>, vector<2x32xf32> -> vector<2x32xf32>
    %517 = vector.shape_cast %516 : vector<2x32xf32> to vector<2x1x32xf32>
    %518 = vector.broadcast %517 : vector<2x1x32xf32> to vector<2x16x32xf32>
    %519 = arith.addf %23, %518 : vector<2x16x32xf32>
    %520 = math.tanh %519 : vector<2x16x32xf32>
    %521 = vector.broadcast %26 : vector<1x1x32xf32> to vector<2x16x32xf32>
    %522 = arith.mulf %520, %521 : vector<2x16x32xf32>
    %cst_140 = arith.constant dense<0.000000e+00> : vector<2x16xf32>
    %523 = vector.multi_reduction <add>, %522, %cst_140 [2] : vector<2x16x32xf32> to vector<2x16xf32>
    %cst_141 = arith.constant dense<0xFF800000> : vector<2xf32>
    %524 = vector.multi_reduction <maximumf>, %523, %cst_141 [1] : vector<2x16xf32> to vector<2xf32>
    %525 = vector.shape_cast %524 : vector<2xf32> to vector<2x1xf32>
    %526 = vector.broadcast %525 : vector<2x1xf32> to vector<2x16xf32>
    %527 = arith.subf %523, %526 : vector<2x16xf32>
    %528 = math.exp %527 : vector<2x16xf32>
    %cst_142 = arith.constant dense<0.000000e+00> : vector<2xf32>
    %529 = vector.multi_reduction <add>, %528, %cst_142 [1] : vector<2x16xf32> to vector<2xf32>
    %530 = vector.shape_cast %529 : vector<2xf32> to vector<2x1xf32>
    %531 = tpu.reciprocal %530 {approx = true} : vector<2x1xf32> -> vector<2x1xf32>
    %532 = vector.broadcast %531 : vector<2x1xf32> to vector<2x16xf32>
    %533 = arith.mulf %528, %532 : vector<2x16xf32>
    %534 = vector.shape_cast %533 : vector<2x16xf32> to vector<2x16x1xf32>
    %535 = vector.broadcast %534 : vector<2x16x1xf32> to vector<2x16x32xf32>
    %536 = arith.mulf %535, %0 : vector<2x16x32xf32>
    %cst_143 = arith.constant dense<0.000000e+00> : vector<2x32xf32>
    %537 = vector.multi_reduction <add>, %536, %cst_143 [1] : vector<2x16x32xf32> to vector<2x32xf32>
    %538 = tpu.concatenate %515, %537, %497 in 1 : vector<2x16xf32>, vector<2x32xf32>, vector<2x32xf32> -> vector<2x80xf32>
    %cst_144 = arith.constant dense<0.000000e+00> : vector<2x128xf32>
    %539 = tpu.matmul %538, %27, %cst_144 {dimension_numbers = #tpu.dot_dimension_numbers<[1], [0], [0], [1], [0, 0, 1, 1], [], []>} : vector<2x80xf32>, vector<80x128xf32>, vector<2x128xf32> -> vector<2x128xf32>
    %540 = vector.broadcast %28 : vector<1x128xf32> to vector<2x128xf32>
    %541 = arith.addf %539, %540 : vector<2x128xf32>
    %542 = vector.extract_strided_slice %541 {offsets = [0, 0], sizes = [2, 32], strides = [1, 1]} : vector<2x128xf32> to vector<2x32xf32>
    %543 = arith.negf %542 : vector<2x32xf32>
    %544 = math.exp %543 : vector<2x32xf32>
    %cst_145 = arith.constant 1.000000e+00 : f32
    %545 = vector.broadcast %cst_145 : f32 to vector<2x32xf32>
    %546 = arith.addf %545, %544 : vector<2x32xf32>
    %547 = arith.divf %545, %546 : vector<2x32xf32>
    %548 = vector.extract_strided_slice %541 {offsets = [0, 32], sizes = [2, 32], strides = [1, 1]} : vector<2x128xf32> to vector<2x32xf32>
    %549 = arith.negf %548 : vector<2x32xf32>
    %550 = math.exp %549 : vector<2x32xf32>
    %cst_146 = arith.constant 1.000000e+00 : f32
    %551 = vector.broadcast %cst_146 : f32 to vector<2x32xf32>
    %552 = arith.addf %551, %550 : vector<2x32xf32>
    %553 = arith.divf %551, %552 : vector<2x32xf32>
    %554 = vector.extract_strided_slice %541 {offsets = [0, 64], sizes = [2, 32], strides = [1, 1]} : vector<2x128xf32> to vector<2x32xf32>
    %555 = math.tanh %554 : vector<2x32xf32>
    %556 = vector.extract_strided_slice %541 {offsets = [0, 96], sizes = [2, 32], strides = [1, 1]} : vector<2x128xf32> to vector<2x32xf32>
    %557 = arith.negf %556 : vector<2x32xf32>
    %558 = math.exp %557 : vector<2x32xf32>
    %cst_147 = arith.constant 1.000000e+00 : f32
    %559 = vector.broadcast %cst_147 : f32 to vector<2x32xf32>
    %560 = arith.addf %559, %558 : vector<2x32xf32>
    %561 = arith.divf %559, %560 : vector<2x32xf32>
    %562 = arith.mulf %553, %495 : vector<2x32xf32>
    %563 = arith.mulf %547, %555 : vector<2x32xf32>
    %564 = arith.addf %562, %563 : vector<2x32xf32>
    %565 = math.tanh %564 : vector<2x32xf32>
    %566 = arith.mulf %561, %565 : vector<2x32xf32>
    %567 = tpu.concatenate %566, %537 in 1 : vector<2x32xf32>, vector<2x32xf32> -> vector<2x64xf32>
    %cst_148 = arith.constant dense<0.000000e+00> : vector<2x128xf32>
    %568 = tpu.matmul %567, %29, %cst_148 {dimension_numbers = #tpu.dot_dimension_numbers<[1], [0], [0], [1], [0, 0, 1, 1], [], []>} : vector<2x64xf32>, vector<64x128xf32>, vector<2x128xf32> -> vector<2x128xf32>
    %569 = vector.broadcast %30 : vector<1x128xf32> to vector<2x128xf32>
    %570 = arith.addf %568, %569 : vector<2x128xf32>
    %cst_149 = arith.constant dense<0xFF800000> : vector<2xf32>
    %571 = vector.multi_reduction <maximumf>, %570, %cst_149 [1] : vector<2x128xf32> to vector<2xf32>
    %572 = vector.shape_cast %571 : vector<2xf32> to vector<2x1xf32>
    %573 = vector.broadcast %572 : vector<2x1xf32> to vector<2x128xf32>
    %574 = arith.subf %570, %573 : vector<2x128xf32>
    %575 = math.exp %574 : vector<2x128xf32>
    %cst_150 = arith.constant dense<0.000000e+00> : vector<2xf32>
    %576 = vector.multi_reduction <add>, %575, %cst_150 [1] : vector<2x128xf32> to vector<2xf32>
    %577 = vector.shape_cast %576 : vector<2xf32> to vector<2x1xf32>
    %578 = math.log %577 : vector<2x1xf32>
    %579 = arith.addf %572, %578 : vector<2x1xf32>
    %580 = vector.broadcast %579 : vector<2x1xf32> to vector<2x128xf32>
    %581 = arith.subf %570, %580 : vector<2x128xf32>
    %c0_151 = arith.constant 0 : index
    %c896 = arith.constant 896 : index
    %582 = vector.load %arg14[%c0_151, %c896] : memref<2x1024xf32, #tpu.memory_space<vmem>>, vector<2x128xf32>
    tpu.vector_store %arg14[%c0_151, %c896], %581 {strides = array<i32>} : memref<2x1024xf32, #tpu.memory_space<vmem>>, vector<2x128xf32>,
    return
  }
}

</mosaic_0001>

<bundles_post_ra>
// kernel: image2latex_forward.4
= control target key start
LH: loop header
LB: loop body
LE: loop exit
PB: predicated region body
PF: predicated region fallthrough
CT: control target
= control target key end

     0   :  { %vm46_vm0 = vcmask 588800   ;;  %vm268_vm1 = vcmask 261120   ;;  %s517_s1 = inlined_call_operand.vmem [shape: f32[72,32], index: 1, kind: input, shape index: {}]   ;;  %s518_s0 = inlined_call_operand.vmem [shape: f32[4,32,72], index: 0, kind: input, shape index: {}]   ;;  %s519_s2 = inlined_call_operand.vmem [shape: f32[1,32], index: 2, kind: input, shape index: {}]   ;;  %s520_s3 = inlined_call_operand.vmem [shape: f32[32,32], index: 3, kind: output, shape index: {}]  }
   0x1   :  { %v30_v0 = vld [vmem:[%s517_s1] sm:$0xff]  ;;  %v31_v1 = vld [vmem:[%s517_s1 + $0x8] sm:$0xff]  ;;  %v32_v2 = vld [vmem:[%s517_s1 + $0x10] sm:$0xff] }
   0x2   :  { %v361_v3 = vpack.c.bf16 %v31_v1, %v30_v0  ;;  %v33_v4 = vld [vmem:[%s517_s1 + $0x18] sm:$0xff]  ;;  %v34_v6 = vld [vmem:[%s517_s1 + $0x20] sm:$0xff]  ;;  %v35_v7 = vld [vmem:[%s517_s1 + $0x28] sm:$0xff] }
   0x3   :  { %v365_v5 = vpack.c.bf16 %v33_v4, %v32_v2  ;;  %v14_v8 = vld [vmem:[%s518_s0] sm:$0xff]  ;;  %v369_v10 = vpack.c.bf16 %v35_v7, %v34_v6  ;;  %v36_v11 = vld [vmem:[%s517_s1 + $0x30] sm:$0xff]  ;;  %v37_v12 = vld [vmem:[%s517_s1 + $0x38] sm:$0xff] }
   0x4   :  { %362 = vmatprep.subr.bf16.mxu0 %v361_v3  ;;  %377 = vmatprep.subr.bf16.mxu1 %v361_v3  ;;  %v22_v9 = vld [vmem:[%s518_s0 + $0x40] sm:$0xff]  ;;  %v373_v13 = vpack.c.bf16 %v37_v12, %v36_v11  ;;  %v15_v15 = vld [vmem:[%s518_s0 + $0x8] sm:$0xff]  ;;  %v16_v17 = vld [vmem:[%s518_s0 + $0x10] sm:$0xff] }
   0x5   :  { %364 = vmatpush3.bf16.msra.mxu0 %v361_v3  ;;  %382 = vmatpush3.bf16.msra.mxu1 %v361_v3  ;;  %v38_v14 = vld [vmem:[%s517_s1 + $0x40] sm:$0xff]  ;;  %v23_v16 = vld [vmem:[%s518_s0 + $0x48] sm:$0xff]  ;;  %v24_v18 = vld [vmem:[%s518_s0 + $0x50] sm:$0xff] }
   0x6   :  { %366 = vmatprep.subr.bf16.mxu0 %v365_v5  ;;  %378 = vmatprep.subr.bf16.mxu1 %v365_v5  ;;  %v17_v19 = vld [vmem:[%s518_s0 + $0x18] sm:$0xff]  ;;  %v18_v21 = vld [vmem:[%s518_s0 + $0x20] sm:$0xff]  ;;  %v19_v23 = vld [vmem:[%s518_s0 + $0x28] sm:$0xff] }
   0x7   :  { %337 = vmatprep.mubr.msk.f32.mxu0 %vm46_vm0, %v14_v8  ;;  %349 = vmatprep.mubr.msk.f32.mxu1 %vm46_vm0, %v22_v9  ;;  %v25_v20 = vld [vmem:[%s518_s0 + $0x58] sm:$0xff]  ;;  %v26_v22 = vld [vmem:[%s518_s0 + $0x60] sm:$0xff]  ;;  %v27_v24 = vld [vmem:[%s518_s0 + $0x68] sm:$0xff] }
   0x8   :  { %v20_v25 = vld [vmem:[%s518_s0 + $0x30] sm:$0xff]  ;;  %v21_v27 = vld [vmem:[%s518_s0 + $0x38] sm:$0xff]  ;;  %v277_v33 = vld [vmem:[%s519_s2] ss:$0 sm:$0xff] }
   0x9   :  { %368 = vmatpush3.bf16.msra.mxu0 %v365_v5  ;;  %383 = vmatpush3.bf16.msra.mxu1 %v365_v5  ;;  %v28_v26 = vld [vmem:[%s518_s0 + $0x70] sm:$0xff]  ;;  %v29_v28 = vld [vmem:[%s518_s0 + $0x78] sm:$0xff] }
   0xa   :  { %370 = vmatprep.subr.bf16.mxu0 %v369_v10  ;;  %379 = vmatprep.subr.bf16.mxu1 %v369_v10 }
   0xd   :  { %372 = vmatpush3.bf16.msra.mxu0 %v369_v10  ;;  %384 = vmatpush3.bf16.msra.mxu1 %v369_v10 }
   0xe   :  { %374 = vmatprep.subr.bf16.mxu0 %v373_v13  ;;  %380 = vmatprep.subr.bf16.mxu1 %v373_v13 }
  0x11   :  { %376 = vmatpush3.bf16.msra.mxu0 %v373_v13  ;;  %385 = vmatpush3.bf16.msra.mxu1 %v373_v13 }
  0x12   :  { %335 = vmatprep.subr.mxu0 %v38_v14  ;;  %381 = vmatprep.subr.mxu1 %v38_v14 }
  0x15   :  { %336 = vmatpush3.msra.mxu0 %v38_v14  ;;  %386 = vmatpush3.msra.mxu1 %v38_v14 }
  0x16   :  { %338 = vmatmul.mubr.msk.f32.vlgmr.msra.gmra.mrb[0].mxu0 %vm46_vm0, %v15_v15  ;;  %350 = vmatmul.mubr.msk.f32.vlgmr.msra.gmra.mrb[0].mxu1 %vm46_vm0, %v23_v16 }
  0x17   :  { %340 = vmatprep.mubr.msk.f32.mxu0 %vm46_vm0, %v16_v17  ;;  %352 = vmatprep.mubr.msk.f32.mxu1 %vm46_vm0, %v24_v18 }
  0x1a   :  { %341 = vmatmul.mubr.msk.f32.gmra.mrb[2].mxu0 %vm46_vm0, %v17_v19  ;;  %353 = vmatmul.mubr.msk.f32.gmra.mrb[2].mxu1 %vm46_vm0, %v25_v20 }
  0x1b   :  { %343 = vmatprep.mubr.msk.f32.mxu0 %vm46_vm0, %v18_v21  ;;  %355 = vmatprep.mubr.msk.f32.mxu1 %vm46_vm0, %v26_v22 }
  0x1e   :  { %344 = vmatmul.mubr.msk.f32.gmra.mrb[4].mxu0 %vm46_vm0, %v19_v23  ;;  %356 = vmatmul.mubr.msk.f32.gmra.mrb[4].mxu1 %vm46_vm0, %v27_v24 }
  0x1f   :  { %346 = vmatprep.mubr.msk.f32.mxu0 %vm46_vm0, %v20_v25  ;;  %358 = vmatprep.mubr.msk.f32.mxu1 %vm46_vm0, %v28_v26 }
  0x22   :  { %347 = vmatmul.mubr.msk.f32.gmra.mrb[6].mxu0 %vm46_vm0, %v21_v27  ;;  %359 = vmatmul.mubr.msk.f32.gmra.mrb[6].mxu1 %vm46_vm0, %v29_v28 }
  0xe9   :  { %v339_v29 = vpop.f32.mrb[0].mxu0  ;;  %v351_v30 = vpop.f32.mrb[0].mxu1 }
  0xea   :  { %v161_v31 = vpop.f32.mrb[1].mxu0  ;;  %v201_v32 = vpop.f32.mrb[1].mxu1  ;;  %v167_v36 = vadd.f32 %v339_v29, %v277_v33  ;;  %v207_v37 = vadd.f32 %v351_v30, %v277_v33 }
  0xeb   :  { %v162_v40 = vadd.f32 %v277_v33, %v161_v31  ;;  %v202_v41 = vadd.f32 %v277_v33, %v201_v32 }
  0xec   :  { %v241_v46 = vmax.f32 %v167_v36, 0.0  ;;  %v249_v47 = vmax.f32 %v207_v37, 0.0 }
  0xed   :  { %v342_v34 = vpop.f32.mrb[2].mxu0  ;;  %v354_v35 = vpop.f32.mrb[2].mxu1  ;;  %v240_v52 = vmax.f32 %v162_v40, 0.0  ;;  %v248_v53 = vmax.f32 %v202_v41, 0.0 }
  0xee   :  { %v171_v38 = vpop.f32.mrb[3].mxu0  ;;  %v211_v39 = vpop.f32.mrb[3].mxu1  ;;  %v177_v42 = vadd.f32 %v342_v34, %v277_v33  ;;  %v217_v43 = vadd.f32 %v354_v35, %v277_v33 }
  0xef   :  { %v172_v56 = vadd.f32 %v277_v33, %v171_v38  ;;  %v212_v57 = vadd.f32 %v277_v33, %v211_v39 }
  0xf0   :  { %v243_v60 = vmax.f32 %v177_v42, 0.0  ;;  %v251_v61 = vmax.f32 %v217_v43, 0.0 }
  0xf1   :  { %v345_v44 = vpop.f32.mrb[4].mxu0  ;;  %v357_v45 = vpop.f32.mrb[4].mxu1  ;;  %v242_v12 = vmax.f32 %v172_v56, 0.0  ;;  %v250_v16 = vmax.f32 %v212_v57, 0.0 }
  0xf2   :  { %v187_v48 = vadd.f32 %v345_v44, %v277_v33  ;;  %v227_v49 = vadd.f32 %v357_v45, %v277_v33  ;;  %v181_v50 = vpop.f32.mrb[5].mxu0  ;;  %v221_v51 = vpop.f32.mrb[5].mxu1 }
  0xf3   :  { %v182_v54 = vadd.f32 %v277_v33, %v181_v50  ;;  %v222_v55 = vadd.f32 %v277_v33, %v221_v51 }
  0xf4   :  { %v245_v58 = vmax.f32 %v187_v48, 0.0  ;;  %v253_v59 = vmax.f32 %v227_v49, 0.0 }
  0xf5   :  { %v244_v62 = vmax.f32 %v182_v54, 0.0  ;;  %v252_v63 = vmax.f32 %v222_v55, 0.0  ;;  %v348_v0 = vpop.f32.mrb[6].mxu0  ;;  %v360_v1 = vpop.f32.mrb[6].mxu1 }
  0xf6   :  { %v257_v2 = vmax.f32 %v241_v46, %v245_v58  ;;  %v261_v3 = vmax.f32 %v249_v47, %v253_v59  ;;  %v197_v4 = vadd.f32 %v348_v0, %v277_v33  ;;  %v237_v5 = vadd.f32 %v360_v1, %v277_v33  ;;  %v191_v6 = vpop.f32.mrb[7].mxu0  ;;  %v231_v7 = vpop.f32.mrb[7].mxu1 }
  0xf7   :  { %v256_v8 = vmax.f32 %v240_v52, %v244_v62  ;;  %v260_v9 = vmax.f32 %v248_v53, %v252_v63  ;;  %v192_v10 = vadd.f32 %v277_v33, %v191_v6  ;;  %v232_v11 = vadd.f32 %v277_v33, %v231_v7 }
  0xf8   :  { %v265_v13 = vmax.f32 %v257_v2, %v261_v3  ;;  %v247_v14 = vmax.f32 %v197_v4, 0.0  ;;  %v255_v15 = vmax.f32 %v237_v5, 0.0 }
  0xf9   :  { %v264_v17 = vmax.f32 %v256_v8, %v260_v9  ;;  %v246_v18 = vmax.f32 %v192_v10, 0.0  ;;  %v254_v19 = vmax.f32 %v232_v11, 0.0 }
  0xfa   :  { %270 = vst.msk [vmem:[%s520_s3 + $0x8] sm:$0xff] %vm268_vm1, %v265_v13  ;;  %v259_v20 = vmax.f32 %v243_v60, %v247_v14  ;;  %v263_v21 = vmax.f32 %v251_v61, %v255_v15 }
  0xfb   :  { %269 = vst.msk [vmem:[%s520_s3] sm:$0xff] %vm268_vm1, %v264_v17  ;;  %v258_v22 = vmax.f32 %v242_v12, %v246_v18  ;;  %v262_v23 = vmax.f32 %v250_v16, %v254_v19 }
  0xfc   :  { %v267_v24 = vmax.f32 %v259_v20, %v263_v21 }
  0xfd   :  { %v266_v25 = vmax.f32 %v258_v22, %v262_v23 }
  0xfe   :  { %272 = vst.msk [vmem:[%s520_s3 + $0x18] sm:$0xff] %vm268_vm1, %v267_v24 }
  0xff   :  { %271 = vst.msk [vmem:[%s520_s3 + $0x10] sm:$0xff] %vm268_vm1, %v266_v25 }

// kernel: image2latex_forward.3
= control target key start
LH: loop header
LB: loop body
LE: loop exit
PB: predicated region body
PF: predicated region fallthrough
CT: control target
= control target key end

     0   :  { %vm280_vm0 = vcmask 1040384   ;;  %vm87_vm1 = vcmask 72704   ;;  %vm1043_vm2 = vmmov 1   ;;  %vm781_vm4 = vcmask 64512   ;;  %s1623_s1 = inlined_call_operand.vmem [shape: f32[9,8], index: 1, kind: input, shape index: {}]   ;;  %s1624_s0 = inlined_call_operand.vmem [shape: f32[4,128,9], index: 0, kind: input, shape index: {}]   ;;  %s1625_s2 = inlined_call_operand.vmem [shape: f32[1,8], index: 2, kind: input, shape index: {}]   ;;  %s1626_s3 = inlined_call_operand.vmem [shape: f32[128,8], index: 3, kind: output, shape index: {}]  }
   0x1   :  { %v78_v0 = vld [vmem:[%s1623_s1] sm:$0xff]  ;;  %v79_v1 = vld [vmem:[%s1623_s1 + $0x8] sm:$0x1]  ;;  %vm1035_vm3 = vmpackc.low %vm280_vm0, %vm1043_vm2 }
   0x2   :  { %v1034_v2 = vpack.c.bf16 %v79_v1, %v78_v0  ;;  %v14_v3 = vld [vmem:[%s1624_s0] sm:$0xff]  ;;  %v15_v5 = vld [vmem:[%s1624_s0 + $0x8] sm:$0xff]  ;;  %v16_v7 = vld [vmem:[%s1624_s0 + $0x10] sm:$0xff] }
   0x3   :  { %v46_v4 = vld [vmem:[%s1624_s0 + $0x100] sm:$0xff]  ;;  %938 = vmatprep.mubr.msk.f32.mxu0 %vm87_vm1, %v14_v3  ;;  %v47_v6 = vld [vmem:[%s1624_s0 + $0x108] sm:$0xff]  ;;  %v48_v8 = vld [vmem:[%s1624_s0 + $0x110] sm:$0xff] }
   0x4   :  { %986 = vmatprep.mubr.msk.f32.mxu1 %vm87_vm1, %v46_v4  ;;  %1036 = vmatprep.subr.msk.bf16.mxu0 %vm1035_vm3, %v1034_v2  ;;  %v17_v9 = vld [vmem:[%s1624_s0 + $0x18] sm:$0xff]  ;;  %v18_v11 = vld [vmem:[%s1624_s0 + $0x20] sm:$0xff]  ;;  %v19_v13 = vld [vmem:[%s1624_s0 + $0x28] sm:$0xff] }
   0x5   :  { %1040 = vmatprep.subr.msk.bf16.mxu1 %vm1035_vm3, %v1034_v2  ;;  %1039 = vmatpush3.bf16.msk.msra.mxu0 %vm1035_vm3, %v1034_v2  ;;  %v49_v10 = vld [vmem:[%s1624_s0 + $0x118] sm:$0xff]  ;;  %v50_v12 = vld [vmem:[%s1624_s0 + $0x120] sm:$0xff]  ;;  %v51_v14 = vld [vmem:[%s1624_s0 + $0x128] sm:$0xff] }
   0x6   :  { %1041 = vmatpush3.bf16.msk.msra.mxu1 %vm1035_vm3, %v1034_v2  ;;  %v20_v15 = vld [vmem:[%s1624_s0 + $0x30] sm:$0xff]  ;;  %v21_v17 = vld [vmem:[%s1624_s0 + $0x38] sm:$0xff]  ;;  %v22_v19 = vld [vmem:[%s1624_s0 + $0x40] sm:$0xff] }
   0x7   :  { %v52_v16 = vld [vmem:[%s1624_s0 + $0x130] sm:$0xff]  ;;  %v53_v18 = vld [vmem:[%s1624_s0 + $0x138] sm:$0xff]  ;;  %v54_v20 = vld [vmem:[%s1624_s0 + $0x140] sm:$0xff] }
   0x8   :  { %939 = vmatmul.mubr.msk.f32.vlgmr.msra.gmra.mrb[0].mxu0 %vm87_vm1, %v15_v5  ;;  %v23_v21 = vld [vmem:[%s1624_s0 + $0x48] sm:$0xff]  ;;  %v24_v23 = vld [vmem:[%s1624_s0 + $0x50] sm:$0xff]  ;;  %v25_v25 = vld [vmem:[%s1624_s0 + $0x58] sm:$0xff] }
   0x9   :  { %987 = vmatmul.mubr.msk.f32.vlgmr.msra.gmra.mrb[0].mxu1 %vm87_vm1, %v47_v6  ;;  %941 = vmatprep.mubr.msk.f32.mxu0 %vm87_vm1, %v16_v7  ;;  %v55_v22 = vld [vmem:[%s1624_s0 + $0x148] sm:$0xff]  ;;  %v56_v24 = vld [vmem:[%s1624_s0 + $0x150] sm:$0xff]  ;;  %v57_v26 = vld [vmem:[%s1624_s0 + $0x158] sm:$0xff] }
   0xa   :  { %989 = vmatprep.mubr.msk.f32.mxu1 %vm87_vm1, %v48_v8  ;;  %v26_v27 = vld [vmem:[%s1624_s0 + $0x60] sm:$0xff]  ;;  %v27_v29 = vld [vmem:[%s1624_s0 + $0x68] sm:$0xff]  ;;  %v28_v31 = vld [vmem:[%s1624_s0 + $0x70] sm:$0xff] }
   0xb   :  { %v58_v28 = vld [vmem:[%s1624_s0 + $0x160] sm:$0xff]  ;;  %v59_v30 = vld [vmem:[%s1624_s0 + $0x168] sm:$0xff]  ;;  %v60_v32 = vld [vmem:[%s1624_s0 + $0x170] sm:$0xff] }
   0xc   :  { %942 = vmatmul.mubr.msk.f32.gmra.mrb[2].mxu0 %vm87_vm1, %v17_v9  ;;  %v29_v33 = vld [vmem:[%s1624_s0 + $0x78] sm:$0xff]  ;;  %v30_v35 = vld [vmem:[%s1624_s0 + $0x80] sm:$0xff]  ;;  %v31_v37 = vld [vmem:[%s1624_s0 + $0x88] sm:$0xff] }
   0xd   :  { %990 = vmatmul.mubr.msk.f32.gmra.mrb[2].mxu1 %vm87_vm1, %v49_v10  ;;  %944 = vmatprep.mubr.msk.f32.mxu0 %vm87_vm1, %v18_v11  ;;  %v61_v34 = vld [vmem:[%s1624_s0 + $0x178] sm:$0xff]  ;;  %v62_v36 = vld [vmem:[%s1624_s0 + $0x180] sm:$0xff]  ;;  %v63_v38 = vld [vmem:[%s1624_s0 + $0x188] sm:$0xff] }
   0xe   :  { %992 = vmatprep.mubr.msk.f32.mxu1 %vm87_vm1, %v50_v12  ;;  %v32_v39 = vld [vmem:[%s1624_s0 + $0x90] sm:$0xff]  ;;  %v33_v41 = vld [vmem:[%s1624_s0 + $0x98] sm:$0xff]  ;;  %v34_v43 = vld [vmem:[%s1624_s0 + $0xa0] sm:$0xff] }
   0xf   :  { %v64_v40 = vld [vmem:[%s1624_s0 + $0x190] sm:$0xff]  ;;  %v65_v42 = vld [vmem:[%s1624_s0 + $0x198] sm:$0xff]  ;;  %v66_v44 = vld [vmem:[%s1624_s0 + $0x1a0] sm:$0xff] }
  0x10   :  { %945 = vmatmul.mubr.msk.f32.gmra.mrb[4].mxu0 %vm87_vm1, %v19_v13  ;;  %v35_v45 = vld [vmem:[%s1624_s0 + $0xa8] sm:$0xff]  ;;  %v36_v47 = vld [vmem:[%s1624_s0 + $0xb0] sm:$0xff]  ;;  %v37_v49 = vld [vmem:[%s1624_s0 + $0xb8] sm:$0xff] }
  0x11   :  { %993 = vmatmul.mubr.msk.f32.gmra.mrb[4].mxu1 %vm87_vm1, %v51_v14  ;;  %947 = vmatprep.mubr.msk.f32.mxu0 %vm87_vm1, %v20_v15  ;;  %v67_v46 = vld [vmem:[%s1624_s0 + $0x1a8] sm:$0xff]  ;;  %v68_v48 = vld [vmem:[%s1624_s0 + $0x1b0] sm:$0xff]  ;;  %v69_v50 = vld [vmem:[%s1624_s0 + $0x1b8] sm:$0xff] }
  0x12   :  { %995 = vmatprep.mubr.msk.f32.mxu1 %vm87_vm1, %v52_v16  ;;  %v38_v51 = vld [vmem:[%s1624_s0 + $0xc0] sm:$0xff]  ;;  %v39_v53 = vld [vmem:[%s1624_s0 + $0xc8] sm:$0xff]  ;;  %v40_v55 = vld [vmem:[%s1624_s0 + $0xd0] sm:$0xff] }
  0x13   :  { %v70_v52 = vld [vmem:[%s1624_s0 + $0x1c0] sm:$0xff]  ;;  %v71_v54 = vld [vmem:[%s1624_s0 + $0x1c8] sm:$0xff]  ;;  %v72_v56 = vld [vmem:[%s1624_s0 + $0x1d0] sm:$0xff] }
  0x14   :  { %948 = vmatmul.mubr.msk.f32.gmra.mrb[6].mxu0 %vm87_vm1, %v21_v17  ;;  %v41_v57 = vld [vmem:[%s1624_s0 + $0xd8] sm:$0xff]  ;;  %v42_v59 = vld [vmem:[%s1624_s0 + $0xe0] sm:$0xff]  ;;  %v43_v61 = vld [vmem:[%s1624_s0 + $0xe8] sm:$0xff] }
  0x15   :  { %996 = vmatmul.mubr.msk.f32.gmra.mrb[6].mxu1 %vm87_vm1, %v53_v18  ;;  %950 = vmatprep.mubr.msk.f32.mxu0 %vm87_vm1, %v22_v19  ;;  %v73_v58 = vld [vmem:[%s1624_s0 + $0x1d8] sm:$0xff]  ;;  %v74_v60 = vld [vmem:[%s1624_s0 + $0x1e0] sm:$0xff]  ;;  %v75_v62 = vld [vmem:[%s1624_s0 + $0x1e8] sm:$0xff] }
  0x16   :  { %998 = vmatprep.mubr.msk.f32.mxu1 %vm87_vm1, %v54_v20  ;;  %v44_v63 = vld [vmem:[%s1624_s0 + $0xf0] sm:$0xff]  ;;  %v45_v1 = vld [vmem:[%s1624_s0 + $0xf8] sm:$0xff] }
  0x17   :  { %v76_v0 = vld [vmem:[%s1624_s0 + $0x1f0] sm:$0xff]  ;;  %v77_v2 = vld [vmem:[%s1624_s0 + $0x1f8] sm:$0xff] }
  0x18   :  { %951 = vmatmul.mubr.msk.f32.gmra.mrb[8].mxu0 %vm87_vm1, %v23_v21  ;;  %v1329_v21 = vld [vmem:[%s1625_s2] ss:$0 sm:$0xff] }
  0x19   :  { %999 = vmatmul.mubr.msk.f32.gmra.mrb[8].mxu1 %vm87_vm1, %v55_v22  ;;  %953 = vmatprep.mubr.msk.f32.mxu0 %vm87_vm1, %v24_v23 }
  0x1a   :  { %1001 = vmatprep.mubr.msk.f32.mxu1 %vm87_vm1, %v56_v24 }
  0x1c   :  { %954 = vmatmul.mubr.msk.f32.gmra.mrb[10].mxu0 %vm87_vm1, %v25_v25 }
  0x1d   :  { %1002 = vmatmul.mubr.msk.f32.gmra.mrb[10].mxu1 %vm87_vm1, %v57_v26  ;;  %956 = vmatprep.mubr.msk.f32.mxu0 %vm87_vm1, %v26_v27 }
  0x1e   :  { %1004 = vmatprep.mubr.msk.f32.mxu1 %vm87_vm1, %v58_v28 }
  0x20   :  { %957 = vmatmul.mubr.msk.f32.gmra.mrb[12].mxu0 %vm87_vm1, %v27_v29 }
  0x21   :  { %1005 = vmatmul.mubr.msk.f32.gmra.mrb[12].mxu1 %vm87_vm1, %v59_v30  ;;  %959 = vmatprep.mubr.msk.f32.mxu0 %vm87_vm1, %v28_v31 }
  0x22   :  { %1007 = vmatprep.mubr.msk.f32.mxu1 %vm87_vm1, %v60_v32 }
  0x24   :  { %960 = vmatmul.mubr.msk.f32.gmra.mrb[14].mxu0 %vm87_vm1, %v29_v33 }
  0x25   :  { %1008 = vmatmul.mubr.msk.f32.gmra.mrb[14].mxu1 %vm87_vm1, %v61_v34  ;;  %962 = vmatprep.mubr.msk.f32.mxu0 %vm87_vm1, %v30_v35 }
  0x26   :  { %1010 = vmatprep.mubr.msk.f32.mxu1 %vm87_vm1, %v62_v36 }
  0x28   :  { %963 = vmatmul.mubr.msk.f32.gmra.mrb[16].mxu0 %vm87_vm1, %v31_v37 }
  0x29   :  { %1011 = vmatmul.mubr.msk.f32.gmra.mrb[16].mxu1 %vm87_vm1, %v63_v38  ;;  %965 = vmatprep.mubr.msk.f32.mxu0 %vm87_vm1, %v32_v39 }
  0x2a   :  { %1013 = vmatprep.mubr.msk.f32.mxu1 %vm87_vm1, %v64_v40 }
  0x2c   :  { %966 = vmatmul.mubr.msk.f32.gmra.mrb[18].mxu0 %vm87_vm1, %v33_v41 }
  0x2d   :  { %1014 = vmatmul.mubr.msk.f32.gmra.mrb[18].mxu1 %vm87_vm1, %v65_v42  ;;  %968 = vmatprep.mubr.msk.f32.mxu0 %vm87_vm1, %v34_v43 }
  0x2e   :  { %1016 = vmatprep.mubr.msk.f32.mxu1 %vm87_vm1, %v66_v44 }
  0x30   :  { %969 = vmatmul.mubr.msk.f32.gmra.mrb[20].mxu0 %vm87_vm1, %v35_v45 }
  0x31   :  { %1017 = vmatmul.mubr.msk.f32.gmra.mrb[20].mxu1 %vm87_vm1, %v67_v46  ;;  %971 = vmatprep.mubr.msk.f32.mxu0 %vm87_vm1, %v36_v47 }
  0x32   :  { %1019 = vmatprep.mubr.msk.f32.mxu1 %vm87_vm1, %v68_v48 }
  0x34   :  { %972 = vmatmul.mubr.msk.f32.gmra.mrb[22].mxu0 %vm87_vm1, %v37_v49 }
  0x35   :  { %1020 = vmatmul.mubr.msk.f32.gmra.mrb[22].mxu1 %vm87_vm1, %v69_v50  ;;  %974 = vmatprep.mubr.msk.f32.mxu0 %vm87_vm1, %v38_v51 }
  0x36   :  { %1022 = vmatprep.mubr.msk.f32.mxu1 %vm87_vm1, %v70_v52 }
  0x38   :  { %975 = vmatmul.mubr.msk.f32.gmra.mrb[24].mxu0 %vm87_vm1, %v39_v53 }
  0x39   :  { %1023 = vmatmul.mubr.msk.f32.gmra.mrb[24].mxu1 %vm87_vm1, %v71_v54  ;;  %977 = vmatprep.mubr.msk.f32.mxu0 %vm87_vm1, %v40_v55 }
  0x3a   :  { %1025 = vmatprep.mubr.msk.f32.mxu1 %vm87_vm1, %v72_v56 }
  0x3c   :  { %978 = vmatmul.mubr.msk.f32.gmra.mrb[26].mxu0 %vm87_vm1, %v41_v57 }
  0x3d   :  { %1026 = vmatmul.mubr.msk.f32.gmra.mrb[26].mxu1 %vm87_vm1, %v73_v58  ;;  %980 = vmatprep.mubr.msk.f32.mxu0 %vm87_vm1, %v42_v59 }
  0x3e   :  { %1028 = vmatprep.mubr.msk.f32.mxu1 %vm87_vm1, %v74_v60 }
  0x40   :  { %981 = vmatmul.mubr.msk.f32.gmra.mrb[28].mxu0 %vm87_vm1, %v43_v61 }
  0x41   :  { %1029 = vmatmul.mubr.msk.f32.gmra.mrb[28].mxu1 %vm87_vm1, %v75_v62  ;;  %983 = vmatprep.mubr.msk.f32.mxu0 %vm87_vm1, %v44_v63 }
  0x42   :  { %1031 = vmatprep.mubr.msk.f32.mxu1 %vm87_vm1, %v76_v0 }
  0x44   :  { %984 = vmatmul.mubr.msk.f32.gmra.mrb[30].mxu0 %vm87_vm1, %v45_v1 }
  0x45   :  { %1032 = vmatmul.mubr.msk.f32.gmra.mrb[30].mxu1 %vm87_vm1, %v77_v2 }
  0xdb   :  { %v940_v3 = vpop.f32.mrb[0].mxu0 }
  0xdc   :  { %v988_v4 = vpop.f32.mrb[0].mxu1  ;;  %v350_v5 = vpop.f32.mrb[1].mxu0  ;;  %v1332_v24 = vadd.f32 %v940_v3, %v1329_v21 }
  0xdd   :  { %v510_v6 = vpop.f32.mrb[1].mxu1  ;;  %v1335_v25 = vadd.f32 %v988_v4, %v1329_v21  ;;  %v1338_v28 = vadd.f32 %v1329_v21, %v350_v5 }
  0xde   :  { %v1341_v29 = vadd.f32 %v1329_v21, %v510_v6  ;;  %v670_v36 = vmax.f32 %v1332_v24, 0.0 }
  0xdf   :  { %v943_v7 = vpop.f32.mrb[2].mxu0  ;;  %v702_v37 = vmax.f32 %v1335_v25, 0.0  ;;  %v669_v40 = vmax.f32 %v1338_v28, 0.0 }
  0xe0   :  { %v991_v8 = vpop.f32.mrb[2].mxu1  ;;  %v360_v9 = vpop.f32.mrb[3].mxu0  ;;  %v1344_v32 = vadd.f32 %v943_v7, %v1329_v21  ;;  %v701_v41 = vmax.f32 %v1341_v29, 0.0 }
  0xe1   :  { %v520_v10 = vpop.f32.mrb[3].mxu1  ;;  %v1347_v33 = vadd.f32 %v991_v8, %v1329_v21  ;;  %v1350_v34 = vadd.f32 %v1329_v21, %v360_v9 }
  0xe2   :  { %v1353_v35 = vadd.f32 %v1329_v21, %v520_v10  ;;  %v672_v46 = vmax.f32 %v1344_v32, 0.0 }
  0xe3   :  { %v946_v11 = vpop.f32.mrb[4].mxu0  ;;  %v704_v47 = vmax.f32 %v1347_v33, 0.0  ;;  %v671_v50 = vmax.f32 %v1350_v34, 0.0 }
  0xe4   :  { %v994_v12 = vpop.f32.mrb[4].mxu1  ;;  %v370_v13 = vpop.f32.mrb[5].mxu0  ;;  %v1360_v42 = vadd.f32 %v946_v11, %v1329_v21  ;;  %v703_v51 = vmax.f32 %v1353_v35, 0.0 }
  0xe5   :  { %v530_v14 = vpop.f32.mrb[5].mxu1  ;;  %v1363_v43 = vadd.f32 %v994_v12, %v1329_v21  ;;  %v1372_v48 = vadd.f32 %v1329_v21, %v370_v13 }
  0xe6   :  { %v1375_v49 = vadd.f32 %v1329_v21, %v530_v14  ;;  %v674_v60 = vmax.f32 %v1360_v42, 0.0 }
  0xe7   :  { %v949_v15 = vpop.f32.mrb[6].mxu0  ;;  %v706_v61 = vmax.f32 %v1363_v43, 0.0  ;;  %v673_v2 = vmax.f32 %v1372_v48, 0.0 }
  0xe8   :  { %v997_v16 = vpop.f32.mrb[6].mxu1  ;;  %v380_v17 = vpop.f32.mrb[7].mxu0  ;;  %v1380_v52 = vadd.f32 %v949_v15, %v1329_v21  ;;  %v705_v3 = vmax.f32 %v1375_v49, 0.0 }
  0xe9   :  { %v540_v18 = vpop.f32.mrb[7].mxu1  ;;  %v1383_v53 = vadd.f32 %v997_v16, %v1329_v21  ;;  %v1386_v54 = vadd.f32 %v1329_v21, %v380_v17 }
  0xea   :  { %v1389_v55 = vadd.f32 %v1329_v21, %v540_v18  ;;  %v676_v6 = vmax.f32 %v1380_v52, 0.0 }
  0xeb   :  { %v952_v19 = vpop.f32.mrb[8].mxu0  ;;  %v708_v7 = vmax.f32 %v1383_v53, 0.0  ;;  %v675_v10 = vmax.f32 %v1386_v54, 0.0 }
  0xec   :  { %v1000_v20 = vpop.f32.mrb[8].mxu1  ;;  %v390_v22 = vpop.f32.mrb[9].mxu0  ;;  %v1392_v56 = vadd.f32 %v952_v19, %v1329_v21  ;;  %v1627_v52 = vmax.f32 %v1389_v55, 0.0 }
  0xed   :  { %v550_v23 = vpop.f32.mrb[9].mxu1  ;;  %v1395_v57 = vadd.f32 %v1000_v20, %v1329_v21  ;;  %v1404_v62 = vadd.f32 %v1329_v21, %v390_v22 }
  0xee   :  { %v1407_v63 = vadd.f32 %v1329_v21, %v550_v23 }
  0xef   :  { %v955_v26 = vpop.f32.mrb[10].mxu0 }
  0xf0   :  { %v1003_v27 = vpop.f32.mrb[10].mxu1  ;;  %v400_v30 = vpop.f32.mrb[11].mxu0  ;;  %v1416_v4 = vadd.f32 %v955_v26, %v1329_v21 }
  0xf1   :  { %v560_v31 = vpop.f32.mrb[11].mxu1  ;;  %v1419_v5 = vadd.f32 %v1003_v27, %v1329_v21  ;;  %v1424_v8 = vadd.f32 %v1329_v21, %v400_v30 }
  0xf2   :  { %v1427_v9 = vadd.f32 %v1329_v21, %v560_v31 }
  0xf3   :  { %v958_v38 = vpop.f32.mrb[12].mxu0  ;;  %v679_v31 = vmax.f32 %v1424_v8, 0.0 }
  0xf4   :  { %v1006_v39 = vpop.f32.mrb[12].mxu1  ;;  %v1365_v44 = vpop.f32.mrb[13].mxu0 }
  0xf5   :  { %v1367_v45 = vpop.f32.mrb[13].mxu1  ;;  %v1463_v25 = vadd.f32 %v1329_v21, %v1365_v44 }
  0xf7   :  { %v1397_v58 = vpop.f32.mrb[14].mxu0 }
  0xf8   :  { %v1399_v59 = vpop.f32.mrb[14].mxu1  ;;  %v1409_v0 = vpop.f32.mrb[15].mxu0 }
  0xf9   :  { %v1411_v1 = vpop.f32.mrb[15].mxu1 }
  0xfb   :  { %v964_v14 = vpop.f32.mrb[16].mxu0 }
  0xfc   :  { %v1012_v15 = vpop.f32.mrb[16].mxu1  ;;  %v436_v18 = vadd.f32 %v964_v14, %v1329_v21  ;;  %v430_v20 = vpop.f32.mrb[17].mxu0  ;;  %v1444_v14 = vadd.f32 %v958_v38, %v1329_v21 }
  0xfd   :  { %v596_v19 = vadd.f32 %v1012_v15, %v1329_v21  ;;  %v590_v22 = vpop.f32.mrb[17].mxu1  ;;  %v431_v27 = vadd.f32 %v1329_v21, %v430_v20  ;;  %v1447_v15 = vadd.f32 %v1006_v39, %v1329_v21 }
  0xfe   :  { %v591_v30 = vadd.f32 %v1329_v21, %v590_v22  ;;  %v686_v13 = vmax.f32 %v436_v18, 0.0 }
  0xff   :  { %v718_v17 = vmax.f32 %v596_v19, 0.0  ;;  %v685_v12 = vmax.f32 %v431_v27, 0.0  ;;  %v967_v11 = vpop.f32.mrb[18].mxu0 }
 0x100   :  { %v717_v23 = vmax.f32 %v591_v30, 0.0  ;;  %v1015_v26 = vpop.f32.mrb[18].mxu1  ;;  %v734_v20 = vmax.f32 %v670_v36, %v686_v13  ;;  %v446_v16 = vadd.f32 %v967_v11, %v1329_v21  ;;  %v440_v19 = vpop.f32.mrb[19].mxu0  ;;  %v1467_v13 = vadd.f32 %v1329_v21, %v1367_v45 }
 0x101   :  { %v750_v22 = vmax.f32 %v702_v37, %v718_v17  ;;  %v606_v18 = vadd.f32 %v1015_v26, %v1329_v21  ;;  %v600_v38 = vpop.f32.mrb[19].mxu1  ;;  %v733_v39 = vmax.f32 %v669_v40, %v685_v12  ;;  %v441_v30 = vadd.f32 %v1329_v21, %v440_v19 }
 0x102   :  { %v749_v27 = vmax.f32 %v701_v41, %v717_v23  ;;  %v601_v24 = vadd.f32 %v1329_v21, %v600_v38  ;;  %v688_v37 = vmax.f32 %v446_v16, 0.0  ;;  %v714_v38 = vmax.f32 %v1447_v15, 0.0 }
 0x103   :  { %v766_v36 = vmax.f32 %v734_v20, %v750_v22  ;;  %v720_v11 = vmax.f32 %v606_v18, 0.0  ;;  %v687_v40 = vmax.f32 %v441_v30, 0.0  ;;  %v970_v29 = vpop.f32.mrb[20].mxu0 }
 0x104   :  { %v765_v28 = vmax.f32 %v733_v39, %v749_v27  ;;  %v719_v12 = vmax.f32 %v601_v24, 0.0  ;;  %v1018_v41 = vpop.f32.mrb[20].mxu1  ;;  %v736_v44 = vmax.f32 %v672_v46, %v688_v37  ;;  %v456_v17 = vadd.f32 %v970_v29, %v1329_v21  ;;  %v450_v23 = vpop.f32.mrb[21].mxu0 }
 0x105   :  { %783 = vst.msk [vmem:[%s1626_s3 + $0x8] sm:$0xff] %vm781_vm4, %v766_v36  ;;  %v752_v16 = vmax.f32 %v704_v47, %v720_v11  ;;  %v616_v45 = vadd.f32 %v1018_v41, %v1329_v21  ;;  %v610_v26 = vpop.f32.mrb[21].mxu1  ;;  %v735_v20 = vmax.f32 %v671_v50, %v687_v40  ;;  %v451_v33 = vadd.f32 %v1329_v21, %v450_v23 }
 0x106   :  { %782 = vst.msk [vmem:[%s1626_s3] sm:$0xff] %vm781_vm4, %v765_v28  ;;  %v751_v32 = vmax.f32 %v703_v51, %v719_v12  ;;  %v611_v46 = vadd.f32 %v1329_v21, %v610_v26  ;;  %v682_v47 = vmax.f32 %v1444_v14, 0.0  ;;  %v690_v18 = vmax.f32 %v456_v17, 0.0 }
 0x107   :  { %v768_v22 = vmax.f32 %v736_v44, %v752_v16  ;;  %v722_v19 = vmax.f32 %v616_v45, 0.0  ;;  %v689_v27 = vmax.f32 %v451_v33, 0.0  ;;  %v973_v24 = vpop.f32.mrb[22].mxu0  ;;  %v713_v41 = vmax.f32 %v1467_v13, 0.0 }
 0x108   :  { %v767_v39 = vmax.f32 %v735_v20, %v751_v32  ;;  %v721_v30 = vmax.f32 %v611_v46, 0.0  ;;  %v1021_v34 = vpop.f32.mrb[22].mxu1  ;;  %v738_v35 = vmax.f32 %v674_v60, %v690_v18  ;;  %v466_v51 = vadd.f32 %v973_v24, %v1329_v21  ;;  %v460_v37 = vpop.f32.mrb[23].mxu0 }
 0x109   :  { %785 = vst.msk [vmem:[%s1626_s3 + $0x18] sm:$0xff] %vm781_vm4, %v768_v22  ;;  %v754_v50 = vmax.f32 %v706_v61, %v722_v19  ;;  %v626_v36 = vadd.f32 %v1021_v34, %v1329_v21  ;;  %v620_v11 = vpop.f32.mrb[23].mxu1  ;;  %v737_v28 = vmax.f32 %v673_v2, %v689_v27  ;;  %v461_v43 = vadd.f32 %v1329_v21, %v460_v37 }
 0x10a   :  { %784 = vst.msk [vmem:[%s1626_s3 + $0x10] sm:$0xff] %vm781_vm4, %v767_v39  ;;  %v753_v42 = vmax.f32 %v705_v3, %v721_v30  ;;  %v621_v60 = vadd.f32 %v1329_v21, %v620_v11  ;;  %v681_v61 = vmax.f32 %v1463_v25, 0.0  ;;  %v692_v12 = vmax.f32 %v466_v51, 0.0 }
 0x10b   :  { %v770_v40 = vmax.f32 %v738_v35, %v754_v50  ;;  %v724_v29 = vmax.f32 %v626_v36, 0.0  ;;  %v691_v16 = vmax.f32 %v461_v43, 0.0  ;;  %v976_v45 = vpop.f32.mrb[24].mxu0  ;;  %v1535_v33 = vadd.f32 %v1397_v58, %v1329_v21 }
 0x10c   :  { %v769_v44 = vmax.f32 %v737_v28, %v753_v42  ;;  %v723_v17 = vmax.f32 %v621_v60, 0.0  ;;  %v1024_v48 = vpop.f32.mrb[24].mxu1  ;;  %v740_v49 = vmax.f32 %v676_v6, %v692_v12  ;;  %v476_v3 = vadd.f32 %v976_v45, %v1329_v21  ;;  %v470_v26 = vpop.f32.mrb[25].mxu0 }
 0x10d   :  { %787 = vst.msk [vmem:[%s1626_s3 + $0x28] sm:$0xff] %vm781_vm4, %v770_v40  ;;  %v756_v2 = vmax.f32 %v708_v7, %v724_v29  ;;  %v636_v23 = vadd.f32 %v1024_v48, %v1329_v21  ;;  %v630_v20 = vpop.f32.mrb[25].mxu1  ;;  %v739_v32 = vmax.f32 %v675_v10, %v691_v16  ;;  %v471_v53 = vadd.f32 %v1329_v21, %v470_v26 }
 0x10e   :  { %786 = vst.msk [vmem:[%s1626_s3 + $0x20] sm:$0xff] %vm781_vm4, %v769_v44  ;;  %v755_v6 = vmax.f32 %v1627_v52, %v723_v17  ;;  %v631_v7 = vadd.f32 %v1329_v21, %v630_v20  ;;  %v694_v22 = vmax.f32 %v476_v3, 0.0  ;;  %v1539_v19 = vadd.f32 %v1399_v59, %v1329_v21 }
 0x10f   :  { %v772_v46 = vmax.f32 %v740_v49, %v756_v2  ;;  %v726_v18 = vmax.f32 %v636_v23, 0.0  ;;  %v693_v10 = vmax.f32 %v471_v53, 0.0  ;;  %v979_v55 = vpop.f32.mrb[26].mxu0  ;;  %v1628_v58 = vmax.f32 %v1392_v56, 0.0 }
 0x110   :  { %v771_v54 = vmax.f32 %v739_v32, %v755_v6  ;;  %v725_v39 = vmax.f32 %v631_v7, 0.0  ;;  %v1027_v27 = vpop.f32.mrb[26].mxu1  ;;  %v1629_v24 = vmax.f32 %v1395_v57, 0.0  ;;  %v486_v35 = vadd.f32 %v979_v55, %v1329_v21  ;;  %v480_v50 = vpop.f32.mrb[27].mxu0 }
 0x111   :  { %789 = vst.msk [vmem:[%s1626_s3 + $0x38] sm:$0xff] %vm781_vm4, %v772_v46  ;;  %v742_v30 = vmax.f32 %v1628_v58, %v694_v22  ;;  %v646_v59 = vadd.f32 %v1027_v27, %v1329_v21  ;;  %v640_v51 = vpop.f32.mrb[27].mxu1  ;;  %v1630_v36 = vmax.f32 %v1404_v62, 0.0  ;;  %v1631_v56 = vmax.f32 %v1407_v63, 0.0 }
 0x112   :  { %v758_v34 = vmax.f32 %v1629_v24, %v726_v18  ;;  %788 = vst.msk [vmem:[%s1626_s3 + $0x30] sm:$0xff] %vm781_vm4, %v771_v54  ;;  %v481_v57 = vadd.f32 %v1329_v21, %v480_v50  ;;  %v641_v28 = vadd.f32 %v1329_v21, %v640_v51  ;;  %v421_v42 = vadd.f32 %v1329_v21, %v1409_v0 }
 0x113   :  { %v741_v37 = vmax.f32 %v1630_v36, %v693_v10  ;;  %v757_v11 = vmax.f32 %v1631_v56, %v725_v39  ;;  %v696_v60 = vmax.f32 %v486_v35, 0.0  ;;  %v728_v40 = vmax.f32 %v646_v59, 0.0  ;;  %v982_v16 = vpop.f32.mrb[28].mxu0 }
 0x114   :  { %v774_v43 = vmax.f32 %v742_v30, %v758_v34  ;;  %v581_v12 = vadd.f32 %v1329_v21, %v1411_v1  ;;  %v695_v44 = vmax.f32 %v481_v57, 0.0  ;;  %v727_v62 = vmax.f32 %v641_v28, 0.0  ;;  %v1030_v17 = vpop.f32.mrb[28].mxu1  ;;  %v490_v2 = vpop.f32.mrb[29].mxu0 }
 0x115   :  { %v773_v29 = vmax.f32 %v741_v37, %v757_v11  ;;  %v1632_v63 = vmax.f32 %v1416_v4, 0.0  ;;  %v1633_v0 = vmax.f32 %v1419_v5, 0.0  ;;  %v496_v49 = vadd.f32 %v982_v16, %v1329_v21  ;;  %v650_v3 = vpop.f32.mrb[29].mxu1 }
 0x116   :  { %791 = vst.msk [vmem:[%s1626_s3 + $0x48] sm:$0xff] %vm781_vm4, %v774_v43  ;;  %v656_v1 = vadd.f32 %v1030_v17, %v1329_v21  ;;  %v743_v23 = vmax.f32 %v679_v31, %v695_v44  ;;  %v1634_v4 = vmax.f32 %v1427_v9, 0.0  ;;  %v491_v5 = vadd.f32 %v1329_v21, %v490_v2 }
 0x117   :  { %v744_v45 = vmax.f32 %v1632_v63, %v696_v60  ;;  %v760_v48 = vmax.f32 %v1633_v0, %v728_v40  ;;  %790 = vst.msk [vmem:[%s1626_s3 + $0x40] sm:$0xff] %vm781_vm4, %v773_v29  ;;  %v651_v20 = vadd.f32 %v1329_v21, %v650_v3  ;;  %v684_v32 = vmax.f32 %v1535_v33, 0.0  ;;  %v985_v54 = vpop.f32.mrb[30].mxu0 }
 0x118   :  { %v759_v26 = vmax.f32 %v1634_v4, %v727_v62  ;;  %v698_v6 = vmax.f32 %v496_v49, 0.0  ;;  %v730_v53 = vmax.f32 %v656_v1, 0.0  ;;  %v716_v7 = vmax.f32 %v1539_v19, 0.0  ;;  %v1033_v8 = vpop.f32.mrb[30].mxu1  ;;  %v500_v10 = vpop.f32.mrb[31].mxu0 }
 0x119   :  { %v776_v52 = vmax.f32 %v744_v45, %v760_v48  ;;  %v697_v22 = vmax.f32 %v491_v5, 0.0  ;;  %v729_v18 = vmax.f32 %v651_v20, 0.0  ;;  %v506_v33 = vadd.f32 %v985_v54, %v1329_v21  ;;  %v660_v39 = vpop.f32.mrb[31].mxu1 }
 0x11a   :  { %v775_v46 = vmax.f32 %v743_v23, %v759_v26  ;;  %v746_v9 = vmax.f32 %v682_v47, %v698_v6  ;;  %v762_v31 = vmax.f32 %v714_v38, %v730_v53  ;;  %v666_v19 = vadd.f32 %v1033_v8, %v1329_v21 }
 0x11b   :  { %793 = vst.msk [vmem:[%s1626_s3 + $0x58] sm:$0xff] %vm781_vm4, %v776_v52  ;;  %v745_v55 = vmax.f32 %v681_v61, %v697_v22  ;;  %v761_v14 = vmax.f32 %v713_v41, %v729_v18  ;;  %v501_v15 = vadd.f32 %v1329_v21, %v500_v10  ;;  %v661_v47 = vadd.f32 %v1329_v21, %v660_v39 }
 0x11c   :  { %792 = vst.msk [vmem:[%s1626_s3 + $0x50] sm:$0xff] %vm781_vm4, %v775_v46  ;;  %v683_v38 = vmax.f32 %v421_v42, 0.0  ;;  %v778_v27 = vmax.f32 %v746_v9, %v762_v31  ;;  %v700_v58 = vmax.f32 %v506_v33, 0.0  ;;  %v732_v30 = vmax.f32 %v666_v19, 0.0 }
 0x11d   :  { %v715_v24 = vmax.f32 %v581_v12, 0.0  ;;  %v777_v34 = vmax.f32 %v745_v55, %v761_v14  ;;  %v699_v35 = vmax.f32 %v501_v15, 0.0  ;;  %v731_v59 = vmax.f32 %v661_v47, 0.0 }
 0x11e   :  { %795 = vst.msk [vmem:[%s1626_s3 + $0x68] sm:$0xff] %vm781_vm4, %v778_v27  ;;  %v748_v25 = vmax.f32 %v684_v32, %v700_v58  ;;  %v764_v13 = vmax.f32 %v716_v7, %v732_v30 }
 0x11f   :  { %794 = vst.msk [vmem:[%s1626_s3 + $0x60] sm:$0xff] %vm781_vm4, %v777_v34  ;;  %v747_v21 = vmax.f32 %v683_v38, %v699_v35  ;;  %v763_v61 = vmax.f32 %v715_v24, %v731_v59 }
 0x120   :  { %v780_v41 = vmax.f32 %v748_v25, %v764_v13 }
 0x121   :  { %v779_v50 = vmax.f32 %v747_v21, %v763_v61 }
 0x122   :  { %797 = vst.msk [vmem:[%s1626_s3 + $0x78] sm:$0xff] %vm781_vm4, %v780_v41 }
 0x123   :  { %796 = vst.msk [vmem:[%s1626_s3 + $0x70] sm:$0xff] %vm781_vm4, %v779_v50 }

// kernel: image2latex_forward.5
= control target key start
LH: loop header
LB: loop body
LE: loop exit
PB: predicated region body
PF: predicated region fallthrough
CT: control target
= control target key end

     0   :  { %vm51_vm0 = vcmask 261120   ;;  %v5545_v0 = vmov 0.0|0.0   ;;  %vm5546_vm1 = vmmov 0   ;;  %v5547_v4 = vmov 0.0   ;;  %s5550_s20 = smov 48   ;;  %s5552_s25 = smov 64   ;;  %s6887_s2 = inlined_call_operand.vmem [shape: f32[32,32], index: 2, kind: input, shape index: {}]   ;;  %s6888_s1 = inlined_call_operand.vmem [shape: f32[2,16,32], index: 1, kind: input, shape index: {}]   ;;  %s6889_s4 = inlined_call_operand.vmem [shape: f32[32,32], index: 4, kind: input, shape index: {}]   ;;  %s6890_s6 = inlined_call_operand.vmem [shape: f32[32,32], index: 6, kind: input, shape index: {}]   ;;  %s6891_s8 = inlined_call_operand.vmem [shape: f32[32,32], index: 8, kind: input, shape index: {}]   ;;  %s6892_s3 = inlined_call_operand.vmem [shape: f32[1,32], index: 3, kind: input, shape index: {}]   ;;  %s6893_s7 = inlined_call_operand.vmem [shape: f32[1,32], index: 7, kind: input, shape index: {}]   ;;  %s6894_s9 = inlined_call_operand.vmem [shape: f32[1,32], index: 9, kind: input, shape index: {}]   ;;  %s6895_s10 = inlined_call_operand.vmem [shape: f32[80,128], index: 10, kind: input, shape index: {}]   ;;  %s6896_s0 = inlined_call_operand.vmem [shape: f32[8,2,16], index: 0, kind: input, shape index: {}]   ;;  %s6897_s11 = inlined_call_operand.vmem [shape: f32[1,128], index: 11, kind: input, shape index: {}]   ;;  %s6898_s5 = inlined_call_operand.vmem [shape: f32[1,32], index: 5, kind: input, shape index: {}]   ;;  %s6899_s12 = inlined_call_operand.vmem [shape: f32[64,128], index: 12, kind: input, shape index: {}]   ;;  %s6900_s13 = inlined_call_operand.vmem [shape: f32[1,128], index: 13, kind: input, shape index: {}]   ;;  %s6901_s14 = inlined_call_operand.vmem [shape: f32[2,1024], index: 14, kind: output, shape index: {}]  }
   0x1   :  { %4993 = vmatprep.subr.bf16.mxu0 %v5545_v0  ;;  %v73_v1 = vld [vmem:[%s6887_s2] sm:$0xff]  ;;  %v74_v2 = vld [vmem:[%s6887_s2 + $0x8] sm:$0xff]  ;;  %v75_v3 = vld [vmem:[%s6887_s2 + $0x10] sm:$0xff]  ;;  %4541 = vmatprep.mubr.msk.f32.mxu0 %vm5546_vm1, %v5547_v4  ;;  %vm86_vm2 = vcmask 1041409   ;;  %v5548_v62 = vmov 1966171168  }
   0x2   :  { %v4994_v5 = vpack.c.bf16 %v74_v2, %v73_v1  ;;  %v76_v6 = vld [vmem:[%s6887_s2 + $0x18] sm:$0xff]  ;;  %v5648_v7 = vld [vmem:[%s6888_s1] sm:$0xff]  ;;  %v5653_v8 = vld [vmem:[%s6888_s1 + $0x8] sm:$0xff]  ;;  %4999 = vmatprep.subr.bf16.mxu1 %v5545_v0  ;;  %4552 = vmatprep.mubr.msk.f32.mxu1 %vm5546_vm1, %v5547_v4  ;;  %v456_v63 = vunpack.c.l.s4 %v5548_v62  ;;  %v458_v1 = vlaneseq  ;;  %vm532_vm3 = vcmask 130112   ;;  %s5553_s26 = smov 32  }
   0x3   :  { %v5661_v9 = vld [vmem:[%s6888_s1 + $0x10] sm:$0xff]  ;;  %v5666_v10 = vld [vmem:[%s6888_s1 + $0x18] sm:$0xff]  ;;  %v52_v11 = vsel %vm51_vm0, %v5648_v7, 0.0  ;;  %v53_v12 = vsel %vm51_vm0, %v5653_v8, 0.0  ;;  %v161_v13 = vld [vmem:[%s6889_s4] sm:$0xff]  ;;  %v4997_v14 = vpack.c.bf16 %v76_v6, %v75_v3  ;;  %vm545_vm4 = vcmask 123904  }
   0x4   :  { %4995 = vmatpush3.bf16.msra.mxu0 %v4994_v5  ;;  %v54_v15 = vadd.f32 %v53_v12, %v52_v11  ;;  %v61_v16 = vsel %vm51_vm0, %v5661_v9, 0.0  ;;  %v62_v17 = vsel %vm51_vm0, %v5666_v10, 0.0  ;;  %v162_v18 = vld [vmem:[%s6889_s4 + $0x8] sm:$0xff]  ;;  %v163_v36 = vld [vmem:[%s6889_s4 + $0x10] sm:$0xff]  ;;  %v164_v37 = vld [vmem:[%s6889_s4 + $0x18] sm:$0xff]  ;;  %v457_v2 = vunpack.c.0.s8 %v456_v63 }
   0x5   :  { %4996 = vmatprep.subr.bf16.mxu0 %v5545_v0  ;;  %v63_v19 = vadd.f32 %v62_v17, %v61_v16  ;;  %v5000_v20 = vpack.c.bf16 %v162_v18, %v161_v13  ;;  %v5003_v38 = vpack.c.bf16 %v164_v37, %v163_v36  ;;  %v243_v39 = vld [vmem:[%s6890_s6] sm:$0xff]  ;;  %v244_v40 = vld [vmem:[%s6890_s6 + $0x8] sm:$0xff]  ;;  %v245_v41 = vld [vmem:[%s6890_s6 + $0x10] sm:$0xff]  ;;  %v5750_v3 = vshrl.u32 %v458_v1, 7 }
   0x6   :  { %v55_v21 = vrot.slane %v54_v15, 4  ;;  %v5005_v42 = vpack.c.bf16 %v244_v40, %v243_v39  ;;  %v355_v43 = vld [vmem:[%s6891_s8] sm:$0xff]  ;;  %v356_v44 = vld [vmem:[%s6891_s8 + $0x8] sm:$0xff]  ;;  %v246_v45 = vld [vmem:[%s6890_s6 + $0x18] sm:$0xff]  ;;  %vm678_vm5 = vcmask 130048   ;;  %vm680_vm6 = vcmask 392192  }
   0x7   :  { %v64_v22 = vrot.slane %v63_v19, 4  ;;  %5001 = vmatpush3.bf16.msra.mxu1 %v5000_v20  ;;  %v5713_v46 = vpack.c.bf16 %v356_v44, %v355_v43  ;;  %v5009_v47 = vpack.c.bf16 %v246_v45, %v245_v41  ;;  %v357_v48 = vld [vmem:[%s6891_s8 + $0x10] sm:$0xff]  ;;  %v358_v49 = vld [vmem:[%s6891_s8 + $0x18] sm:$0xff]  ;;  %v4264_v51 = vld [vmem:[%s6892_s3] ss:$0 sm:$0xff]  ;;  %v5753_v5 = vsub.s32 %v457_v2, %v5750_v3 }
   0x8   :  { %4998 = vmatpush3.bf16.msra.mxu0 %v4997_v14  ;;  %v56_v23 = vadd.f32 %v55_v21, %v54_v15  ;;  %5002 = vmatprep.subr.bf16.mxu1 %v5545_v0  ;;  %v5723_v50 = vpack.c.bf16 %v358_v49, %v357_v48  ;;  %v4272_v11 = vld [vmem:[%s6893_s7] ss:$0 sm:$0xff]  ;;  %v5760_v13 = vsub.s32 0, %v5750_v3  ;;  %v522_v41 = vand.u32 127, %v458_v1 }
   0x9   :  { %v65_v24 = vadd.f32 %v64_v22, %v63_v19  ;;  %5006 = vmatprep.subr.bf16.mxu0 %v5005_v42  ;;  %v5806_v62 = vsub.s32 1, %v5750_v3  ;;  %vm688_vm7 = vcmask 654336   ;;  %vm804_vm8 = vcmask 523264  }
   0xa   :  { %v57_v25 = vrot.slane %v56_v23, 2  ;;  %vm878_vm9 = vcmask 1041408  }
   0xb   :  { %v66_v26 = vrot.slane %v65_v24, 2  ;;  %5004 = vmatpush3.bf16.msra.mxu1 %v5003_v38 }
   0xc   :  { %v58_v27 = vadd.f32 %v57_v25, %v56_v23  ;;  %5013 = vmatprep.subr.bf16.mxu1 %v5545_v0 }
   0xd   :  { %v67_v28 = vadd.f32 %v66_v26, %v65_v24 }
   0xe   :  { %v59_v29 = vrot.slane %v58_v27, 1 }
   0xf   :  { %v68_v30 = vrot.slane %v67_v28, 1 }
  0x10   :  { %v60_v31 = vadd.f32 %v59_v29, %v58_v27 }
  0x11   :  { %v69_v32 = vadd.f32 %v68_v30, %v67_v28  ;;  %v5781_v28 = vld [vmem:[%s6894_s9] ss:$0 sm:$0xff] }
  0x12   :  { %v71_v33 = vmul.f32 0.0625, %v60_v31 }
  0x13   :  { %v72_v34 = vmul.f32 0.0625, %v69_v32 }
  0x15   :  { %v87_v35 = vsel %vm86_vm2, %v72_v34, %v71_v33 }
  0x16   :  { %4542 = vmatmul.mubr.msk.f32.vlgmr.msra.gmra.mrb[0].mxu0 %vm51_vm0, %v87_v35  ;;  %4553 = vmatmul.mubr.msk.f32.vlgmr.msra.gmra.mrb[0].mxu1 %vm51_vm0, %v87_v35 }
  0x17   :  { %4563 = vmatprep.mubr.msk.f32.mxu0 %vm51_vm0, %v5648_v7  ;;  %5008 = vmatpush3.bf16.msra.mxu0 %v5005_v42  ;;  %v527_v42 = vadd.s32 4294967288, %v522_v41 }
  0x18   :  { %5015 = vmatpush3.bf16.msra.mxu1 %v5713_v46  ;;  %5010 = vmatprep.subr.bf16.mxu0 %v5009_v47 }
  0x19   :  { %5016 = vmatprep.subr.bf16.mxu1 %v5545_v0  ;;  %4577 = vmatprep.mubr.msk.f32.mxu1 %vm5546_vm1, %v5547_v4  ;;  %v5792_v44 = vsub.s32 %v527_v42, %v5750_v3 }
  0x1b   :  { %5012 = vmatpush3.bf16.msra.mxu0 %v5009_v47  ;;  %v5795_v47 = vsub.s32 %v522_v41, %v5750_v3 }
  0x1c   :  { %5018 = vmatpush3.bf16.msra.mxu1 %v5723_v50  ;;  %5019 = vmatprep.subr.bf16.mxu0 %v5545_v0 }
  0x1d   :  { %5034 = vmatprep.subr.bf16.mxu1 %v5545_v0 }
  0x1e   :  { %4564 = vmatmul.mubr.msk.f32.vlgmr.msra.gmra.mrb[2].mxu0 %vm51_vm0, %v5653_v8 }
  0x1f   :  { %4566 = vmatprep.mubr.msk.f32.mxu0 %vm51_vm0, %v5661_v9 }
  0x22   :  { %4567 = vmatmul.mubr.msk.f32.gmra.mrb[4].mxu0 %vm51_vm0, %v5666_v10 }
  0x23   :  { %4600 = vmatprep.mubr.msk.f32.mxu0 %vm5546_vm1, %v5547_v4 }
  0xe9   :  { %v156_v52 = vpop.f32.mrb[0].mxu0  ;;  %v5748_v56 = vpop.f32.mrb[0].mxu1 }
  0xea   :  { %v157_v53 = vadd.f32 %v4264_v51, %v156_v52  ;;  %v4543_v54 = vpop.f32.mrb[1].mxu0  ;;  %v4554_v57 = vpop.f32.mrb[1].mxu1 }
  0xec   :  { %5289 = vtanh.f32 %v157_v53 }
  0xf1   :  { %v4565_v58 = vpop.f32.mrb[2].mxu0 }
  0xf2   :  { %v325_v59 = vpop.f32.mrb[3].mxu0  ;;  %v5763_v17 = vadd.f32 %v4565_v58, %v4272_v11 }
  0xf3   :  { %v5765_v18 = vadd.f32 %v4272_v11, %v325_v59 }
  0xf5   :  { %v4568_v60 = vpop.f32.mrb[4].mxu0 }
  0xf6   :  { %v5742_v55 = vpop.eup %5289  ;;  %v335_v61 = vpop.f32.mrb[5].mxu0  ;;  %v5769_v21 = vadd.f32 %v4568_v60, %v4272_v11 }
  0xf7   :  { %4578 = vmatmul.mubr.msk.f32.vlgmr.msra.gmra.mrb[2].mxu1 %vm51_vm0, %v5742_v55  ;;  %v5771_v22 = vadd.f32 %v4272_v11, %v335_v61  ;;  %v5549_v61 = vmov 0  }
  0xf8   :  { %4619 = vmatprep.mubr.msk.f32.mxu1 %vm5546_vm1, %v5547_v4  ;;  %5288 = vset.pattern.permute.xlu0 %v5549_v61 }
  0xf9   :  { %5287 = vset.pattern.permute.xlu1 %v5549_v61  ;;  %v366_v61 = vld [vmem:[%s6895_s10 + $0x30] sm:$0xff] }
 0x1ca   :  { %v450_v6 = vpop.f32.mrb[2].mxu1 }
 0x1cb   :  { %v461_v12 = vrot.slane %v450_v6, %v5753_v5  ;;  %v4579_v14 = vpop.f32.mrb[3].mxu1 }
 0x1cd   :  { %v462_v15 = vcombine.high %v461_v12, %v461_v12  ;;  %v469_v16 = vrot.slane %v461_v12, %v5753_v5 }
 0x1cf   :  { %v476_v19 = vrot.slane %v462_v15, %v5753_v5  ;;  %v480_v20 = vrot.slane %v469_v16, %v5760_v13 }
 0x1d1   :  { %v484_v23 = vrot.slane %v476_v19, %v5760_v13  ;;  %v488_v24 = vadd.f32 %v480_v20, %v5763_v17  ;;  %v487_v25 = vadd.f32 %v480_v20, %v5765_v18 }
 0x1d3   :  { %5291 = vtanh.f32 %v488_v24  ;;  %v489_v26 = vadd.f32 %v484_v23, %v5771_v22  ;;  %v490_v27 = vadd.f32 %v484_v23, %v5769_v21 }
 0x1d4   :  { %5293 = vtanh.f32 %v487_v25 }
 0x1d5   :  { %5295 = vtanh.f32 %v489_v26 }
 0x1d6   :  { %5297 = vtanh.f32 %v490_v27 }
 0x1dd   :  { %v5292_v29 = vpop.eup %5291 }
 0x1de   :  { %v5294_v30 = vpop.eup %5293  ;;  %v502_v36 = vmul.f32 %v5292_v29, %v5781_v28 }
 0x1df   :  { %v5296_v31 = vpop.eup %5295  ;;  %v501_v32 = vmul.f32 %v5294_v30, %v5781_v28 }
 0x1e0   :  { %v5298_v33 = vpop.eup %5297  ;;  %v503_v34 = vmul.f32 %v5296_v31, %v5781_v28  ;;  %v508_v39 = vsel %vm51_vm0, %v502_v36, 0.0 }
 0x1e1   :  { %v505_v35 = vsel %vm51_vm0, %v501_v32, 0.0  ;;  %v504_v38 = vmul.f32 %v5298_v33, %v5781_v28 }
 0x1e2   :  { %506 = vadd.xlane.f32.xlu0 %v505_v35  ;;  %v511_v37 = vsel %vm51_vm0, %v503_v34, 0.0 }
 0x1e3   :  { %512 = vadd.xlane.f32.xlu1 %v511_v37  ;;  %v514_v40 = vsel %vm51_vm0, %v504_v38, 0.0 }
 0x1e6   :  { %509 = vadd.xlane.f32.xlu0 %v508_v39 }
 0x1e7   :  { %515 = vadd.xlane.f32.xlu1 %v514_v40 }
 0x26f   :  { %v507_v43 = vpop.xlane.xlu0 %506 }
 0x270   :  { %v513_v45 = vpop.xlane.xlu1 %512  ;;  %v526_v52 = vrot.slane %v507_v43, %v5795_v47 }
 0x271   :  { %v537_v53 = vrot.slane %v513_v45, %v5795_v47 }
 0x273   :  { %v510_v48 = vpop.xlane.xlu0 %509 }
 0x274   :  { %v531_v49 = vrot.slane %v510_v48, %v5792_v44  ;;  %v516_v51 = vpop.xlane.xlu1 %515 }
 0x275   :  { %v541_v54 = vrot.slane %v516_v51, %v5792_v44 }
 0x276   :  { %v533_v57 = vsel %vm532_vm3, %v531_v49, %v526_v52  ;;  %v361_v52 = vld [vmem:[%s6895_s10 + $0x8] sm:$0xff] }
 0x277   :  { %v542_v58 = vsel %vm532_vm3, %v541_v54, %v537_v53  ;;  %v362_v53 = vld [vmem:[%s6895_s10 + $0x10] sm:$0xff] }
 0x278   :  { %v543_v59 = vsel %vm86_vm2, %v542_v58, %v533_v57  ;;  %v363_v57 = vld [vmem:[%s6895_s10 + $0x18] sm:$0xff]  ;;  %v364_v58 = vld [vmem:[%s6895_s10 + $0x20] sm:$0xff] }
 0x279   :  { %v546_v60 = vsel %vm545_vm4, %v543_v59, -inf  ;;  %v365_v59 = vld [vmem:[%s6895_s10 + $0x28] sm:$0xff] }
 0x27a   :  { %547 = vmax.xlane.f32.xlu0 %v546_v60  ;;  %v5846_v60 = vpack.c.bf16 %v365_v59, %v364_v58 }
 0x307   :  { %v548_v63 = vpop.xlane.xlu0 %547 }
 0x308   :  { %v553_v1 = vrot.slane %v548_v63, %v5760_v13  ;;  %v557_v2 = vrot.slane %v548_v63, %v5806_v62  ;;  %v367_v63 = vld [vmem:[%s6895_s10 + $0x38] sm:$0xff] }
 0x30a   :  { %v560_v6 = vsub.f32 %v507_v43, %v553_v1  ;;  %v561_v11 = vsub.f32 %v510_v48, %v553_v1  ;;  %v562_v12 = vsub.f32 %v513_v45, %v557_v2  ;;  %v563_v16 = vsub.f32 %v516_v51, %v557_v2  ;;  %v360_v51 = vld [vmem:[%s6895_s10] sm:$0xff] }
 0x30b   :  { %v5830_v54 = vpack.c.bf16 %v361_v52, %v360_v51  ;;  %v5856_v1 = vpack.c.bf16 %v367_v63, %v366_v61  ;;  %v368_v2 = vld [vmem:[%s6895_s10 + $0x40] sm:$0xff] }
 0x30c   :  { %v564_v14 = vmul.f32 1.442695, %v560_v6  ;;  %v566_v15 = vmul.f32 1.442695, %v561_v11  ;;  %v568_v19 = vmul.f32 1.442695, %v562_v12 }
 0x30d   :  { %v570_v20 = vmul.f32 1.442695, %v563_v16  ;;  %5021 = vmatpush3.bf16.msra.mxu0 %v5830_v54  ;;  %v369_v6 = vld [vmem:[%s6895_s10 + $0x48] sm:$0xff]  ;;  %s5551_s10 = smov 16  }
 0x30e   :  { %5299 = vpow2.f32 %v564_v14  ;;  %5022 = vmatprep.subr.bf16.mxu0 %v5545_v0  ;;  %v5866_v11 = vpack.c.bf16 %v369_v6, %v368_v2 }
 0x30f   :  { %5301 = vpow2.f32 %v566_v15 }
 0x310   :  { %5303 = vpow2.f32 %v568_v19 }
 0x311   :  { %5305 = vpow2.f32 %v570_v20 }
 0x318   :  { %v5300_v23 = vpop.eup %5299 }
 0x319   :  { %v5302_v3 = vpop.eup %5301  ;;  %577 = vperm.xlu1 %5287, %v5300_v23  }
 0x31a   :  { %580 = vperm.xlu0 %5288, %v5302_v3   ;;  %v5304_v24 = vpop.eup %5303 }
 0x31b   :  { %v5306_v25 = vpop.eup %5305 }
 0x31d   :  { %583 = vperm.xlu1 %5287, %v5304_v24  }
 0x321   :  { %586 = vperm.xlu1 %5287, %v5306_v25  }
 0x398   :  { %v578_v26 = vpop.permute.xlu1 %577 }
 0x399   :  { %v581_v27 = vpop.permute.xlu0 %580  ;;  %v591_v31 = vrot.slane %v578_v26, %v5795_v47 }
 0x39a   :  { %v595_v30 = vrot.slane %v581_v27, %v5792_v44 }
 0x39c   :  { %v584_v29 = vpop.permute.xlu1 %583  ;;  %v596_v35 = vsel %vm532_vm3, %v595_v30, %v591_v31 }
 0x39d   :  { %v600_v33 = vrot.slane %v584_v29, %v5795_v47 }
 0x3a0   :  { %v587_v32 = vpop.permute.xlu1 %586 }
 0x3a1   :  { %v604_v34 = vrot.slane %v587_v32, %v5792_v44 }
 0x3a3   :  { %v605_v36 = vsel %vm532_vm3, %v604_v34, %v600_v33 }
 0x3a4   :  { %v606_v37 = vsel %vm86_vm2, %v605_v36, %v596_v35 }
 0x3a5   :  { %v608_v38 = vsel %vm545_vm4, %v606_v37, 0.0 }
 0x3a6   :  { %609 = vadd.xlane.f32.xlu1 %v608_v38 }
 0x433   :  { %v610_v39 = vpop.xlane.xlu1 %609 }
 0x434   :  { %5307 = vrcp.f32 %v610_v39 }
 0x43e   :  { %v5308_v40 = vpop.eup %5307 }
 0x43f   :  { %v616_v41 = vrot.slane %v5308_v40, %v5760_v13  ;;  %v620_v45 = vrot.slane %v5308_v40, %v5806_v62 }
 0x441   :  { %v623_v42 = vmul.f32 %v5300_v23, %v616_v41  ;;  %v624_v43 = vmul.f32 %v5302_v3, %v616_v41  ;;  %v625_v48 = vmul.f32 %v5304_v24, %v620_v45  ;;  %v626_v49 = vmul.f32 %v5306_v25, %v620_v45  ;;  %v380_v45 = vld [vmem:[%s6896_s0] sm:$0x3] }
 0x443   :  { %629 = vperm.xlu0 %5288, %v623_v42  }
 0x447   :  { %634 = vperm.xlu0 %5288, %v624_v43  }
 0x44b   :  { %639 = vperm.xlu0 %5288, %v625_v48  }
 0x44f   :  { %644 = vperm.xlu0 %5288, %v626_v49  }
 0x453   :  { %675 = vrot.lane.b32.xlu0 %v5742_v55, %s5550_s20  ;;  %v5836_v55 = vpack.c.bf16 %v363_v57, %v362_v53  ;;  %v5905_v53 = vld [vmem:[%s6897_s11] ss:$0 sm:$0xff] }
 0x454   :  { %v4266_v57 = vld [vmem:[%s6898_s5] ss:$0 sm:$0xff] }
 0x455   :  { %5024 = vmatpush3.bf16.msra.mxu0 %v5836_v55  ;;  %v239_v63 = vadd.f32 %v4266_v57, %v5748_v56 }
 0x456   :  { %5025 = vmatprep.subr.bf16.mxu0 %v5545_v0 }
 0x459   :  { %5027 = vmatpush3.bf16.msra.mxu0 %v5846_v60 }
 0x45a   :  { %5028 = vmatprep.subr.bf16.mxu0 %v5545_v0 }
 0x45d   :  { %5030 = vmatpush3.bf16.msra.mxu0 %v5856_v1 }
 0x45e   :  { %5031 = vmatprep.subr.bf16.mxu0 %v5545_v0 }
 0x461   :  { %5033 = vmatpush3.bf16.msra.mxu0 %v5866_v11 }
 0x462   :  { %5052 = vmatprep.subr.bf16.mxu0 %v5545_v0 }
 0x4c2   :  { %v630_v12 = vpop.permute.xlu0 %629 }
 0x4c3   :  { %v647_v14 = vmul.f32 %v630_v12, %v5648_v7 }
 0x4c5   :  { %v651_v19 = vsel %vm51_vm0, %v647_v14, 0.0 }
 0x4c6   :  { %v635_v15 = vpop.permute.xlu0 %634 }
 0x4c7   :  { %v648_v16 = vmul.f32 %v635_v15, %v5653_v8 }
 0x4c9   :  { %v652_v20 = vsel %vm51_vm0, %v648_v16, 0.0 }
 0x4ca   :  { %v653_v23 = vadd.f32 %v652_v20, %v651_v19  ;;  %v640_v3 = vpop.permute.xlu0 %639 }
 0x4cb   :  { %v649_v25 = vmul.f32 %v640_v3, %v5661_v9 }
 0x4cc   :  { %v654_v24 = vrot.slane %v653_v23, 4 }
 0x4cd   :  { %v660_v30 = vsel %vm51_vm0, %v649_v25, 0.0  ;;  %v371_v25 = vld [vmem:[%s6899_s12] sm:$0xff] }
 0x4ce   :  { %v655_v26 = vadd.f32 %v654_v24, %v653_v23  ;;  %v645_v27 = vpop.permute.xlu0 %644 }
 0x4cf   :  { %v650_v29 = vmul.f32 %v645_v27, %v5666_v10  ;;  %v373_v27 = vld [vmem:[%s6899_s12 + $0x10] sm:$0xff] }
 0x4d0   :  { %v656_v32 = vrot.slane %v655_v26, 2 }
 0x4d1   :  { %v661_v31 = vsel %vm51_vm0, %v650_v29, 0.0 }
 0x4d2   :  { %v662_v33 = vadd.f32 %v661_v31, %v660_v30  ;;  %v657_v36 = vadd.f32 %v656_v32, %v655_v26  ;;  %v676_v49 = vpop.permute.xlu0 %675  ;;  %v372_v26 = vld [vmem:[%s6899_s12 + $0x8] sm:$0xff]  ;;  %v374_v30 = vld [vmem:[%s6899_s12 + $0x18] sm:$0xff]  ;;  %v375_v32 = vld [vmem:[%s6899_s12 + $0x20] sm:$0xff] }
 0x4d3   :  { %v5927_v29 = vpack.c.bf16 %v372_v26, %v371_v25  ;;  %v5933_v31 = vpack.c.bf16 %v374_v30, %v373_v27 }
 0x4d4   :  { %v663_v34 = vrot.slane %v662_v33, 4  ;;  %v658_v38 = vrot.slane %v657_v36, 1 }
 0x4d5   :  { %5036 = vmatpush3.bf16.msra.mxu1 %v5927_v29 }
 0x4d6   :  { %v664_v35 = vadd.f32 %v663_v34, %v662_v33  ;;  %v659_v41 = vadd.f32 %v658_v38, %v657_v36  ;;  %5037 = vmatprep.subr.bf16.mxu1 %v5545_v0  ;;  %v376_v33 = vld [vmem:[%s6899_s12 + $0x28] sm:$0xff]  ;;  %v377_v36 = vld [vmem:[%s6899_s12 + $0x30] sm:$0xff] }
 0x4d7   :  { %v5943_v34 = vpack.c.bf16 %v376_v33, %v375_v32 }
 0x4d8   :  { %v665_v37 = vrot.slane %v664_v35, 2 }
 0x4d9   :  { %5039 = vmatpush3.bf16.msra.mxu1 %v5933_v31 }
 0x4da   :  { %v666_v39 = vadd.f32 %v665_v37, %v664_v35  ;;  %5040 = vmatprep.subr.bf16.mxu1 %v5545_v0  ;;  %v378_v37 = vld [vmem:[%s6899_s12 + $0x38] sm:$0xff]  ;;  %s5554_s12 = smov 80  }
 0x4db   :  { %v5954_v38 = vpack.c.bf16 %v378_v37, %v377_v36 }
 0x4dc   :  { %v667_v40 = vrot.slane %v666_v39, 1 }
 0x4dd   :  { %5042 = vmatpush3.bf16.msra.mxu1 %v5943_v34 }
 0x4de   :  { %v668_v42 = vadd.f32 %v667_v40, %v666_v39  ;;  %5043 = vmatprep.subr.bf16.mxu1 %v5545_v0 }
 0x4e0   :  { %v5880_v43 = vsel %vm86_vm2, %v668_v42, %v659_v41 }
 0x4e1   :  { %672 = vrot.lane.b32.xlu1 %v5880_v43, %s5551_s10  ;;  %5045 = vmatpush3.bf16.msra.mxu1 %v5954_v38 }
 0x4e2   :  { %5046 = vmatprep.subr.bf16.mxu1 %v5545_v0 }
 0x553   :  { %v673_v48 = vpop.permute.xlu1 %672 }
 0x554   :  { %v679_v51 = vsel %vm678_vm5, %v380_v45, %v673_v48 }
 0x555   :  { %v681_v52 = vsel %vm680_vm6, %v679_v51, %v676_v49 }
 0x556   :  { %4601 = vmatmul.mubr.msk.f32.vlgmr.msra.gmra.mrb[6].mxu0 %vm688_vm7, %v681_v52 }
 0x557   :  { %5054 = vmatpush3.bf16.msra.mxu0 %v5830_v54  ;;  %4653 = vmatprep.mubr.msk.f32.mxu0 %vm5546_vm1, %v5547_v4 }
 0x558   :  { %5055 = vmatprep.subr.bf16.mxu0 %v5545_v0 }
 0x55b   :  { %5057 = vmatpush3.bf16.msra.mxu0 %v5836_v55 }
 0x55c   :  { %5058 = vmatprep.subr.bf16.mxu0 %v5545_v0 }
 0x55f   :  { %5060 = vmatpush3.bf16.msra.mxu0 %v5846_v60 }
 0x560   :  { %5061 = vmatprep.subr.bf16.mxu0 %v5545_v0 }
 0x563   :  { %5063 = vmatpush3.bf16.msra.mxu0 %v5856_v1 }
 0x564   :  { %5064 = vmatprep.subr.bf16.mxu0 %v5545_v0 }
 0x567   :  { %5066 = vmatpush3.bf16.msra.mxu0 %v5866_v11 }
 0x568   :  { %5079 = vmatprep.subr.bf16.mxu0 %v5545_v0 }
 0x629   :  { %v758_v58 = vpop.f32.mrb[6].mxu0 }
 0x62a   :  { %v759_v59 = vadd.f32 %v5905_v53, %v758_v58  ;;  %v4602_v61 = vpop.f32.mrb[7].mxu0 }
 0x62c   :  { %5309 = vtanh.f32 %v759_v59  ;;  %v4277_v12 = vmul.f32 -1.442695, %v759_v59 }
 0x62d   :  { %5311 = vtanh.f32 %v239_v63 }
 0x62e   :  { %5313 = vpow2.f32 %v4277_v12 }
 0x636   :  { %v5310_v2 = vpop.eup %5309 }
 0x637   :  { %775 = vrot.lane.b32.xlu0 %v5310_v2, %s5552_s25  ;;  %v5312_v6 = vpop.eup %5311 }
 0x638   :  { %v5314_v14 = vpop.eup %5313 }
 0x639   :  { %v765_v15 = vadd.f32 1.0, %v5314_v14 }
 0x63b   :  { %770 = vrot.lane.b32.xlu0 %v5312_v6, %s5553_s26  ;;  %5315 = vrcp.f32 %v765_v15 }
 0x645   :  { %v5316_v16 = vpop.eup %5315 }
 0x6a9   :  { %v776_v19 = vpop.permute.xlu0 %775 }
 0x6aa   :  { %v778_v20 = vmul.f32 %v5316_v16, %v776_v19 }
 0x6ac   :  { %780 = vrot.lane.b32.xlu0 %v778_v20, %s5553_s26 }
 0x6ad   :  { %v771_v56 = vpop.permute.xlu0 %770 }
 0x6ae   :  { %v773_v23 = vmul.f32 %v5316_v16, %v771_v56 }
 0x71e   :  { %v781_v3 = vpop.permute.xlu0 %780 }
 0x71f   :  { %v5915_v24 = vadd.f32 %v781_v3, %v773_v23 }
 0x721   :  { %5317 = vtanh.f32 %v5915_v24 }
 0x72b   :  { %v5318_v35 = vpop.eup %5317 }
 0x72c   :  { %786 = vrot.lane.b32.xlu1 %v5318_v35, %s5552_s25 }
 0x730   :  { %794 = vrot.lane.b32.xlu1 %v5880_v43, %s5553_s26 }
 0x79e   :  { %v787_v39 = vpop.permute.xlu1 %786 }
 0x79f   :  { %v5961_v40 = vmul.f32 %v5316_v16, %v787_v39 }
 0x7a1   :  { %791 = vrot.lane.b32.xlu0 %v5961_v40, %s5553_s26 }
 0x7a2   :  { %v795_v41 = vpop.permute.xlu1 %794 }
 0x813   :  { %v792_v42 = vpop.permute.xlu0 %791 }
 0x814   :  { %v797_v45 = vsel %vm51_vm0, %v792_v42, %v795_v41 }
 0x815   :  { %4620 = vmatmul.mubr.msk.f32.vlgmr.msra.gmra.mrb[4].mxu1 %vm804_vm8, %v797_v45 }
 0x816   :  { %5048 = vmatpush3.bf16.msra.mxu1 %v5713_v46  ;;  %4630 = vmatprep.mubr.msk.f32.mxu1 %vm5546_vm1, %v5547_v4 }
 0x817   :  { %5049 = vmatprep.subr.bf16.mxu1 %v5545_v0 }
 0x81a   :  { %5051 = vmatpush3.bf16.msra.mxu1 %v5723_v50 }
 0x81b   :  { %5067 = vmatprep.subr.bf16.mxu1 %v5545_v0 }
 0x81d   :  { %4631 = vmatmul.mubr.msk.f32.vlgmr.msra.gmra.mrb[6].mxu1 %vm51_vm0, %v792_v42 }
 0x81e   :  { %5069 = vmatpush3.bf16.msra.mxu1 %v5927_v29  ;;  %4672 = vmatprep.mubr.msk.f32.mxu1 %vm5546_vm1, %v5547_v4 }
 0x81f   :  { %5070 = vmatprep.subr.bf16.mxu1 %v5545_v0 }
 0x822   :  { %5072 = vmatpush3.bf16.msra.mxu1 %v5933_v31 }
 0x823   :  { %5073 = vmatprep.subr.bf16.mxu1 %v5545_v0 }
 0x826   :  { %5075 = vmatpush3.bf16.msra.mxu1 %v5943_v34 }
 0x827   :  { %5076 = vmatprep.subr.bf16.mxu1 %v5545_v0 }
 0x82a   :  { %5078 = vmatpush3.bf16.msra.mxu1 %v5954_v38 }
 0x82b   :  { %5085 = vmatprep.subr.bf16.mxu1 %v5545_v0 }
 0x8e8   :  { %v5984_v43 = vpop.f32.mrb[4].mxu1 }
 0x8e9   :  { %v4621_v48 = vpop.f32.mrb[5].mxu1 }
 0x8f0   :  { %v963_v49 = vpop.f32.mrb[6].mxu1 }
 0x8f1   :  { %v974_v51 = vrot.slane %v963_v49, %v5753_v5  ;;  %v4632_v52 = vpop.f32.mrb[7].mxu1 }
 0x8f3   :  { %v975_v57 = vcombine.high %v974_v51, %v974_v51  ;;  %v982_v58 = vrot.slane %v974_v51, %v5753_v5 }
 0x8f5   :  { %v989_v59 = vrot.slane %v975_v57, %v5753_v5  ;;  %v993_v61 = vrot.slane %v982_v58, %v5760_v13 }
 0x8f7   :  { %v997_v63 = vrot.slane %v989_v59, %v5760_v13  ;;  %v1000_v2 = vadd.f32 %v993_v61, %v5765_v18  ;;  %v1001_v6 = vadd.f32 %v993_v61, %v5763_v17 }
 0x8f9   :  { %v1002_v12 = vadd.f32 %v997_v63, %v5771_v22  ;;  %v1003_v14 = vadd.f32 %v997_v63, %v5769_v21  ;;  %5319 = vtanh.f32 %v1000_v2 }
 0x8fa   :  { %5321 = vtanh.f32 %v1001_v6 }
 0x8fb   :  { %5323 = vtanh.f32 %v1002_v12 }
 0x8fc   :  { %5325 = vtanh.f32 %v1003_v14 }
 0x903   :  { %v5320_v15 = vpop.eup %5319 }
 0x904   :  { %v5322_v16 = vpop.eup %5321  ;;  %v1008_v19 = vmul.f32 %v5320_v15, %v5781_v28 }
 0x905   :  { %v5324_v20 = vpop.eup %5323  ;;  %v1009_v56 = vmul.f32 %v5322_v16, %v5781_v28 }
 0x906   :  { %v1012_v23 = vsel %vm51_vm0, %v1008_v19, 0.0  ;;  %v1010_v3 = vmul.f32 %v5324_v20, %v5781_v28  ;;  %v5326_v25 = vpop.eup %5325 }
 0x907   :  { %v1015_v26 = vsel %vm51_vm0, %v1009_v56, 0.0  ;;  %1013 = vadd.xlane.f32.xlu0 %v1012_v23  ;;  %v1011_v30 = vmul.f32 %v5326_v25, %v5781_v28 }
 0x908   :  { %1016 = vadd.xlane.f32.xlu1 %v1015_v26  ;;  %v1018_v27 = vsel %vm51_vm0, %v1010_v3, 0.0 }
 0x909   :  { %v1021_v32 = vsel %vm51_vm0, %v1011_v30, 0.0 }
 0x90b   :  { %1019 = vadd.xlane.f32.xlu0 %v1018_v27 }
 0x90f   :  { %1022 = vadd.xlane.f32.xlu0 %v1021_v32 }
 0x994   :  { %v1014_v33 = vpop.xlane.xlu0 %1013 }
 0x995   :  { %v1017_v35 = vpop.xlane.xlu1 %1016  ;;  %v1031_v39 = vrot.slane %v1014_v33, %v5795_v47 }
 0x996   :  { %v1035_v37 = vrot.slane %v1017_v35, %v5792_v44 }
 0x998   :  { %v1020_v36 = vpop.xlane.xlu0 %1019  ;;  %v1036_v48 = vsel %vm532_vm3, %v1035_v37, %v1031_v39 }
 0x999   :  { %v1040_v42 = vrot.slane %v1020_v36, %v5795_v47 }
 0x99c   :  { %v1023_v41 = vpop.xlane.xlu0 %1022 }
 0x99d   :  { %v1044_v45 = vrot.slane %v1023_v41, %v5792_v44 }
 0x99f   :  { %v1045_v49 = vsel %vm532_vm3, %v1044_v45, %v1040_v42 }
 0x9a0   :  { %v1046_v51 = vsel %vm86_vm2, %v1045_v49, %v1036_v48 }
 0x9a1   :  { %v1048_v52 = vsel %vm545_vm4, %v1046_v51, -inf }
 0x9a2   :  { %1049 = vmax.xlane.f32.xlu1 %v1048_v52 }
 0xa2f   :  { %v1050_v57 = vpop.xlane.xlu1 %1049 }
 0xa30   :  { %v1055_v58 = vrot.slane %v1050_v57, %v5760_v13  ;;  %v1059_v59 = vrot.slane %v1050_v57, %v5806_v62 }
 0xa32   :  { %v1062_v61 = vsub.f32 %v1014_v33, %v1055_v58  ;;  %v1063_v63 = vsub.f32 %v1017_v35, %v1055_v58  ;;  %v1065_v2 = vsub.f32 %v1023_v41, %v1059_v59  ;;  %v1064_v6 = vsub.f32 %v1020_v36, %v1059_v59 }
 0xa34   :  { %v1066_v12 = vmul.f32 1.442695, %v1062_v61  ;;  %v1068_v14 = vmul.f32 1.442695, %v1063_v63  ;;  %v1072_v15 = vmul.f32 1.442695, %v1065_v2 }
 0xa35   :  { %v1070_v16 = vmul.f32 1.442695, %v1064_v6 }
 0xa36   :  { %5327 = vpow2.f32 %v1066_v12 }
 0xa37   :  { %5329 = vpow2.f32 %v1068_v14 }
 0xa38   :  { %5331 = vpow2.f32 %v1072_v15 }
 0xa39   :  { %5333 = vpow2.f32 %v1070_v16 }
 0xa40   :  { %v5328_v19 = vpop.eup %5327 }
 0xa41   :  { %v5330_v20 = vpop.eup %5329  ;;  %1079 = vperm.xlu0 %5288, %v5328_v19  }
 0xa42   :  { %1082 = vperm.xlu1 %5287, %v5330_v20   ;;  %v5332_v56 = vpop.eup %5331 }
 0xa43   :  { %v5334_v23 = vpop.eup %5333 }
 0xa45   :  { %1088 = vperm.xlu0 %5288, %v5332_v56  }
 0xa46   :  { %1085 = vperm.xlu1 %5287, %v5334_v23  }
 0xac0   :  { %v1080_v3 = vpop.permute.xlu0 %1079 }
 0xac1   :  { %v1083_v25 = vpop.permute.xlu1 %1082  ;;  %v1093_v27 = vrot.slane %v1080_v3, %v5795_v47 }
 0xac2   :  { %v1097_v26 = vrot.slane %v1083_v25, %v5792_v44 }
 0xac4   :  { %v1089_v30 = vpop.permute.xlu0 %1088  ;;  %v1098_v36 = vsel %vm532_vm3, %v1097_v26, %v1093_v27 }
 0xac5   :  { %v1086_v32 = vpop.permute.xlu1 %1085  ;;  %v1106_v33 = vrot.slane %v1089_v30, %v5792_v44 }
 0xac6   :  { %v1102_v35 = vrot.slane %v1086_v32, %v5795_v47 }
 0xac8   :  { %v1107_v37 = vsel %vm532_vm3, %v1106_v33, %v1102_v35 }
 0xac9   :  { %v1108_v39 = vsel %vm86_vm2, %v1107_v37, %v1098_v36 }
 0xaca   :  { %v1110_v41 = vsel %vm545_vm4, %v1108_v39, 0.0 }
 0xacb   :  { %1111 = vadd.xlane.f32.xlu1 %v1110_v41  ;;  %v4280_v41 = vld [vmem:[%s6896_s0 + $0x2] sm:$0x3] }
 0xb58   :  { %v1112_v42 = vpop.xlane.xlu1 %1111 }
 0xb59   :  { %5335 = vrcp.f32 %v1112_v42 }
 0xb63   :  { %v5336_v45 = vpop.eup %5335 }
 0xb64   :  { %v1118_v48 = vrot.slane %v5336_v45, %v5760_v13  ;;  %v1122_v52 = vrot.slane %v5336_v45, %v5806_v62 }
 0xb66   :  { %v1125_v49 = vmul.f32 %v5328_v19, %v1118_v48  ;;  %v1126_v51 = vmul.f32 %v5330_v20, %v1118_v48  ;;  %v1127_v57 = vmul.f32 %v5334_v23, %v1122_v52  ;;  %v1128_v58 = vmul.f32 %v5332_v56, %v1122_v52 }
 0xb68   :  { %1131 = vperm.xlu0 %5288, %v1125_v49  }
 0xb6c   :  { %1136 = vperm.xlu0 %5288, %v1126_v51  }
 0xb70   :  { %1141 = vperm.xlu0 %5288, %v1127_v57  }
 0xb74   :  { %1146 = vperm.xlu0 %5288, %v1128_v58  }
 0xbe7   :  { %v1132_v59 = vpop.permute.xlu0 %1131 }
 0xbe8   :  { %v1149_v61 = vmul.f32 %v1132_v59, %v5648_v7 }
 0xbea   :  { %v1153_v6 = vsel %vm51_vm0, %v1149_v61, 0.0 }
 0xbeb   :  { %v1137_v63 = vpop.permute.xlu0 %1136 }
 0xbec   :  { %v1150_v2 = vmul.f32 %v1137_v63, %v5653_v8 }
 0xbee   :  { %v1154_v12 = vsel %vm51_vm0, %v1150_v2, 0.0 }
 0xbef   :  { %v1155_v14 = vadd.f32 %v1154_v12, %v1153_v6  ;;  %v1142_v15 = vpop.permute.xlu0 %1141 }
 0xbf0   :  { %v1151_v19 = vmul.f32 %v1142_v15, %v5661_v9 }
 0xbf1   :  { %v1156_v16 = vrot.slane %v1155_v14, 4 }
 0xbf2   :  { %v1162_v3 = vsel %vm51_vm0, %v1151_v19, 0.0 }
 0xbf3   :  { %v1157_v20 = vadd.f32 %v1156_v16, %v1155_v14  ;;  %v1147_v23 = vpop.permute.xlu0 %1146 }
 0xbf4   :  { %v1152_v56 = vmul.f32 %v1147_v23, %v5666_v10 }
 0xbf5   :  { %v1158_v25 = vrot.slane %v1157_v20, 2 }
 0xbf6   :  { %v1163_v7 = vsel %vm51_vm0, %v1152_v56, 0.0 }
 0xbf7   :  { %v1164_v26 = vadd.f32 %v1163_v7, %v1162_v3  ;;  %v1159_v30 = vadd.f32 %v1158_v25, %v1157_v20 }
 0xbf9   :  { %v1165_v8 = vrot.slane %v1164_v26, 4  ;;  %v1160_v33 = vrot.slane %v1159_v30, 1 }
 0xbfb   :  { %v1166_v27 = vadd.f32 %v1165_v8, %v1164_v26  ;;  %v1161_v37 = vadd.f32 %v1160_v33, %v1159_v30 }
 0xbfd   :  { %v1167_v32 = vrot.slane %v1166_v27, 2 }
 0xbff   :  { %v1168_v35 = vadd.f32 %v1167_v32, %v1166_v27 }
 0xc01   :  { %v1169_v36 = vrot.slane %v1168_v35, 1 }
 0xc03   :  { %v1170_v39 = vadd.f32 %v1169_v36, %v1168_v35 }
 0xc05   :  { %v6032_v9 = vsel %vm86_vm2, %v1170_v39, %v1161_v37 }
 0xc06   :  { %1174 = vrot.lane.b32.xlu0 %v6032_v9, %s5551_s10 }
 0xc0a   :  { %1177 = vrot.lane.b32.xlu0 %v5961_v40, %s5554_s12 }
 0xc78   :  { %v1175_v10 = vpop.permute.xlu0 %1174 }
 0xc79   :  { %v1180_v42 = vsel %vm678_vm5, %v4280_v41, %v1175_v10 }
 0xc7c   :  { %v1178_v45 = vpop.permute.xlu0 %1177 }
 0xc7d   :  { %v1181_v48 = vsel %vm680_vm6, %v1180_v42, %v1178_v45 }
 0xc7e   :  { %4654 = vmatmul.mubr.msk.f32.vlgmr.msra.gmra.mrb[8].mxu0 %vm688_vm7, %v1181_v48 }
 0xc7f   :  { %5081 = vmatpush3.bf16.msra.mxu0 %v5713_v46  ;;  %4683 = vmatprep.mubr.msk.f32.mxu0 %vm5546_vm1, %v5547_v4 }
 0xc80   :  { %5082 = vmatprep.subr.bf16.mxu0 %v5545_v0 }
 0xc83   :  { %5084 = vmatpush3.bf16.msra.mxu0 %v5723_v50 }
 0xc84   :  { %5100 = vmatprep.subr.bf16.mxu0 %v5545_v0 }
 0xd51   :  { %v1251_v40 = vpop.f32.mrb[8].mxu0 }
 0xd52   :  { %v1252_v49 = vadd.f32 %v5905_v53, %v1251_v40  ;;  %v4655_v51 = vpop.f32.mrb[9].mxu0 }
 0xd54   :  { %5337 = vtanh.f32 %v1252_v49  ;;  %v4283_v57 = vmul.f32 -1.442695, %v1252_v49 }
 0xd56   :  { %5339 = vpow2.f32 %v4283_v57 }
 0xd5e   :  { %v5338_v52 = vpop.eup %5337 }
 0xd5f   :  { %1264 = vrot.lane.b32.xlu0 %v5338_v52, %s5552_s25 }
 0xd60   :  { %v5340_v58 = vpop.eup %5339 }
 0xd61   :  { %v1258_v59 = vadd.f32 1.0, %v5340_v58 }
 0xd63   :  { %5341 = vrcp.f32 %v1258_v59 }
 0xd6d   :  { %v5342_v61 = vpop.eup %5341 }
 0xd6e   :  { %v1262_v6 = vmul.f32 %v5342_v61, %v5915_v24 }
 0xdd1   :  { %v1265_v63 = vpop.permute.xlu0 %1264 }
 0xdd2   :  { %v1267_v2 = vmul.f32 %v5342_v61, %v1265_v63 }
 0xdd4   :  { %1269 = vrot.lane.b32.xlu0 %v1267_v2, %s5553_s26 }
 0xe46   :  { %v1270_v12 = vpop.permute.xlu0 %1269 }
 0xe47   :  { %v6054_v14 = vadd.f32 %v1270_v12, %v1262_v6 }
 0xe49   :  { %5343 = vtanh.f32 %v6054_v14 }
 0xe53   :  { %v5344_v15 = vpop.eup %5343 }
 0xe54   :  { %1275 = vrot.lane.b32.xlu0 %v5344_v15, %s5552_s25 }
 0xec6   :  { %v1276_v16 = vpop.permute.xlu0 %1275 }
 0xec7   :  { %v6058_v19 = vmul.f32 %v5342_v61, %v1276_v16 }
 0xec9   :  { %1280 = vrot.lane.b32.xlu1 %v6058_v19, %s5553_s26 }
 0xf3b   :  { %v6062_v20 = vpop.permute.xlu1 %1280 }
 0xf3c   :  { %4684 = vmatmul.mubr.msk.f32.vlgmr.msra.gmra.mrb[10].mxu0 %vm51_vm0, %v6062_v20 }
 0xf3d   :  { %5102 = vmatpush3.bf16.msra.mxu0 %v5927_v29  ;;  %4725 = vmatprep.mubr.msk.f32.mxu0 %vm5546_vm1, %v5547_v4 }
 0xf3e   :  { %5103 = vmatprep.subr.bf16.mxu0 %v5545_v0 }
 0xf41   :  { %5105 = vmatpush3.bf16.msra.mxu0 %v5933_v31 }
 0xf42   :  { %5106 = vmatprep.subr.bf16.mxu0 %v5545_v0 }
 0xf45   :  { %5108 = vmatpush3.bf16.msra.mxu0 %v5943_v34 }
 0xf46   :  { %5109 = vmatprep.subr.bf16.mxu0 %v5545_v0 }
 0xf49   :  { %5111 = vmatpush3.bf16.msra.mxu0 %v5954_v38 }
 0xf4a   :  { %5118 = vmatprep.subr.bf16.mxu0 %v5545_v0 }
0x100f   :  { %v1444_v24 = vpop.f32.mrb[10].mxu0 }
0x1010   :  { %v1455_v23 = vrot.slane %v1444_v24, %v5753_v5  ;;  %v4685_v56 = vpop.f32.mrb[11].mxu0 }
0x1012   :  { %v1456_v3 = vcombine.high %v1455_v23, %v1455_v23  ;;  %v1463_v7 = vrot.slane %v1455_v23, %v5753_v5 }
0x1014   :  { %v1470_v25 = vrot.slane %v1456_v3, %v5753_v5  ;;  %v1474_v26 = vrot.slane %v1463_v7, %v5760_v13 }
0x1016   :  { %v1478_v8 = vrot.slane %v1470_v25, %v5760_v13  ;;  %v1481_v27 = vadd.f32 %v1474_v26, %v5765_v18  ;;  %v1482_v30 = vadd.f32 %v1474_v26, %v5763_v17 }
0x1018   :  { %v1483_v32 = vadd.f32 %v1478_v8, %v5771_v22  ;;  %v1484_v33 = vadd.f32 %v1478_v8, %v5769_v21  ;;  %5345 = vtanh.f32 %v1481_v27 }
0x1019   :  { %5347 = vtanh.f32 %v1482_v30 }
0x101a   :  { %5349 = vtanh.f32 %v1483_v32 }
0x101b   :  { %5351 = vtanh.f32 %v1484_v33 }
0x1022   :  { %v5346_v35 = vpop.eup %5345 }
0x1023   :  { %v5348_v36 = vpop.eup %5347  ;;  %v1489_v37 = vmul.f32 %v5346_v35, %v5781_v28 }
0x1024   :  { %v5350_v39 = vpop.eup %5349  ;;  %v1490_v10 = vmul.f32 %v5348_v36, %v5781_v28 }
0x1025   :  { %v1493_v41 = vsel %vm51_vm0, %v1489_v37, 0.0  ;;  %v1491_v42 = vmul.f32 %v5350_v39, %v5781_v28  ;;  %v5352_v45 = vpop.eup %5351 }
0x1026   :  { %v1496_v48 = vsel %vm51_vm0, %v1490_v10, 0.0  ;;  %1494 = vadd.xlane.f32.xlu0 %v1493_v41  ;;  %v1492_v49 = vmul.f32 %v5352_v45, %v5781_v28 }
0x1027   :  { %1497 = vadd.xlane.f32.xlu1 %v1496_v48  ;;  %v1499_v40 = vsel %vm51_vm0, %v1491_v42, 0.0 }
0x1028   :  { %v1502_v51 = vsel %vm51_vm0, %v1492_v49, 0.0 }
0x102a   :  { %1500 = vadd.xlane.f32.xlu0 %v1499_v40 }
0x102e   :  { %1503 = vadd.xlane.f32.xlu0 %v1502_v51 }
0x10b3   :  { %v1495_v52 = vpop.xlane.xlu0 %1494 }
0x10b4   :  { %v1498_v57 = vpop.xlane.xlu1 %1497  ;;  %v1512_v61 = vrot.slane %v1495_v52, %v5795_v47 }
0x10b5   :  { %v1516_v59 = vrot.slane %v1498_v57, %v5792_v44 }
0x10b7   :  { %v1501_v58 = vpop.xlane.xlu0 %1500  ;;  %v1517_v12 = vsel %vm532_vm3, %v1516_v59, %v1512_v61 }
0x10b8   :  { %v1521_v2 = vrot.slane %v1501_v58, %v5795_v47 }
0x10bb   :  { %v1504_v63 = vpop.xlane.xlu0 %1503 }
0x10bc   :  { %v1525_v6 = vrot.slane %v1504_v63, %v5792_v44 }
0x10be   :  { %v1526_v28 = vsel %vm532_vm3, %v1525_v6, %v1521_v2 }
0x10bf   :  { %v1527_v15 = vsel %vm86_vm2, %v1526_v28, %v1517_v12 }
0x10c0   :  { %v1529_v16 = vsel %vm545_vm4, %v1527_v15, -inf }
0x10c1   :  { %1530 = vmax.xlane.f32.xlu0 %v1529_v16 }
0x114e   :  { %v1531_v24 = vpop.xlane.xlu0 %1530 }
0x114f   :  { %v1536_v23 = vrot.slane %v1531_v24, %v5760_v13  ;;  %v1540_v56 = vrot.slane %v1531_v24, %v5806_v62  ;;  %v6118_v24 = vld [vmem:[%s6888_s1] sm:$0xff] }
0x1151   :  { %v1543_v3 = vsub.f32 %v1495_v52, %v1536_v23  ;;  %v1544_v7 = vsub.f32 %v1498_v57, %v1536_v23  ;;  %v1545_v25 = vsub.f32 %v1501_v58, %v1540_v56  ;;  %v1546_v26 = vsub.f32 %v1504_v63, %v1540_v56 }
0x1153   :  { %v1547_v8 = vmul.f32 1.442695, %v1543_v3  ;;  %v1549_v27 = vmul.f32 1.442695, %v1544_v7  ;;  %v1551_v30 = vmul.f32 1.442695, %v1545_v25 }
0x1154   :  { %v1553_v32 = vmul.f32 1.442695, %v1546_v26  ;;  %v6124_v3 = vld [vmem:[%s6888_s1 + $0x8] sm:$0xff] }
0x1155   :  { %5353 = vpow2.f32 %v1547_v8 }
0x1156   :  { %5355 = vpow2.f32 %v1549_v27 }
0x1157   :  { %5357 = vpow2.f32 %v1551_v30  ;;  %v6132_v30 = vld [vmem:[%s6888_s1 + $0x10] sm:$0xff] }
0x1158   :  { %5359 = vpow2.f32 %v1553_v32 }
0x115f   :  { %v5354_v33 = vpop.eup %5353 }
0x1160   :  { %v5356_v35 = vpop.eup %5355  ;;  %1560 = vperm.xlu0 %5288, %v5354_v33  }
0x1161   :  { %1563 = vperm.xlu1 %5287, %v5356_v35   ;;  %v5358_v36 = vpop.eup %5357 }
0x1162   :  { %v5360_v37 = vpop.eup %5359 }
0x1164   :  { %1566 = vperm.xlu0 %5288, %v5358_v36  }
0x1165   :  { %1569 = vperm.xlu1 %5287, %v5360_v37  }
0x11df   :  { %v1561_v39 = vpop.permute.xlu0 %1560 }
0x11e0   :  { %v1564_v10 = vpop.permute.xlu1 %1563  ;;  %v1574_v42 = vrot.slane %v1561_v39, %v5795_v47 }
0x11e1   :  { %v1578_v41 = vrot.slane %v1564_v10, %v5792_v44 }
0x11e3   :  { %v1567_v45 = vpop.permute.xlu0 %1566  ;;  %v1579_v51 = vsel %vm532_vm3, %v1578_v41, %v1574_v42 }
0x11e4   :  { %v1570_v48 = vpop.permute.xlu1 %1569  ;;  %v1583_v40 = vrot.slane %v1567_v45, %v5795_v47 }
0x11e5   :  { %v1587_v49 = vrot.slane %v1570_v48, %v5792_v44 }
0x11e7   :  { %v1588_v52 = vsel %vm532_vm3, %v1587_v49, %v1583_v40 }
0x11e8   :  { %v1589_v57 = vsel %vm86_vm2, %v1588_v52, %v1579_v51 }
0x11e9   :  { %v1591_v58 = vsel %vm545_vm4, %v1589_v57, 0.0 }
0x11ea   :  { %1592 = vadd.xlane.f32.xlu0 %v1591_v58 }
0x1277   :  { %v1593_v59 = vpop.xlane.xlu0 %1592 }
0x1278   :  { %5361 = vrcp.f32 %v1593_v59 }
0x1282   :  { %v5362_v61 = vpop.eup %5361 }
0x1283   :  { %v1599_v63 = vrot.slane %v5362_v61, %v5760_v13  ;;  %v1603_v12 = vrot.slane %v5362_v61, %v5806_v62 }
0x1285   :  { %v1606_v2 = vmul.f32 %v5354_v33, %v1599_v63  ;;  %v1607_v6 = vmul.f32 %v5356_v35, %v1599_v63  ;;  %v1608_v28 = vmul.f32 %v5358_v36, %v1603_v12  ;;  %v1609_v15 = vmul.f32 %v5360_v37, %v1603_v12  ;;  %v6138_v36 = vld [vmem:[%s6888_s1 + $0x18] sm:$0xff] }
0x1287   :  { %1612 = vperm.xlu1 %5287, %v1606_v2  }
0x128b   :  { %1617 = vperm.xlu1 %5287, %v1607_v6   ;;  %v4285_v6 = vld [vmem:[%s6896_s0 + $0x4] sm:$0x3] }
0x128f   :  { %1622 = vperm.xlu1 %5287, %v1608_v28  }
0x1293   :  { %1627 = vperm.xlu1 %5287, %v1609_v15  }
0x1297   :  { %1283 = vrot.lane.b32.xlu1 %v6032_v9, %s5553_s26 }
0x1306   :  { %v1613_v16 = vpop.permute.xlu1 %1612 }
0x1307   :  { %v1630_v23 = vmul.f32 %v6118_v24, %v1613_v16 }
0x1309   :  { %v1634_v25 = vsel %vm51_vm0, %v1630_v23, 0.0 }
0x130a   :  { %v1618_v56 = vpop.permute.xlu1 %1617 }
0x130b   :  { %v1631_v7 = vmul.f32 %v6124_v3, %v1618_v56 }
0x130d   :  { %v1635_v9 = vsel %vm51_vm0, %v1631_v7, 0.0 }
0x130e   :  { %v1636_v26 = vadd.f32 %v1635_v9, %v1634_v25  ;;  %v1623_v8 = vpop.permute.xlu1 %1622 }
0x130f   :  { %v1632_v32 = vmul.f32 %v6132_v30, %v1623_v8 }
0x1310   :  { %v1637_v27 = vrot.slane %v1636_v26, 4 }
0x1311   :  { %v1643_v39 = vsel %vm51_vm0, %v1632_v32, 0.0 }
0x1312   :  { %v1638_v33 = vadd.f32 %v1637_v27, %v1636_v26  ;;  %v1628_v35 = vpop.permute.xlu1 %1627 }
0x1313   :  { %v1633_v37 = vmul.f32 %v6138_v36, %v1628_v35 }
0x1314   :  { %v1639_v41 = vrot.slane %v1638_v33, 2 }
0x1315   :  { %v1644_v10 = vsel %vm51_vm0, %v1633_v37, 0.0 }
0x1316   :  { %v1645_v42 = vadd.f32 %v1644_v10, %v1643_v39  ;;  %v1284_v45 = vpop.permute.xlu1 %1283  ;;  %v1640_v51 = vadd.f32 %v1639_v41, %v1638_v33 }
0x1317   :  { %v1286_v48 = vsel %vm51_vm0, %v6062_v20, %v1284_v45 }
0x1318   :  { %v1646_v40 = vrot.slane %v1645_v42, 4  ;;  %4673 = vmatmul.mubr.msk.f32.vlgmr.msra.gmra.mrb[8].mxu1 %vm804_vm8, %v1286_v48  ;;  %v1641_v57 = vrot.slane %v1640_v51, 1 }
0x1319   :  { %5087 = vmatpush3.bf16.msra.mxu1 %v5830_v54  ;;  %4706 = vmatprep.mubr.msk.f32.mxu1 %vm5546_vm1, %v5547_v4 }
0x131a   :  { %v1647_v49 = vadd.f32 %v1646_v40, %v1645_v42  ;;  %5088 = vmatprep.subr.bf16.mxu1 %v5545_v0  ;;  %v1642_v59 = vadd.f32 %v1641_v57, %v1640_v51 }
0x131c   :  { %v1648_v52 = vrot.slane %v1647_v49, 2 }
0x131d   :  { %5090 = vmatpush3.bf16.msra.mxu1 %v5836_v55 }
0x131e   :  { %v1649_v58 = vadd.f32 %v1648_v52, %v1647_v49  ;;  %5091 = vmatprep.subr.bf16.mxu1 %v5545_v0 }
0x1320   :  { %v1650_v20 = vrot.slane %v1649_v58, 1 }
0x1321   :  { %5093 = vmatpush3.bf16.msra.mxu1 %v5846_v60 }
0x1322   :  { %v1651_v61 = vadd.f32 %v1650_v20, %v1649_v58  ;;  %5094 = vmatprep.subr.bf16.mxu1 %v5545_v0 }
0x1324   :  { %v6155_v63 = vsel %vm86_vm2, %v1651_v61, %v1642_v59 }
0x1325   :  { %1655 = vrot.lane.b32.xlu1 %v6155_v63, %s5551_s10  ;;  %5096 = vmatpush3.bf16.msra.mxu1 %v5856_v1 }
0x1326   :  { %5097 = vmatprep.subr.bf16.mxu1 %v5545_v0 }
0x1329   :  { %1658 = vrot.lane.b32.xlu1 %v6058_v19, %s5554_s12  ;;  %5099 = vmatpush3.bf16.msra.mxu1 %v5866_v11 }
0x132a   :  { %5112 = vmatprep.subr.bf16.mxu1 %v5545_v0 }
0x1397   :  { %v1656_v2 = vpop.permute.xlu1 %1655 }
0x1398   :  { %v1661_v12 = vsel %vm678_vm5, %v4285_v6, %v1656_v2 }
0x139b   :  { %v1659_v28 = vpop.permute.xlu1 %1658 }
0x139c   :  { %v1662_v15 = vsel %vm680_vm6, %v1661_v12, %v1659_v28  ;;  %v6217_v12 = vld [vmem:[%s6894_s9] ss:$0 sm:$0xff] }
0x139d   :  { %4707 = vmatmul.mubr.msk.f32.vlgmr.msra.gmra.mrb[10].mxu1 %vm688_vm7, %v1662_v15 }
0x139e   :  { %5114 = vmatpush3.bf16.msra.mxu1 %v5713_v46  ;;  %4736 = vmatprep.mubr.msk.f32.mxu1 %vm5546_vm1, %v5547_v4 }
0x139f   :  { %5115 = vmatprep.subr.bf16.mxu1 %v5545_v0 }
0x13a2   :  { %5117 = vmatpush3.bf16.msra.mxu1 %v5723_v50 }
0x13a3   :  { %5133 = vmatprep.subr.bf16.mxu1 %v5545_v0 }
0x13eb   :  { %v6177_v19 = vpop.f32.mrb[8].mxu1 }
0x13ec   :  { %v4674_v16 = vpop.f32.mrb[9].mxu1 }
0x1470   :  { %v1732_v23 = vpop.f32.mrb[10].mxu1 }
0x1471   :  { %v1733_v56 = vadd.f32 %v5905_v53, %v1732_v23  ;;  %v4708_v7 = vpop.f32.mrb[11].mxu1 }
0x1473   :  { %5363 = vtanh.f32 %v1733_v56  ;;  %v4288_v9 = vmul.f32 -1.442695, %v1733_v56 }
0x1475   :  { %5365 = vpow2.f32 %v4288_v9 }
0x147d   :  { %v5364_v25 = vpop.eup %5363 }
0x147e   :  { %1745 = vrot.lane.b32.xlu0 %v5364_v25, %s5552_s25 }
0x147f   :  { %v5366_v26 = vpop.eup %5365 }
0x1480   :  { %v1739_v8 = vadd.f32 1.0, %v5366_v26 }
0x1482   :  { %5367 = vrcp.f32 %v1739_v8 }
0x148c   :  { %v5368_v27 = vpop.eup %5367 }
0x148d   :  { %v1743_v35 = vmul.f32 %v5368_v27, %v6054_v14 }
0x14f0   :  { %v1746_v32 = vpop.permute.xlu0 %1745 }
0x14f1   :  { %v1748_v33 = vmul.f32 %v5368_v27, %v1746_v32 }
0x14f3   :  { %1750 = vrot.lane.b32.xlu1 %v1748_v33, %s5553_s26 }
0x1565   :  { %v1751_v37 = vpop.permute.xlu1 %1750 }
0x1566   :  { %v6183_v39 = vadd.f32 %v1751_v37, %v1743_v35 }
0x1568   :  { %5369 = vtanh.f32 %v6183_v39 }
0x1572   :  { %v5370_v53 = vpop.eup %5369 }
0x1573   :  { %1756 = vrot.lane.b32.xlu1 %v5370_v53, %s5552_s25 }
0x15e5   :  { %v1757_v10 = vpop.permute.xlu1 %1756 }
0x15e6   :  { %v6187_v41 = vmul.f32 %v5368_v27, %v1757_v10 }
0x15e8   :  { %1761 = vrot.lane.b32.xlu1 %v6187_v41, %s5553_s26 }
0x165a   :  { %v6191_v42 = vpop.permute.xlu1 %1761 }
0x165b   :  { %4737 = vmatmul.mubr.msk.f32.vlgmr.msra.gmra.mrb[12].mxu1 %vm51_vm0, %v6191_v42 }
0x165c   :  { %5135 = vmatpush3.bf16.msra.mxu1 %v5927_v29  ;;  %4778 = vmatprep.mubr.msk.f32.mxu1 %vm5546_vm1, %v5547_v4 }
0x165d   :  { %5136 = vmatprep.subr.bf16.mxu1 %v5545_v0 }
0x1660   :  { %5138 = vmatpush3.bf16.msra.mxu1 %v5933_v31 }
0x1661   :  { %5139 = vmatprep.subr.bf16.mxu1 %v5545_v0 }
0x1664   :  { %5141 = vmatpush3.bf16.msra.mxu1 %v5943_v34 }
0x1665   :  { %5142 = vmatprep.subr.bf16.mxu1 %v5545_v0 }
0x1668   :  { %5144 = vmatpush3.bf16.msra.mxu1 %v5954_v38 }
0x1669   :  { %5151 = vmatprep.subr.bf16.mxu1 %v5545_v0 }
0x172e   :  { %v1925_v14 = vpop.f32.mrb[12].mxu1 }
0x172f   :  { %v1936_v45 = vrot.slane %v1925_v14, %v5753_v5  ;;  %v4738_v48 = vpop.f32.mrb[13].mxu1 }
0x1731   :  { %v1937_v40 = vcombine.high %v1936_v45, %v1936_v45  ;;  %v1944_v49 = vrot.slane %v1936_v45, %v5753_v5 }
0x1733   :  { %v1951_v51 = vrot.slane %v1937_v40, %v5753_v5  ;;  %v1955_v52 = vrot.slane %v1944_v49, %v5760_v13 }
0x1735   :  { %v1959_v57 = vrot.slane %v1951_v51, %v5760_v13  ;;  %v1962_v58 = vadd.f32 %v1955_v52, %v5765_v18  ;;  %v1963_v20 = vadd.f32 %v1955_v52, %v5763_v17 }
0x1737   :  { %v1964_v59 = vadd.f32 %v1959_v57, %v5771_v22  ;;  %v1965_v61 = vadd.f32 %v1959_v57, %v5769_v21  ;;  %5371 = vtanh.f32 %v1962_v58 }
0x1738   :  { %5373 = vtanh.f32 %v1963_v20 }
0x1739   :  { %5375 = vtanh.f32 %v1964_v59 }
0x173a   :  { %5377 = vtanh.f32 %v1965_v61 }
0x1741   :  { %v5372_v2 = vpop.eup %5371 }
0x1742   :  { %v5374_v6 = vpop.eup %5373  ;;  %v1970_v28 = vmul.f32 %v6217_v12, %v5372_v2 }
0x1743   :  { %v5376_v15 = vpop.eup %5375  ;;  %v1971_v16 = vmul.f32 %v6217_v12, %v5374_v6 }
0x1744   :  { %v1974_v23 = vsel %vm51_vm0, %v1970_v28, 0.0  ;;  %v1972_v56 = vmul.f32 %v6217_v12, %v5376_v15  ;;  %v5378_v7 = vpop.eup %5377 }
0x1745   :  { %v1977_v25 = vsel %vm51_vm0, %v1971_v16, 0.0  ;;  %1975 = vadd.xlane.f32.xlu1 %v1974_v23  ;;  %v1973_v26 = vmul.f32 %v6217_v12, %v5378_v7 }
0x1746   :  { %1978 = vadd.xlane.f32.xlu0 %v1977_v25  ;;  %v1980_v9 = vsel %vm51_vm0, %v1972_v56, 0.0 }
0x1747   :  { %v1983_v8 = vsel %vm51_vm0, %v1973_v26, 0.0 }
0x1749   :  { %1981 = vadd.xlane.f32.xlu1 %v1980_v9 }
0x174d   :  { %1984 = vadd.xlane.f32.xlu1 %v1983_v8 }
0x17d2   :  { %v1976_v27 = vpop.xlane.xlu1 %1975 }
0x17d3   :  { %v1979_v32 = vpop.xlane.xlu0 %1978  ;;  %v1993_v37 = vrot.slane %v1976_v27, %v5795_v47 }
0x17d4   :  { %v1997_v35 = vrot.slane %v1979_v32, %v5792_v44 }
0x17d6   :  { %v1982_v33 = vpop.xlane.xlu1 %1981  ;;  %v1998_v45 = vsel %vm532_vm3, %v1997_v35, %v1993_v37 }
0x17d7   :  { %v2002_v10 = vrot.slane %v1982_v33, %v5795_v47 }
0x17da   :  { %v1985_v53 = vpop.xlane.xlu1 %1984 }
0x17db   :  { %v2006_v14 = vrot.slane %v1985_v53, %v5792_v44 }
0x17dd   :  { %v2007_v48 = vsel %vm532_vm3, %v2006_v14, %v2002_v10 }
0x17de   :  { %v2008_v40 = vsel %vm86_vm2, %v2007_v48, %v1998_v45 }
0x17df   :  { %v2010_v49 = vsel %vm545_vm4, %v2008_v40, -inf }
0x17e0   :  { %2011 = vmax.xlane.f32.xlu0 %v2010_v49 }
0x186d   :  { %v2012_v51 = vpop.xlane.xlu0 %2011 }
0x186e   :  { %v2017_v52 = vrot.slane %v2012_v51, %v5760_v13  ;;  %v2021_v57 = vrot.slane %v2012_v51, %v5806_v62 }
0x1870   :  { %v2024_v58 = vsub.f32 %v1976_v27, %v2017_v52  ;;  %v2025_v20 = vsub.f32 %v1979_v32, %v2017_v52  ;;  %v2026_v59 = vsub.f32 %v1982_v33, %v2021_v57  ;;  %v2027_v6 = vsub.f32 %v1985_v53, %v2021_v57 }
0x1872   :  { %v2028_v61 = vmul.f32 1.442695, %v2024_v58  ;;  %v2030_v2 = vmul.f32 1.442695, %v2025_v20  ;;  %v2032_v28 = vmul.f32 1.442695, %v2026_v59 }
0x1873   :  { %v2034_v15 = vmul.f32 1.442695, %v2027_v6 }
0x1874   :  { %5379 = vpow2.f32 %v2028_v61 }
0x1875   :  { %5381 = vpow2.f32 %v2030_v2 }
0x1876   :  { %5383 = vpow2.f32 %v2032_v28 }
0x1877   :  { %5385 = vpow2.f32 %v2034_v15 }
0x187e   :  { %v5380_v16 = vpop.eup %5379 }
0x187f   :  { %v5382_v23 = vpop.eup %5381  ;;  %2041 = vperm.xlu1 %5287, %v5380_v16  }
0x1880   :  { %2044 = vperm.xlu0 %5288, %v5382_v23   ;;  %v5384_v56 = vpop.eup %5383 }
0x1881   :  { %v5386_v7 = vpop.eup %5385 }
0x1883   :  { %2047 = vperm.xlu1 %5287, %v5384_v56  }
0x1887   :  { %2050 = vperm.xlu1 %5287, %v5386_v7  }
0x18fe   :  { %v2042_v25 = vpop.permute.xlu1 %2041 }
0x18ff   :  { %v2045_v9 = vpop.permute.xlu0 %2044  ;;  %v2055_v27 = vrot.slane %v2042_v25, %v5795_v47 }
0x1900   :  { %v2059_v8 = vrot.slane %v2045_v9, %v5792_v44 }
0x1902   :  { %v2048_v26 = vpop.permute.xlu1 %2047  ;;  %v2060_v37 = vsel %vm532_vm3, %v2059_v8, %v2055_v27 }
0x1903   :  { %v2064_v33 = vrot.slane %v2048_v26, %v5795_v47 }
0x1906   :  { %v2051_v32 = vpop.permute.xlu1 %2050 }
0x1907   :  { %v2068_v35 = vrot.slane %v2051_v32, %v5792_v44 }
0x1909   :  { %v2069_v53 = vsel %vm532_vm3, %v2068_v35, %v2064_v33 }
0x190a   :  { %v2070_v10 = vsel %vm86_vm2, %v2069_v53, %v2060_v37 }
0x190b   :  { %v2072_v14 = vsel %vm545_vm4, %v2070_v10, 0.0 }
0x190c   :  { %2073 = vadd.xlane.f32.xlu0 %v2072_v14 }
0x1999   :  { %v2074_v45 = vpop.xlane.xlu0 %2073 }
0x199a   :  { %5387 = vrcp.f32 %v2074_v45 }
0x19a4   :  { %v5388_v48 = vpop.eup %5387 }
0x19a5   :  { %v2080_v40 = vrot.slane %v5388_v48, %v5760_v13  ;;  %v2084_v52 = vrot.slane %v5388_v48, %v5806_v62 }
0x19a7   :  { %v2087_v49 = vmul.f32 %v5380_v16, %v2080_v40  ;;  %v2088_v51 = vmul.f32 %v5382_v23, %v2080_v40  ;;  %v2089_v57 = vmul.f32 %v5384_v56, %v2084_v52  ;;  %v2090_v58 = vmul.f32 %v5386_v7, %v2084_v52  ;;  %v4290_v52 = vld [vmem:[%s6896_s0 + $0x6] sm:$0x3] }
0x19a9   :  { %2093 = vperm.xlu1 %5287, %v2087_v49  }
0x19ad   :  { %2098 = vperm.xlu1 %5287, %v2088_v51  }
0x19b1   :  { %2103 = vperm.xlu1 %5287, %v2089_v57  }
0x19b5   :  { %2108 = vperm.xlu1 %5287, %v2090_v58  }
0x19b9   :  { %1764 = vrot.lane.b32.xlu1 %v6155_v63, %s5553_s26 }
0x1a28   :  { %v2094_v20 = vpop.permute.xlu1 %2093 }
0x1a29   :  { %v2111_v59 = vmul.f32 %v6118_v24, %v2094_v20 }
0x1a2b   :  { %v2115_v6 = vsel %vm51_vm0, %v2111_v59, 0.0 }
0x1a2c   :  { %v2099_v61 = vpop.permute.xlu1 %2098 }
0x1a2d   :  { %v2112_v2 = vmul.f32 %v6124_v3, %v2099_v61 }
0x1a2f   :  { %v2116_v28 = vsel %vm51_vm0, %v2112_v2, 0.0  ;;  %v6296_v2 = vld [vmem:[%s6897_s11] ss:$0 sm:$0xff] }
0x1a30   :  { %v2117_v15 = vadd.f32 %v2116_v28, %v2115_v6  ;;  %v2104_v16 = vpop.permute.xlu1 %2103 }
0x1a31   :  { %v2113_v56 = vmul.f32 %v6132_v30, %v2104_v16 }
0x1a32   :  { %v2118_v23 = vrot.slane %v2117_v15, 4 }
0x1a33   :  { %v2124_v63 = vsel %vm51_vm0, %v2113_v56, 0.0 }
0x1a34   :  { %v2119_v7 = vadd.f32 %v2118_v23, %v2117_v15  ;;  %v2109_v25 = vpop.permute.xlu1 %2108 }
0x1a35   :  { %v2114_v9 = vmul.f32 %v6138_v36, %v2109_v25 }
0x1a36   :  { %v2120_v8 = vrot.slane %v2119_v7, 2 }
0x1a37   :  { %v2125_v26 = vsel %vm51_vm0, %v2114_v9, 0.0 }
0x1a38   :  { %v2126_v27 = vadd.f32 %v2125_v26, %v2124_v63  ;;  %v1765_v32 = vpop.permute.xlu1 %1764  ;;  %v2121_v53 = vadd.f32 %v2120_v8, %v2119_v7 }
0x1a39   :  { %v1767_v33 = vsel %vm51_vm0, %v6191_v42, %v1765_v32 }
0x1a3a   :  { %v2127_v35 = vrot.slane %v2126_v27, 4  ;;  %4726 = vmatmul.mubr.msk.f32.vlgmr.msra.gmra.mrb[12].mxu0 %vm804_vm8, %v1767_v33  ;;  %v2122_v14 = vrot.slane %v2121_v53, 1 }
0x1a3b   :  { %5120 = vmatpush3.bf16.msra.mxu0 %v5830_v54  ;;  %4759 = vmatprep.mubr.msk.f32.mxu0 %vm5546_vm1, %v5547_v4 }
0x1a3c   :  { %v2128_v37 = vadd.f32 %v2127_v35, %v2126_v27  ;;  %5121 = vmatprep.subr.bf16.mxu0 %v5545_v0  ;;  %v2123_v48 = vadd.f32 %v2122_v14, %v2121_v53 }
0x1a3e   :  { %v2129_v10 = vrot.slane %v2128_v37, 2 }
0x1a3f   :  { %5123 = vmatpush3.bf16.msra.mxu0 %v5836_v55 }
0x1a40   :  { %v2130_v45 = vadd.f32 %v2129_v10, %v2128_v37  ;;  %5124 = vmatprep.subr.bf16.mxu0 %v5545_v0 }
0x1a42   :  { %v2131_v42 = vrot.slane %v2130_v45, 1 }
0x1a43   :  { %5126 = vmatpush3.bf16.msra.mxu0 %v5846_v60 }
0x1a44   :  { %v2132_v40 = vadd.f32 %v2131_v42, %v2130_v45  ;;  %5127 = vmatprep.subr.bf16.mxu0 %v5545_v0 }
0x1a46   :  { %v6269_v49 = vsel %vm86_vm2, %v2132_v40, %v2123_v48 }
0x1a47   :  { %2136 = vrot.lane.b32.xlu1 %v6269_v49, %s5551_s10  ;;  %5129 = vmatpush3.bf16.msra.mxu0 %v5856_v1 }
0x1a48   :  { %5130 = vmatprep.subr.bf16.mxu0 %v5545_v0 }
0x1a4b   :  { %2139 = vrot.lane.b32.xlu1 %v6187_v41, %s5554_s12  ;;  %5132 = vmatpush3.bf16.msra.mxu0 %v5866_v11 }
0x1a4c   :  { %5145 = vmatprep.subr.bf16.mxu0 %v5545_v0 }
0x1ab9   :  { %v2137_v51 = vpop.permute.xlu1 %2136 }
0x1aba   :  { %v2142_v57 = vsel %vm678_vm5, %v4290_v52, %v2137_v51 }
0x1abd   :  { %v2140_v58 = vpop.permute.xlu1 %2139 }
0x1abe   :  { %v2143_v20 = vsel %vm680_vm6, %v2142_v57, %v2140_v58 }
0x1abf   :  { %4760 = vmatmul.mubr.msk.f32.vlgmr.msra.gmra.mrb[14].mxu0 %vm688_vm7, %v2143_v20 }
0x1ac0   :  { %5147 = vmatpush3.bf16.msra.mxu0 %v5713_v46  ;;  %4789 = vmatprep.mubr.msk.f32.mxu0 %vm5546_vm1, %v5547_v4 }
0x1ac1   :  { %5148 = vmatprep.subr.bf16.mxu0 %v5545_v0 }
0x1ac4   :  { %5150 = vmatpush3.bf16.msra.mxu0 %v5723_v50 }
0x1ac5   :  { %5166 = vmatprep.subr.bf16.mxu0 %v5545_v0 }
0x1b0d   :  { %v6291_v41 = vpop.f32.mrb[12].mxu0 }
0x1b0e   :  { %v4727_v59 = vpop.f32.mrb[13].mxu0 }
0x1b92   :  { %v2213_v61 = vpop.f32.mrb[14].mxu0 }
0x1b93   :  { %v2214_v6 = vadd.f32 %v6296_v2, %v2213_v61  ;;  %v4761_v28 = vpop.f32.mrb[15].mxu0 }
0x1b95   :  { %5389 = vtanh.f32 %v2214_v6  ;;  %v4293_v16 = vmul.f32 -1.442695, %v2214_v6 }
0x1b97   :  { %5391 = vpow2.f32 %v4293_v16 }
0x1b9f   :  { %v5390_v15 = vpop.eup %5389 }
0x1ba0   :  { %2226 = vrot.lane.b32.xlu1 %v5390_v15, %s5552_s25 }
0x1ba1   :  { %v5392_v23 = vpop.eup %5391 }
0x1ba2   :  { %v2220_v56 = vadd.f32 1.0, %v5392_v23 }
0x1ba4   :  { %5393 = vrcp.f32 %v2220_v56 }
0x1bae   :  { %v5394_v7 = vpop.eup %5393 }
0x1baf   :  { %v2224_v63 = vmul.f32 %v5394_v7, %v6183_v39 }
0x1c12   :  { %v2227_v25 = vpop.permute.xlu1 %2226 }
0x1c13   :  { %v2229_v9 = vmul.f32 %v5394_v7, %v2227_v25 }
0x1c15   :  { %2231 = vrot.lane.b32.xlu0 %v2229_v9, %s5553_s26 }
0x1c87   :  { %v2232_v26 = vpop.permute.xlu0 %2231 }
0x1c88   :  { %v6302_v8 = vadd.f32 %v2232_v26, %v2224_v63 }
0x1c8a   :  { %5395 = vtanh.f32 %v6302_v8 }
0x1c94   :  { %v5396_v27 = vpop.eup %5395 }
0x1c95   :  { %2237 = vrot.lane.b32.xlu1 %v5396_v27, %s5552_s25 }
0x1d07   :  { %v2238_v32 = vpop.permute.xlu1 %2237 }
0x1d08   :  { %v6306_v33 = vmul.f32 %v5394_v7, %v2238_v32 }
0x1d0a   :  { %2242 = vrot.lane.b32.xlu1 %v6306_v33, %s5553_s26 }
0x1d7c   :  { %v6310_v35 = vpop.permute.xlu1 %2242 }
0x1d7d   :  { %4790 = vmatmul.mubr.msk.f32.vlgmr.msra.gmra.mrb[16].mxu0 %vm51_vm0, %v6310_v35 }
0x1d7e   :  { %5168 = vmatpush3.bf16.msra.mxu0 %v5927_v29  ;;  %4831 = vmatprep.mubr.msk.f32.mxu0 %vm5546_vm1, %v5547_v4 }
0x1d7f   :  { %5169 = vmatprep.subr.bf16.mxu0 %v5545_v0 }
0x1d82   :  { %5171 = vmatpush3.bf16.msra.mxu0 %v5933_v31 }
0x1d83   :  { %5172 = vmatprep.subr.bf16.mxu0 %v5545_v0 }
0x1d86   :  { %5174 = vmatpush3.bf16.msra.mxu0 %v5943_v34 }
0x1d87   :  { %5175 = vmatprep.subr.bf16.mxu0 %v5545_v0 }
0x1d8a   :  { %5177 = vmatpush3.bf16.msra.mxu0 %v5954_v38 }
0x1d8b   :  { %5184 = vmatprep.subr.bf16.mxu0 %v5545_v0 }
0x1e50   :  { %v2406_v39 = vpop.f32.mrb[16].mxu0 }
0x1e51   :  { %v2417_v37 = vrot.slane %v2406_v39, %v5753_v5  ;;  %v4791_v53 = vpop.f32.mrb[17].mxu0 }
0x1e53   :  { %v2418_v10 = vcombine.high %v2417_v37, %v2417_v37  ;;  %v2425_v14 = vrot.slane %v2417_v37, %v5753_v5 }
0x1e55   :  { %v2432_v45 = vrot.slane %v2418_v10, %v5753_v5  ;;  %v2436_v42 = vrot.slane %v2425_v14, %v5760_v13 }
0x1e57   :  { %v2440_v48 = vrot.slane %v2432_v45, %v5760_v13  ;;  %v2443_v40 = vadd.f32 %v2436_v42, %v5765_v18  ;;  %v2444_v51 = vadd.f32 %v2436_v42, %v5763_v17 }
0x1e59   :  { %v2445_v52 = vadd.f32 %v2440_v48, %v5771_v22  ;;  %v2446_v57 = vadd.f32 %v2440_v48, %v5769_v21  ;;  %5397 = vtanh.f32 %v2443_v40 }
0x1e5a   :  { %5399 = vtanh.f32 %v2444_v51 }
0x1e5b   :  { %5401 = vtanh.f32 %v2445_v52 }
0x1e5c   :  { %5403 = vtanh.f32 %v2446_v57 }
0x1e63   :  { %v5398_v58 = vpop.eup %5397 }
0x1e64   :  { %v5400_v20 = vpop.eup %5399  ;;  %v2451_v59 = vmul.f32 %v6217_v12, %v5398_v58 }
0x1e65   :  { %v5402_v61 = vpop.eup %5401  ;;  %v2452_v6 = vmul.f32 %v6217_v12, %v5400_v20 }
0x1e66   :  { %v2455_v28 = vsel %vm51_vm0, %v2451_v59, 0.0  ;;  %v2453_v15 = vmul.f32 %v6217_v12, %v5402_v61  ;;  %v5404_v16 = vpop.eup %5403 }
0x1e67   :  { %v2458_v23 = vsel %vm51_vm0, %v2452_v6, 0.0  ;;  %2456 = vadd.xlane.f32.xlu1 %v2455_v28  ;;  %v2454_v7 = vmul.f32 %v6217_v12, %v5404_v16 }
0x1e68   :  { %2459 = vadd.xlane.f32.xlu0 %v2458_v23  ;;  %v2461_v56 = vsel %vm51_vm0, %v2453_v15, 0.0 }
0x1e69   :  { %v2464_v25 = vsel %vm51_vm0, %v2454_v7, 0.0 }
0x1e6b   :  { %2462 = vadd.xlane.f32.xlu1 %v2461_v56 }
0x1e6f   :  { %2465 = vadd.xlane.f32.xlu1 %v2464_v25 }
0x1ef4   :  { %v2457_v9 = vpop.xlane.xlu1 %2456 }
0x1ef5   :  { %v2460_v63 = vpop.xlane.xlu0 %2459  ;;  %v2474_v32 = vrot.slane %v2457_v9, %v5795_v47 }
0x1ef6   :  { %v2478_v27 = vrot.slane %v2460_v63, %v5792_v44 }
0x1ef8   :  { %v2463_v26 = vpop.xlane.xlu1 %2462  ;;  %v2479_v10 = vsel %vm532_vm3, %v2478_v27, %v2474_v32 }
0x1ef9   :  { %v2483_v37 = vrot.slane %v2463_v26, %v5795_v47 }
0x1efc   :  { %v2466_v39 = vpop.xlane.xlu1 %2465 }
0x1efd   :  { %v2487_v53 = vrot.slane %v2466_v39, %v5792_v44 }
0x1eff   :  { %v2488_v14 = vsel %vm532_vm3, %v2487_v53, %v2483_v37 }
0x1f00   :  { %v2489_v45 = vsel %vm86_vm2, %v2488_v14, %v2479_v10 }
0x1f01   :  { %v2491_v42 = vsel %vm545_vm4, %v2489_v45, -inf }
0x1f02   :  { %2492 = vmax.xlane.f32.xlu0 %v2491_v42 }
0x1f8f   :  { %v2493_v48 = vpop.xlane.xlu0 %2492 }
0x1f90   :  { %v2498_v40 = vrot.slane %v2493_v48, %v5760_v13  ;;  %v2502_v51 = vrot.slane %v2493_v48, %v5806_v62 }
0x1f92   :  { %v2505_v52 = vsub.f32 %v2457_v9, %v2498_v40  ;;  %v2506_v57 = vsub.f32 %v2460_v63, %v2498_v40  ;;  %v2507_v58 = vsub.f32 %v2463_v26, %v2502_v51  ;;  %v2508_v61 = vsub.f32 %v2466_v39, %v2502_v51 }
0x1f94   :  { %v2509_v20 = vmul.f32 1.442695, %v2505_v52  ;;  %v2511_v59 = vmul.f32 1.442695, %v2506_v57  ;;  %v2513_v6 = vmul.f32 1.442695, %v2507_v58 }
0x1f95   :  { %v2515_v28 = vmul.f32 1.442695, %v2508_v61 }
0x1f96   :  { %5405 = vpow2.f32 %v2509_v20 }
0x1f97   :  { %5407 = vpow2.f32 %v2511_v59 }
0x1f98   :  { %5409 = vpow2.f32 %v2513_v6 }
0x1f99   :  { %5411 = vpow2.f32 %v2515_v28 }
0x1fa0   :  { %v5406_v15 = vpop.eup %5405 }
0x1fa1   :  { %v5408_v16 = vpop.eup %5407  ;;  %2522 = vperm.xlu1 %5287, %v5406_v15  }
0x1fa2   :  { %2525 = vperm.xlu0 %5288, %v5408_v16   ;;  %v5410_v23 = vpop.eup %5409 }
0x1fa3   :  { %v5412_v56 = vpop.eup %5411 }
0x1fa5   :  { %2528 = vperm.xlu1 %5287, %v5410_v23  }
0x1fa9   :  { %2531 = vperm.xlu1 %5287, %v5412_v56  }
0x2020   :  { %v2523_v7 = vpop.permute.xlu1 %2522 }
0x2021   :  { %v2526_v25 = vpop.permute.xlu0 %2525  ;;  %v2536_v26 = vrot.slane %v2523_v7, %v5795_v47 }
0x2022   :  { %v2540_v63 = vrot.slane %v2526_v25, %v5792_v44 }
0x2024   :  { %v2529_v9 = vpop.permute.xlu1 %2528  ;;  %v2541_v37 = vsel %vm532_vm3, %v2540_v63, %v2536_v26 }
0x2025   :  { %v2545_v32 = vrot.slane %v2529_v9, %v5795_v47 }
0x2028   :  { %v2532_v27 = vpop.permute.xlu1 %2531 }
0x2029   :  { %v2549_v39 = vrot.slane %v2532_v27, %v5792_v44 }
0x202b   :  { %v2550_v53 = vsel %vm532_vm3, %v2549_v39, %v2545_v32 }
0x202c   :  { %v2551_v10 = vsel %vm86_vm2, %v2550_v53, %v2541_v37 }
0x202d   :  { %v2553_v14 = vsel %vm545_vm4, %v2551_v10, 0.0 }
0x202e   :  { %2554 = vadd.xlane.f32.xlu0 %v2553_v14 }
0x20bb   :  { %v2555_v45 = vpop.xlane.xlu0 %2554 }
0x20bc   :  { %5413 = vrcp.f32 %v2555_v45 }
0x20c6   :  { %v5414_v42 = vpop.eup %5413 }
0x20c7   :  { %v2561_v48 = vrot.slane %v5414_v42, %v5760_v13  ;;  %v2565_v52 = vrot.slane %v5414_v42, %v5806_v62 }
0x20c9   :  { %v2568_v40 = vmul.f32 %v5406_v15, %v2561_v48  ;;  %v2569_v51 = vmul.f32 %v5408_v16, %v2561_v48  ;;  %v2570_v57 = vmul.f32 %v5410_v23, %v2565_v52  ;;  %v2571_v58 = vmul.f32 %v5412_v56, %v2565_v52 }
0x20cb   :  { %2574 = vperm.xlu1 %5287, %v2568_v40   ;;  %v4295_v40 = vld [vmem:[%s6896_s0 + $0x8] sm:$0x3] }
0x20cf   :  { %2579 = vperm.xlu1 %5287, %v2569_v51  }
0x20d3   :  { %2584 = vperm.xlu1 %5287, %v2570_v57  }
0x20d7   :  { %2589 = vperm.xlu1 %5287, %v2571_v58  }
0x20db   :  { %2245 = vrot.lane.b32.xlu1 %v6269_v49, %s5553_s26 }
0x214a   :  { %v2575_v20 = vpop.permute.xlu1 %2574 }
0x214b   :  { %v2592_v59 = vmul.f32 %v6118_v24, %v2575_v20 }
0x214d   :  { %v2596_v28 = vsel %vm51_vm0, %v2592_v59, 0.0 }
0x214e   :  { %v2580_v61 = vpop.permute.xlu1 %2579 }
0x214f   :  { %v2593_v6 = vmul.f32 %v6124_v3, %v2580_v61 }
0x2151   :  { %v2597_v15 = vsel %vm51_vm0, %v2593_v6, 0.0 }
0x2152   :  { %v2598_v16 = vadd.f32 %v2597_v15, %v2596_v28  ;;  %v2585_v7 = vpop.permute.xlu1 %2584 }
0x2153   :  { %v2594_v23 = vmul.f32 %v6132_v30, %v2585_v7 }
0x2154   :  { %v2599_v25 = vrot.slane %v2598_v16, 4 }
0x2155   :  { %v2605_v49 = vsel %vm51_vm0, %v2594_v23, 0.0 }
0x2156   :  { %v2600_v56 = vadd.f32 %v2599_v25, %v2598_v16  ;;  %v2590_v9 = vpop.permute.xlu1 %2589 }
0x2157   :  { %v2595_v63 = vmul.f32 %v6138_v36, %v2590_v9 }
0x2158   :  { %v2601_v26 = vrot.slane %v2600_v56, 2 }
0x2159   :  { %v2606_v24 = vsel %vm51_vm0, %v2595_v63, 0.0 }
0x215a   :  { %v2607_v27 = vadd.f32 %v2606_v24, %v2605_v49  ;;  %v2246_v3 = vpop.permute.xlu1 %2245  ;;  %v2602_v30 = vadd.f32 %v2601_v26, %v2600_v56 }
0x215b   :  { %v2248_v32 = vsel %vm51_vm0, %v6310_v35, %v2246_v3 }
0x215c   :  { %v2608_v39 = vrot.slane %v2607_v27, 4  ;;  %4779 = vmatmul.mubr.msk.f32.vlgmr.msra.gmra.mrb[14].mxu1 %vm804_vm8, %v2248_v32  ;;  %v2603_v10 = vrot.slane %v2602_v30, 1 }
0x215d   :  { %5153 = vmatpush3.bf16.msra.mxu1 %v5830_v54  ;;  %4812 = vmatprep.mubr.msk.f32.mxu1 %vm5546_vm1, %v5547_v4 }
0x215e   :  { %v2609_v36 = vadd.f32 %v2608_v39, %v2607_v27  ;;  %5154 = vmatprep.subr.bf16.mxu1 %v5545_v0  ;;  %v2604_v14 = vadd.f32 %v2603_v10, %v2602_v30 }
0x2160   :  { %v2610_v37 = vrot.slane %v2609_v36, 2 }
0x2161   :  { %5156 = vmatpush3.bf16.msra.mxu1 %v5836_v55 }
0x2162   :  { %v2611_v53 = vadd.f32 %v2610_v37, %v2609_v36  ;;  %5157 = vmatprep.subr.bf16.mxu1 %v5545_v0 }
0x2164   :  { %v2612_v35 = vrot.slane %v2611_v53, 1 }
0x2165   :  { %5159 = vmatpush3.bf16.msra.mxu1 %v5846_v60 }
0x2166   :  { %v2613_v45 = vadd.f32 %v2612_v35, %v2611_v53  ;;  %5160 = vmatprep.subr.bf16.mxu1 %v5545_v0 }
0x2168   :  { %v6383_v42 = vsel %vm86_vm2, %v2613_v45, %v2604_v14 }
0x2169   :  { %2617 = vrot.lane.b32.xlu1 %v6383_v42, %s5551_s10  ;;  %5162 = vmatpush3.bf16.msra.mxu1 %v5856_v1 }
0x216a   :  { %5163 = vmatprep.subr.bf16.mxu1 %v5545_v0 }
0x216d   :  { %2620 = vrot.lane.b32.xlu1 %v6306_v33, %s5554_s12  ;;  %5165 = vmatpush3.bf16.msra.mxu1 %v5866_v11 }
0x216e   :  { %5178 = vmatprep.subr.bf16.mxu1 %v5545_v0 }
0x21db   :  { %v2618_v48 = vpop.permute.xlu1 %2617 }
0x21dc   :  { %v2623_v51 = vsel %vm678_vm5, %v4295_v40, %v2618_v48 }
0x21df   :  { %v2621_v52 = vpop.permute.xlu1 %2620 }
0x21e0   :  { %v2624_v57 = vsel %vm680_vm6, %v2623_v51, %v2621_v52 }
0x21e1   :  { %4813 = vmatmul.mubr.msk.f32.vlgmr.msra.gmra.mrb[16].mxu1 %vm688_vm7, %v2624_v57 }
0x21e2   :  { %5180 = vmatpush3.bf16.msra.mxu1 %v5713_v46  ;;  %4842 = vmatprep.mubr.msk.f32.mxu1 %vm5546_vm1, %v5547_v4 }
0x21e3   :  { %5181 = vmatprep.subr.bf16.mxu1 %v5545_v0 }
0x21e6   :  { %5183 = vmatpush3.bf16.msra.mxu1 %v5723_v50 }
0x21e7   :  { %5199 = vmatprep.subr.bf16.mxu1 %v5545_v0 }
0x222f   :  { %v6405_v33 = vpop.f32.mrb[14].mxu1 }
0x2230   :  { %v4780_v58 = vpop.f32.mrb[15].mxu1 }
0x22b4   :  { %v2694_v20 = vpop.f32.mrb[16].mxu1 }
0x22b5   :  { %v2695_v59 = vadd.f32 %v6296_v2, %v2694_v20  ;;  %v4814_v61 = vpop.f32.mrb[17].mxu1 }
0x22b7   :  { %5415 = vtanh.f32 %v2695_v59  ;;  %v4298_v28 = vmul.f32 -1.442695, %v2695_v59 }
0x22b9   :  { %5417 = vpow2.f32 %v4298_v28 }
0x22c1   :  { %v5416_v6 = vpop.eup %5415 }
0x22c2   :  { %2707 = vrot.lane.b32.xlu1 %v5416_v6, %s5552_s25 }
0x22c3   :  { %v5418_v15 = vpop.eup %5417 }
0x22c4   :  { %v2701_v16 = vadd.f32 1.0, %v5418_v15 }
0x22c6   :  { %5419 = vrcp.f32 %v2701_v16 }
0x22d0   :  { %v5420_v7 = vpop.eup %5419 }
0x22d1   :  { %v2705_v56 = vmul.f32 %v5420_v7, %v6302_v8 }
0x2334   :  { %v2708_v25 = vpop.permute.xlu1 %2707 }
0x2335   :  { %v2710_v23 = vmul.f32 %v5420_v7, %v2708_v25 }
0x2337   :  { %2712 = vrot.lane.b32.xlu0 %v2710_v23, %s5553_s26 }
0x23a9   :  { %v2713_v9 = vpop.permute.xlu0 %2712 }
0x23aa   :  { %v6411_v63 = vadd.f32 %v2713_v9, %v2705_v56 }
0x23ac   :  { %5421 = vtanh.f32 %v6411_v63 }
0x23b6   :  { %v5422_v49 = vpop.eup %5421 }
0x23b7   :  { %2718 = vrot.lane.b32.xlu1 %v5422_v49, %s5552_s25 }
0x2429   :  { %v2719_v24 = vpop.permute.xlu1 %2718 }
0x242a   :  { %v6415_v26 = vmul.f32 %v5420_v7, %v2719_v24 }
0x242c   :  { %2723 = vrot.lane.b32.xlu1 %v6415_v26, %s5553_s26 }
0x249e   :  { %v6419_v27 = vpop.permute.xlu1 %2723 }
0x249f   :  { %4843 = vmatmul.mubr.msk.f32.vlgmr.msra.gmra.mrb[18].mxu1 %vm51_vm0, %v6419_v27 }
0x24a0   :  { %5201 = vmatpush3.bf16.msra.mxu1 %v5927_v29  ;;  %4884 = vmatprep.mubr.msk.f32.mxu1 %vm5546_vm1, %v5547_v4 }
0x24a1   :  { %5202 = vmatprep.subr.bf16.mxu1 %v5545_v0 }
0x24a4   :  { %5204 = vmatpush3.bf16.msra.mxu1 %v5933_v31 }
0x24a5   :  { %5205 = vmatprep.subr.bf16.mxu1 %v5545_v0 }
0x24a8   :  { %5207 = vmatpush3.bf16.msra.mxu1 %v5943_v34 }
0x24a9   :  { %5208 = vmatprep.subr.bf16.mxu1 %v5545_v0 }
0x24ac   :  { %5210 = vmatpush3.bf16.msra.mxu1 %v5954_v38 }
0x24ad   :  { %5217 = vmatprep.subr.bf16.mxu1 %v5545_v0 }
0x2572   :  { %v2887_v8 = vpop.f32.mrb[18].mxu1 }
0x2573   :  { %v2898_v3 = vrot.slane %v2887_v8, %v5753_v5  ;;  %v4844_v32 = vpop.f32.mrb[19].mxu1 }
0x2575   :  { %v2899_v39 = vcombine.high %v2898_v3, %v2898_v3  ;;  %v2906_v30 = vrot.slane %v2898_v3, %v5753_v5 }
0x2577   :  { %v2913_v36 = vrot.slane %v2899_v39, %v5753_v5  ;;  %v2917_v37 = vrot.slane %v2906_v30, %v5760_v13 }
0x2579   :  { %v2921_v53 = vrot.slane %v2913_v36, %v5760_v13  ;;  %v2924_v10 = vadd.f32 %v2917_v37, %v5765_v18  ;;  %v2925_v35 = vadd.f32 %v2917_v37, %v5763_v17 }
0x257b   :  { %v2926_v14 = vadd.f32 %v2921_v53, %v5771_v22  ;;  %v2927_v45 = vadd.f32 %v2921_v53, %v5769_v21  ;;  %5423 = vtanh.f32 %v2924_v10 }
0x257c   :  { %5425 = vtanh.f32 %v2925_v35 }
0x257d   :  { %5427 = vtanh.f32 %v2926_v14 }
0x257e   :  { %5429 = vtanh.f32 %v2927_v45 }
0x2585   :  { %v5424_v48 = vpop.eup %5423 }
0x2586   :  { %v5426_v40 = vpop.eup %5425  ;;  %v2932_v51 = vmul.f32 %v6217_v12, %v5424_v48 }
0x2587   :  { %v5428_v52 = vpop.eup %5427  ;;  %v2933_v57 = vmul.f32 %v6217_v12, %v5426_v40 }
0x2588   :  { %v2936_v58 = vsel %vm51_vm0, %v2932_v51, 0.0  ;;  %v2934_v20 = vmul.f32 %v6217_v12, %v5428_v52  ;;  %v5430_v59 = vpop.eup %5429 }
0x2589   :  { %v2939_v61 = vsel %vm51_vm0, %v2933_v57, 0.0  ;;  %2937 = vadd.xlane.f32.xlu1 %v2936_v58  ;;  %v2935_v28 = vmul.f32 %v6217_v12, %v5430_v59 }
0x258a   :  { %2940 = vadd.xlane.f32.xlu0 %v2939_v61  ;;  %v2942_v6 = vsel %vm51_vm0, %v2934_v20, 0.0 }
0x258b   :  { %v2945_v15 = vsel %vm51_vm0, %v2935_v28, 0.0 }
0x258d   :  { %2943 = vadd.xlane.f32.xlu1 %v2942_v6 }
0x2591   :  { %2946 = vadd.xlane.f32.xlu1 %v2945_v15 }
0x2616   :  { %v2938_v16 = vpop.xlane.xlu1 %2937 }
0x2617   :  { %v2941_v7 = vpop.xlane.xlu0 %2940  ;;  %v2955_v56 = vrot.slane %v2938_v16, %v5795_v47 }
0x2618   :  { %v2959_v23 = vrot.slane %v2941_v7, %v5792_v44 }
0x261a   :  { %v2944_v25 = vpop.xlane.xlu1 %2943  ;;  %v2960_v8 = vsel %vm532_vm3, %v2959_v23, %v2955_v56 }
0x261b   :  { %v2964_v49 = vrot.slane %v2944_v25, %v5795_v47 }
0x261e   :  { %v2947_v9 = vpop.xlane.xlu1 %2946 }
0x261f   :  { %v2968_v24 = vrot.slane %v2947_v9, %v5792_v44 }
0x2621   :  { %v2969_v12 = vsel %vm532_vm3, %v2968_v24, %v2964_v49 }
0x2622   :  { %v2970_v3 = vsel %vm86_vm2, %v2969_v12, %v2960_v8 }
0x2623   :  { %v2972_v32 = vsel %vm545_vm4, %v2970_v3, -inf }
0x2624   :  { %2973 = vmax.xlane.f32.xlu0 %v2972_v32 }
0x26b1   :  { %v2974_v39 = vpop.xlane.xlu0 %2973 }
0x26b2   :  { %v2979_v30 = vrot.slane %v2974_v39, %v5760_v13  ;;  %v2983_v36 = vrot.slane %v2974_v39, %v5806_v62 }
0x26b4   :  { %v2986_v37 = vsub.f32 %v2938_v16, %v2979_v30  ;;  %v2987_v53 = vsub.f32 %v2941_v7, %v2979_v30  ;;  %v2988_v10 = vsub.f32 %v2944_v25, %v2983_v36  ;;  %v2989_v45 = vsub.f32 %v2947_v9, %v2983_v36 }
0x26b6   :  { %v2990_v35 = vmul.f32 1.442695, %v2986_v37  ;;  %v2992_v14 = vmul.f32 1.442695, %v2987_v53  ;;  %v2994_v48 = vmul.f32 1.442695, %v2988_v10 }
0x26b7   :  { %v2996_v40 = vmul.f32 1.442695, %v2989_v45  ;;  %v6475_v37 = vld [vmem:[%s6888_s1] sm:$0xff] }
0x26b8   :  { %5431 = vpow2.f32 %v2990_v35  ;;  %v6481_v35 = vld [vmem:[%s6888_s1 + $0x8] sm:$0xff] }
0x26b9   :  { %5433 = vpow2.f32 %v2992_v14 }
0x26ba   :  { %5435 = vpow2.f32 %v2994_v48 }
0x26bb   :  { %5437 = vpow2.f32 %v2996_v40 }
0x26c2   :  { %v5432_v51 = vpop.eup %5431 }
0x26c3   :  { %v5434_v52 = vpop.eup %5433  ;;  %3003 = vperm.xlu1 %5287, %v5432_v51  }
0x26c4   :  { %3006 = vperm.xlu0 %5288, %v5434_v52   ;;  %v5436_v57 = vpop.eup %5435 }
0x26c5   :  { %v5438_v58 = vpop.eup %5437 }
0x26c7   :  { %3009 = vperm.xlu1 %5287, %v5436_v57  }
0x26cb   :  { %3012 = vperm.xlu1 %5287, %v5438_v58  }
0x2742   :  { %v3004_v20 = vpop.permute.xlu1 %3003 }
0x2743   :  { %v3007_v59 = vpop.permute.xlu0 %3006  ;;  %v3017_v28 = vrot.slane %v3004_v20, %v5795_v47 }
0x2744   :  { %v3021_v6 = vrot.slane %v3007_v59, %v5792_v44  ;;  %v6495_v59 = vld [vmem:[%s6888_s1 + $0x18] sm:$0xff] }
0x2746   :  { %v3010_v61 = vpop.permute.xlu1 %3009  ;;  %v3022_v25 = vsel %vm532_vm3, %v3021_v6, %v3017_v28 }
0x2747   :  { %v3026_v16 = vrot.slane %v3010_v61, %v5795_v47 }
0x274a   :  { %v3013_v15 = vpop.permute.xlu1 %3012 }
0x274b   :  { %v3030_v7 = vrot.slane %v3013_v15, %v5792_v44 }
0x274d   :  { %v3031_v23 = vsel %vm532_vm3, %v3030_v7, %v3026_v16 }
0x274e   :  { %v3032_v56 = vsel %vm86_vm2, %v3031_v23, %v3022_v25 }
0x274f   :  { %v3034_v9 = vsel %vm545_vm4, %v3032_v56, 0.0 }
0x2750   :  { %3035 = vadd.xlane.f32.xlu0 %v3034_v9 }
0x27dd   :  { %v3036_v49 = vpop.xlane.xlu0 %3035 }
0x27de   :  { %5439 = vrcp.f32 %v3036_v49 }
0x27e8   :  { %v5440_v24 = vpop.eup %5439 }
0x27e9   :  { %v3042_v8 = vrot.slane %v5440_v24, %v5760_v13  ;;  %v3046_v32 = vrot.slane %v5440_v24, %v5806_v62 }
0x27eb   :  { %v3049_v12 = vmul.f32 %v5432_v51, %v3042_v8  ;;  %v3050_v3 = vmul.f32 %v5434_v52, %v3042_v8  ;;  %v3051_v39 = vmul.f32 %v5436_v57, %v3046_v32  ;;  %v3052_v30 = vmul.f32 %v5438_v58, %v3046_v32  ;;  %v6489_v52 = vld [vmem:[%s6888_s1 + $0x10] sm:$0xff] }
0x27ed   :  { %3055 = vperm.xlu1 %5287, %v3049_v12  }
0x27f1   :  { %3060 = vperm.xlu1 %5287, %v3050_v3  }
0x27f5   :  { %3065 = vperm.xlu1 %5287, %v3051_v39  }
0x27f9   :  { %3070 = vperm.xlu1 %5287, %v3052_v30   ;;  %v4300_v30 = vld [vmem:[%s6896_s0 + $0xa] sm:$0x3] }
0x27fd   :  { %2726 = vrot.lane.b32.xlu1 %v6383_v42, %s5553_s26 }
0x286c   :  { %v3056_v36 = vpop.permute.xlu1 %3055 }
0x286d   :  { %v3073_v53 = vmul.f32 %v6475_v37, %v3056_v36 }
0x286f   :  { %v3077_v45 = vsel %vm51_vm0, %v3073_v53, 0.0 }
0x2870   :  { %v3061_v10 = vpop.permute.xlu1 %3060 }
0x2871   :  { %v3074_v14 = vmul.f32 %v6481_v35, %v3061_v10 }
0x2873   :  { %v3078_v42 = vsel %vm51_vm0, %v3074_v14, 0.0 }
0x2874   :  { %v3079_v48 = vadd.f32 %v3078_v42, %v3077_v45  ;;  %v3066_v40 = vpop.permute.xlu1 %3065 }
0x2875   :  { %v3075_v57 = vmul.f32 %v6489_v52, %v3066_v40 }
0x2876   :  { %v3080_v51 = vrot.slane %v3079_v48, 4 }
0x2877   :  { %v3086_v6 = vsel %vm51_vm0, %v3075_v57, 0.0 }
0x2878   :  { %v3081_v58 = vadd.f32 %v3080_v51, %v3079_v48  ;;  %v3071_v20 = vpop.permute.xlu1 %3070 }
0x2879   :  { %v3076_v61 = vmul.f32 %v6495_v59, %v3071_v20 }
0x287a   :  { %v3082_v15 = vrot.slane %v3081_v58, 2 }
0x287b   :  { %v3087_v28 = vsel %vm51_vm0, %v3076_v61, 0.0 }
0x287c   :  { %v3088_v16 = vadd.f32 %v3087_v28, %v3086_v6  ;;  %v2727_v7 = vpop.permute.xlu1 %2726  ;;  %v3083_v56 = vadd.f32 %v3082_v15, %v3081_v58 }
0x287d   :  { %v2729_v25 = vsel %vm51_vm0, %v6419_v27, %v2727_v7 }
0x287e   :  { %v3089_v23 = vrot.slane %v3088_v16, 4  ;;  %4832 = vmatmul.mubr.msk.f32.vlgmr.msra.gmra.mrb[18].mxu0 %vm804_vm8, %v2729_v25  ;;  %v3084_v24 = vrot.slane %v3083_v56, 1 }
0x287f   :  { %5186 = vmatpush3.bf16.msra.mxu0 %v5830_v54  ;;  %4865 = vmatprep.mubr.msk.f32.mxu0 %vm5546_vm1, %v5547_v4 }
0x2880   :  { %v3090_v9 = vadd.f32 %v3089_v23, %v3088_v16  ;;  %5187 = vmatprep.subr.bf16.mxu0 %v5545_v0  ;;  %v3085_v12 = vadd.f32 %v3084_v24, %v3083_v56 }
0x2882   :  { %v3091_v49 = vrot.slane %v3090_v9, 2 }
0x2883   :  { %5189 = vmatpush3.bf16.msra.mxu0 %v5836_v55 }
0x2884   :  { %v3092_v8 = vadd.f32 %v3091_v49, %v3090_v9  ;;  %5190 = vmatprep.subr.bf16.mxu0 %v5545_v0 }
0x2886   :  { %v3093_v27 = vrot.slane %v3092_v8, 1 }
0x2887   :  { %5192 = vmatpush3.bf16.msra.mxu0 %v5846_v60 }
0x2888   :  { %v3094_v3 = vadd.f32 %v3093_v27, %v3092_v8  ;;  %5193 = vmatprep.subr.bf16.mxu0 %v5545_v0 }
0x288a   :  { %v6512_v32 = vsel %vm86_vm2, %v3094_v3, %v3085_v12 }
0x288b   :  { %3098 = vrot.lane.b32.xlu1 %v6512_v32, %s5551_s10  ;;  %5195 = vmatpush3.bf16.msra.mxu0 %v5856_v1 }
0x288c   :  { %5196 = vmatprep.subr.bf16.mxu0 %v5545_v0 }
0x288f   :  { %3101 = vrot.lane.b32.xlu1 %v6415_v26, %s5554_s12  ;;  %5198 = vmatpush3.bf16.msra.mxu0 %v5866_v11 }
0x2890   :  { %5211 = vmatprep.subr.bf16.mxu0 %v5545_v0 }
0x28fd   :  { %v3099_v39 = vpop.permute.xlu1 %3098 }
0x28fe   :  { %v3104_v36 = vsel %vm678_vm5, %v4300_v30, %v3099_v39 }
0x2901   :  { %v3102_v53 = vpop.permute.xlu1 %3101 }
0x2902   :  { %v3105_v10 = vsel %vm680_vm6, %v3104_v36, %v3102_v53 }
0x2903   :  { %4866 = vmatmul.mubr.msk.f32.vlgmr.msra.gmra.mrb[20].mxu0 %vm688_vm7, %v3105_v10 }
0x2904   :  { %5213 = vmatpush3.bf16.msra.mxu0 %v5713_v46  ;;  %4895 = vmatprep.mubr.msk.f32.mxu0 %vm5546_vm1, %v5547_v4 }
0x2905   :  { %5214 = vmatprep.subr.bf16.mxu0 %v5545_v0 }
0x2908   :  { %5216 = vmatpush3.bf16.msra.mxu0 %v5723_v50 }
0x2909   :  { %5232 = vmatprep.subr.bf16.mxu0 %v5545_v0 }
0x2951   :  { %v6534_v26 = vpop.f32.mrb[18].mxu0 }
0x2952   :  { %v4833_v14 = vpop.f32.mrb[19].mxu0 }
0x2953   :  { %v6574_v14 = vld [vmem:[%s6894_s9] ss:$0 sm:$0xff] }
0x29d6   :  { %v3175_v45 = vpop.f32.mrb[20].mxu0 }
0x29d7   :  { %v3176_v42 = vadd.f32 %v6296_v2, %v3175_v45  ;;  %v4867_v48 = vpop.f32.mrb[21].mxu0 }
0x29d9   :  { %5441 = vtanh.f32 %v3176_v42  ;;  %v4303_v51 = vmul.f32 -1.442695, %v3176_v42 }
0x29db   :  { %5443 = vpow2.f32 %v4303_v51 }
0x29e3   :  { %v5442_v40 = vpop.eup %5441 }
0x29e4   :  { %3188 = vrot.lane.b32.xlu1 %v5442_v40, %s5552_s25 }
0x29e5   :  { %v5444_v57 = vpop.eup %5443 }
0x29e6   :  { %v3182_v58 = vadd.f32 1.0, %v5444_v57 }
0x29e8   :  { %5445 = vrcp.f32 %v3182_v58 }
0x29f2   :  { %v5446_v20 = vpop.eup %5445 }
0x29f3   :  { %v3186_v28 = vmul.f32 %v5446_v20, %v6411_v63 }
0x2a56   :  { %v3189_v61 = vpop.permute.xlu1 %3188 }
0x2a57   :  { %v3191_v6 = vmul.f32 %v5446_v20, %v3189_v61 }
0x2a59   :  { %3193 = vrot.lane.b32.xlu0 %v3191_v6, %s5553_s26 }
0x2acb   :  { %v3194_v15 = vpop.permute.xlu0 %3193 }
0x2acc   :  { %v6540_v16 = vadd.f32 %v3194_v15, %v3186_v28 }
0x2ace   :  { %5447 = vtanh.f32 %v6540_v16 }
0x2ad8   :  { %v5448_v2 = vpop.eup %5447 }
0x2ad9   :  { %3199 = vrot.lane.b32.xlu1 %v5448_v2, %s5552_s25 }
0x2b4b   :  { %v3200_v7 = vpop.permute.xlu1 %3199 }
0x2b4c   :  { %v6544_v25 = vmul.f32 %v5446_v20, %v3200_v7 }
0x2b4e   :  { %3204 = vrot.lane.b32.xlu1 %v6544_v25, %s5553_s26 }
0x2bc0   :  { %v6548_v23 = vpop.permute.xlu1 %3204 }
0x2bc1   :  { %4896 = vmatmul.mubr.msk.f32.vlgmr.msra.gmra.mrb[22].mxu0 %vm51_vm0, %v6548_v23 }
0x2bc2   :  { %5234 = vmatpush3.bf16.msra.mxu0 %v5927_v29  ;;  %4937 = vmatprep.mubr.msk.f32.mxu0 %vm5546_vm1, %v5547_v4 }
0x2bc3   :  { %5235 = vmatprep.subr.bf16.mxu0 %v5545_v0 }
0x2bc6   :  { %5237 = vmatpush3.bf16.msra.mxu0 %v5933_v31 }
0x2bc7   :  { %5238 = vmatprep.subr.bf16.mxu0 %v5545_v0 }
0x2bca   :  { %5240 = vmatpush3.bf16.msra.mxu0 %v5943_v34 }
0x2bcb   :  { %5241 = vmatprep.subr.bf16.mxu0 %v5545_v0 }
0x2bce   :  { %5243 = vmatpush3.bf16.msra.mxu0 %v5954_v38 }
0x2bcf   :  { %5250 = vmatprep.subr.bf16.mxu0 %v5545_v0 }
0x2c94   :  { %v3368_v63 = vpop.f32.mrb[22].mxu0 }
0x2c95   :  { %v3379_v56 = vrot.slane %v3368_v63, %v5753_v5  ;;  %v4897_v9 = vpop.f32.mrb[23].mxu0 }
0x2c97   :  { %v3380_v49 = vcombine.high %v3379_v56, %v3379_v56  ;;  %v3387_v24 = vrot.slane %v3379_v56, %v5753_v5 }
0x2c99   :  { %v3394_v8 = vrot.slane %v3380_v49, %v5753_v5  ;;  %v3398_v27 = vrot.slane %v3387_v24, %v5760_v13 }
0x2c9b   :  { %v3402_v12 = vrot.slane %v3394_v8, %v5760_v13  ;;  %v3405_v3 = vadd.f32 %v3398_v27, %v5765_v18  ;;  %v3406_v39 = vadd.f32 %v3398_v27, %v5763_v17 }
0x2c9d   :  { %v3407_v30 = vadd.f32 %v3402_v12, %v5771_v22  ;;  %v3408_v36 = vadd.f32 %v3402_v12, %v5769_v21  ;;  %5449 = vtanh.f32 %v3405_v3 }
0x2c9e   :  { %5451 = vtanh.f32 %v3406_v39 }
0x2c9f   :  { %5453 = vtanh.f32 %v3407_v30 }
0x2ca0   :  { %5455 = vtanh.f32 %v3408_v36 }
0x2ca7   :  { %v5450_v53 = vpop.eup %5449 }
0x2ca8   :  { %v5452_v10 = vpop.eup %5451  ;;  %v3413_v45 = vmul.f32 %v6574_v14, %v5450_v53 }
0x2ca9   :  { %v5454_v42 = vpop.eup %5453  ;;  %v3414_v48 = vmul.f32 %v6574_v14, %v5452_v10 }
0x2caa   :  { %v3417_v40 = vsel %vm51_vm0, %v3413_v45, 0.0  ;;  %v3415_v51 = vmul.f32 %v6574_v14, %v5454_v42  ;;  %v5456_v57 = vpop.eup %5455 }
0x2cab   :  { %v3420_v58 = vsel %vm51_vm0, %v3414_v48, 0.0  ;;  %3418 = vadd.xlane.f32.xlu1 %v3417_v40  ;;  %v3416_v61 = vmul.f32 %v6574_v14, %v5456_v57 }
0x2cac   :  { %3421 = vadd.xlane.f32.xlu0 %v3420_v58  ;;  %v3423_v20 = vsel %vm51_vm0, %v3415_v51, 0.0 }
0x2cad   :  { %v3426_v6 = vsel %vm51_vm0, %v3416_v61, 0.0 }
0x2caf   :  { %3424 = vadd.xlane.f32.xlu1 %v3423_v20 }
0x2cb3   :  { %3427 = vadd.xlane.f32.xlu1 %v3426_v6 }
0x2d38   :  { %v3419_v28 = vpop.xlane.xlu1 %3418 }
0x2d39   :  { %v3422_v15 = vpop.xlane.xlu0 %3421  ;;  %v3436_v63 = vrot.slane %v3419_v28, %v5795_v47 }
0x2d3a   :  { %v3440_v7 = vrot.slane %v3422_v15, %v5792_v44 }
0x2d3c   :  { %v3425_v2 = vpop.xlane.xlu1 %3424  ;;  %v3441_v24 = vsel %vm532_vm3, %v3440_v7, %v3436_v63 }
0x2d3d   :  { %v3445_v9 = vrot.slane %v3425_v2, %v5795_v47 }
0x2d40   :  { %v3428_v56 = vpop.xlane.xlu1 %3427 }
0x2d41   :  { %v3449_v49 = vrot.slane %v3428_v56, %v5792_v44 }
0x2d43   :  { %v3450_v8 = vsel %vm532_vm3, %v3449_v49, %v3445_v9 }
0x2d44   :  { %v3451_v27 = vsel %vm86_vm2, %v3450_v8, %v3441_v24 }
0x2d45   :  { %v3453_v12 = vsel %vm545_vm4, %v3451_v27, -inf }
0x2d46   :  { %3454 = vmax.xlane.f32.xlu0 %v3453_v12 }
0x2dd3   :  { %v3455_v3 = vpop.xlane.xlu0 %3454 }
0x2dd4   :  { %v3460_v39 = vrot.slane %v3455_v3, %v5760_v13  ;;  %v3464_v30 = vrot.slane %v3455_v3, %v5806_v62 }
0x2dd6   :  { %v3467_v36 = vsub.f32 %v3419_v28, %v3460_v39  ;;  %v3468_v53 = vsub.f32 %v3422_v15, %v3460_v39  ;;  %v3469_v10 = vsub.f32 %v3425_v2, %v3464_v30  ;;  %v3470_v48 = vsub.f32 %v3428_v56, %v3464_v30 }
0x2dd8   :  { %v3471_v45 = vmul.f32 1.442695, %v3467_v36  ;;  %v3473_v42 = vmul.f32 1.442695, %v3468_v53  ;;  %v3475_v40 = vmul.f32 1.442695, %v3469_v10 }
0x2dd9   :  { %v3477_v51 = vmul.f32 1.442695, %v3470_v48 }
0x2dda   :  { %5457 = vpow2.f32 %v3471_v45 }
0x2ddb   :  { %5459 = vpow2.f32 %v3473_v42 }
0x2ddc   :  { %5461 = vpow2.f32 %v3475_v40 }
0x2ddd   :  { %5463 = vpow2.f32 %v3477_v51 }
0x2de4   :  { %v5458_v57 = vpop.eup %5457 }
0x2de5   :  { %v5460_v58 = vpop.eup %5459  ;;  %3484 = vperm.xlu1 %5287, %v5458_v57  }
0x2de6   :  { %3487 = vperm.xlu0 %5288, %v5460_v58   ;;  %v5462_v20 = vpop.eup %5461 }
0x2de7   :  { %v5464_v61 = vpop.eup %5463 }
0x2de9   :  { %3490 = vperm.xlu1 %5287, %v5462_v20  }
0x2ded   :  { %3493 = vperm.xlu1 %5287, %v5464_v61  }
0x2e64   :  { %v3485_v6 = vpop.permute.xlu1 %3484 }
0x2e65   :  { %v3488_v28 = vpop.permute.xlu0 %3487  ;;  %v3498_v7 = vrot.slane %v3485_v6, %v5795_v47 }
0x2e66   :  { %v3502_v2 = vrot.slane %v3488_v28, %v5792_v44 }
0x2e68   :  { %v3491_v15 = vpop.permute.xlu1 %3490  ;;  %v3503_v49 = vsel %vm532_vm3, %v3502_v2, %v3498_v7 }
0x2e69   :  { %v3507_v56 = vrot.slane %v3491_v15, %v5795_v47 }
0x2e6c   :  { %v3494_v63 = vpop.permute.xlu1 %3493 }
0x2e6d   :  { %v3511_v9 = vrot.slane %v3494_v63, %v5792_v44 }
0x2e6f   :  { %v3512_v24 = vsel %vm532_vm3, %v3511_v9, %v3507_v56 }
0x2e70   :  { %v3513_v8 = vsel %vm86_vm2, %v3512_v24, %v3503_v49 }
0x2e71   :  { %v3515_v27 = vsel %vm545_vm4, %v3513_v8, 0.0 }
0x2e72   :  { %3516 = vadd.xlane.f32.xlu1 %v3515_v27 }
0x2eff   :  { %v3517_v12 = vpop.xlane.xlu1 %3516 }
0x2f00   :  { %5465 = vrcp.f32 %v3517_v12 }
0x2f0a   :  { %v5466_v3 = vpop.eup %5465 }
0x2f0b   :  { %v3523_v39 = vrot.slane %v5466_v3, %v5760_v13  ;;  %v3527_v53 = vrot.slane %v5466_v3, %v5806_v62 }
0x2f0d   :  { %v3530_v30 = vmul.f32 %v5458_v57, %v3523_v39  ;;  %v3531_v36 = vmul.f32 %v5460_v58, %v3523_v39  ;;  %v3532_v10 = vmul.f32 %v5462_v20, %v3527_v53  ;;  %v3533_v45 = vmul.f32 %v5464_v61, %v3527_v53 }
0x2f0f   :  { %3536 = vperm.xlu0 %5288, %v3530_v30  }
0x2f13   :  { %3541 = vperm.xlu0 %5288, %v3531_v36  }
0x2f17   :  { %3546 = vperm.xlu0 %5288, %v3532_v10  }
0x2f1b   :  { %3551 = vperm.xlu0 %5288, %v3533_v45  }
0x2f1f   :  { %3207 = vrot.lane.b32.xlu0 %v6512_v32, %s5553_s26 }
0x2f8e   :  { %v3537_v42 = vpop.permute.xlu0 %3536 }
0x2f8f   :  { %v3554_v48 = vmul.f32 %v6475_v37, %v3537_v42  ;;  %v4305_v42 = vld [vmem:[%s6896_s0 + $0xc] sm:$0x3] }
0x2f91   :  { %v3558_v57 = vsel %vm51_vm0, %v3554_v48, 0.0 }
0x2f92   :  { %v3542_v40 = vpop.permute.xlu0 %3541 }
0x2f93   :  { %v3555_v51 = vmul.f32 %v6481_v35, %v3542_v40 }
0x2f95   :  { %v3559_v58 = vsel %vm51_vm0, %v3555_v51, 0.0 }
0x2f96   :  { %v3560_v6 = vadd.f32 %v3559_v58, %v3558_v57  ;;  %v3547_v28 = vpop.permute.xlu0 %3546 }
0x2f97   :  { %v3556_v20 = vmul.f32 %v6489_v52, %v3547_v28 }
0x2f98   :  { %v3561_v15 = vrot.slane %v3560_v6, 4 }
0x2f99   :  { %v3567_v32 = vsel %vm51_vm0, %v3556_v20, 0.0 }
0x2f9a   :  { %v3562_v61 = vadd.f32 %v3561_v15, %v3560_v6  ;;  %v3552_v2 = vpop.permute.xlu0 %3551  ;;  %v6653_v6 = vld [vmem:[%s6897_s11] ss:$0 sm:$0xff] }
0x2f9b   :  { %v3557_v7 = vmul.f32 %v6495_v59, %v3552_v2 }
0x2f9c   :  { %v3563_v56 = vrot.slane %v3562_v61, 2 }
0x2f9d   :  { %v3568_v63 = vsel %vm51_vm0, %v3557_v7, 0.0 }
0x2f9e   :  { %v3569_v9 = vadd.f32 %v3568_v63, %v3567_v32  ;;  %v3208_v49 = vpop.permute.xlu0 %3207  ;;  %v3564_v27 = vadd.f32 %v3563_v56, %v3562_v61 }
0x2f9f   :  { %v3210_v24 = vsel %vm51_vm0, %v6548_v23, %v3208_v49 }
0x2fa0   :  { %v3570_v8 = vrot.slane %v3569_v9, 4  ;;  %4885 = vmatmul.mubr.msk.f32.vlgmr.msra.gmra.mrb[20].mxu1 %vm804_vm8, %v3210_v24  ;;  %v3565_v39 = vrot.slane %v3564_v27, 1 }
0x2fa1   :  { %5219 = vmatpush3.bf16.msra.mxu1 %v5830_v54  ;;  %4918 = vmatprep.mubr.msk.f32.mxu1 %vm5546_vm1, %v5547_v4 }
0x2fa2   :  { %v3571_v12 = vadd.f32 %v3570_v8, %v3569_v9  ;;  %5220 = vmatprep.subr.bf16.mxu1 %v5545_v0  ;;  %v3566_v36 = vadd.f32 %v3565_v39, %v3564_v27 }
0x2fa4   :  { %v3572_v3 = vrot.slane %v3571_v12, 2 }
0x2fa5   :  { %5222 = vmatpush3.bf16.msra.mxu1 %v5836_v55 }
0x2fa6   :  { %v3573_v30 = vadd.f32 %v3572_v3, %v3571_v12  ;;  %5223 = vmatprep.subr.bf16.mxu1 %v5545_v0 }
0x2fa8   :  { %v3574_v23 = vrot.slane %v3573_v30, 1 }
0x2fa9   :  { %5225 = vmatpush3.bf16.msra.mxu1 %v5846_v60 }
0x2faa   :  { %v3575_v53 = vadd.f32 %v3574_v23, %v3573_v30  ;;  %5226 = vmatprep.subr.bf16.mxu1 %v5545_v0 }
0x2fac   :  { %v6626_v10 = vsel %vm86_vm2, %v3575_v53, %v3566_v36 }
0x2fad   :  { %3579 = vrot.lane.b32.xlu0 %v6626_v10, %s5551_s10  ;;  %5228 = vmatpush3.bf16.msra.mxu1 %v5856_v1 }
0x2fae   :  { %5229 = vmatprep.subr.bf16.mxu1 %v5545_v0 }
0x2fb1   :  { %3582 = vrot.lane.b32.xlu0 %v6544_v25, %s5554_s12  ;;  %5231 = vmatpush3.bf16.msra.mxu1 %v5866_v11 }
0x2fb2   :  { %5244 = vmatprep.subr.bf16.mxu1 %v5545_v0 }
0x301f   :  { %v3580_v45 = vpop.permute.xlu0 %3579 }
0x3020   :  { %v3585_v48 = vsel %vm678_vm5, %v4305_v42, %v3580_v45 }
0x3023   :  { %v3583_v40 = vpop.permute.xlu0 %3582 }
0x3024   :  { %v3586_v51 = vsel %vm680_vm6, %v3585_v48, %v3583_v40 }
0x3025   :  { %4919 = vmatmul.mubr.msk.f32.vlgmr.msra.gmra.mrb[22].mxu1 %vm688_vm7, %v3586_v51 }
0x3026   :  { %5246 = vmatpush3.bf16.msra.mxu1 %v5713_v46  ;;  %4948 = vmatprep.mubr.msk.f32.mxu1 %vm5546_vm1, %v5547_v4 }
0x3027   :  { %5247 = vmatprep.subr.bf16.mxu1 %v5545_v0 }
0x302a   :  { %5249 = vmatpush3.bf16.msra.mxu1 %v5723_v50 }
0x302b   :  { %5265 = vmatprep.subr.bf16.mxu1 %v5545_v0 }
0x3073   :  { %v6648_v25 = vpop.f32.mrb[20].mxu1 }
0x3074   :  { %v4886_v57 = vpop.f32.mrb[21].mxu1 }
0x30f8   :  { %v3656_v58 = vpop.f32.mrb[22].mxu1 }
0x30f9   :  { %v3657_v46 = vadd.f32 %v6653_v6, %v3656_v58  ;;  %v4920_v28 = vpop.f32.mrb[23].mxu1 }
0x30fb   :  { %5467 = vtanh.f32 %v3657_v46  ;;  %v4308_v20 = vmul.f32 -1.442695, %v3657_v46 }
0x30fd   :  { %5469 = vpow2.f32 %v4308_v20 }
0x3105   :  { %v5468_v15 = vpop.eup %5467 }
0x3106   :  { %3669 = vrot.lane.b32.xlu0 %v5468_v15, %s5552_s25 }
0x3107   :  { %v5470_v50 = vpop.eup %5469 }
0x3108   :  { %v3663_v61 = vadd.f32 1.0, %v5470_v50 }
0x310a   :  { %5471 = vrcp.f32 %v3663_v61 }
0x3114   :  { %v5472_v2 = vpop.eup %5471 }
0x3115   :  { %v3667_v63 = vmul.f32 %v5472_v2, %v6540_v16 }
0x3178   :  { %v3670_v7 = vpop.permute.xlu0 %3669 }
0x3179   :  { %v3672_v32 = vmul.f32 %v5472_v2, %v3670_v7 }
0x317b   :  { %3674 = vrot.lane.b32.xlu0 %v3672_v32, %s5553_s26 }
0x31ed   :  { %v3675_v56 = vpop.permute.xlu0 %3674 }
0x31ee   :  { %v6659_v9 = vadd.f32 %v3675_v56, %v3667_v63 }
0x31f0   :  { %5473 = vtanh.f32 %v6659_v9 }
0x31fa   :  { %v5474_v49 = vpop.eup %5473 }
0x31fb   :  { %3680 = vrot.lane.b32.xlu1 %v5474_v49, %s5552_s25 }
0x326d   :  { %v3681_v24 = vpop.permute.xlu1 %3680 }
0x326e   :  { %v6663_v8 = vmul.f32 %v5472_v2, %v3681_v24 }
0x3270   :  { %3685 = vrot.lane.b32.xlu0 %v6663_v8, %s5553_s26 }
0x32e2   :  { %v6667_v27 = vpop.permute.xlu0 %3685 }
0x32e3   :  { %4949 = vmatmul.mubr.msk.f32.vlgmr.msra.gmra.mrb[24].mxu1 %vm51_vm0, %v6667_v27 }
0x32e4   :  { %5267 = vmatpush3.bf16.msra.mxu1 %v5927_v29  ;;  %4990 = vmatprep.mubr.msk.f32.mxu1 %vm5546_vm1, %v5547_v4 }
0x32e5   :  { %5268 = vmatprep.subr.bf16.mxu1 %v5545_v0 }
0x32e8   :  { %5270 = vmatpush3.bf16.msra.mxu1 %v5933_v31 }
0x32e9   :  { %5271 = vmatprep.subr.bf16.mxu1 %v5545_v0 }
0x32ec   :  { %5273 = vmatpush3.bf16.msra.mxu1 %v5943_v34 }
0x32ed   :  { %5274 = vmatprep.subr.bf16.mxu1 %v5545_v0 }
0x32f0   :  { %5276 = vmatpush3.bf16.msra.mxu1 %v5954_v38 }
0x33b6   :  { %v3849_v16 = vpop.f32.mrb[24].mxu1 }
0x33b7   :  { %v3860_v12 = vrot.slane %v3849_v16, %v5753_v5  ;;  %v4950_v3 = vpop.f32.mrb[25].mxu1 }
0x33b9   :  { %v3861_v29 = vcombine.high %v3860_v12, %v3860_v12  ;;  %v3868_v39 = vrot.slane %v3860_v12, %v5753_v5 }
0x33bb   :  { %v3875_v30 = vrot.slane %v3861_v29, %v5753_v5  ;;  %v3879_v23 = vrot.slane %v3868_v39, %v5760_v13 }
0x33bd   :  { %v3883_v31 = vrot.slane %v3875_v30, %v5760_v13  ;;  %v3886_v36 = vadd.f32 %v3879_v23, %v5765_v18  ;;  %v3887_v34 = vadd.f32 %v3879_v23, %v5763_v17 }
0x33bf   :  { %v3888_v53 = vadd.f32 %v3883_v31, %v5771_v22  ;;  %v3889_v38 = vadd.f32 %v3883_v31, %v5769_v21  ;;  %5475 = vtanh.f32 %v3886_v36 }
0x33c0   :  { %5477 = vtanh.f32 %v3887_v34 }
0x33c1   :  { %5479 = vtanh.f32 %v3888_v53 }
0x33c2   :  { %5481 = vtanh.f32 %v3889_v38 }
0x33c9   :  { %v5476_v45 = vpop.eup %5475 }
0x33ca   :  { %v5478_v42 = vpop.eup %5477  ;;  %v3894_v5 = vmul.f32 %v6574_v14, %v5476_v45 }
0x33cb   :  { %v5480_v48 = vpop.eup %5479  ;;  %v3895_v40 = vmul.f32 %v6574_v14, %v5478_v42 }
0x33cc   :  { %v3898_v51 = vsel %vm51_vm0, %v3894_v5, 0.0  ;;  %v3896_v18 = vmul.f32 %v6574_v14, %v5480_v48  ;;  %v5482_v17 = vpop.eup %5481 }
0x33cd   :  { %v3901_v22 = vsel %vm51_vm0, %v3895_v40, 0.0  ;;  %3899 = vadd.xlane.f32.xlu0 %v3898_v51  ;;  %v3897_v57 = vmul.f32 %v6574_v14, %v5482_v17 }
0x33ce   :  { %3902 = vadd.xlane.f32.xlu1 %v3901_v22  ;;  %v3904_v21 = vsel %vm51_vm0, %v3896_v18, 0.0 }
0x33cf   :  { %v3907_v58 = vsel %vm51_vm0, %v3897_v57, 0.0 }
0x33d1   :  { %3905 = vadd.xlane.f32.xlu0 %v3904_v21 }
0x33d5   :  { %3908 = vadd.xlane.f32.xlu0 %v3907_v58 }
0x345a   :  { %v3900_v46 = vpop.xlane.xlu0 %3899 }
0x345b   :  { %v3903_v28 = vpop.xlane.xlu1 %3902  ;;  %v3917_v50 = vrot.slane %v3900_v46, %v5795_v47 }
0x345c   :  { %v3921_v20 = vrot.slane %v3903_v28, %v5792_v44 }
0x345e   :  { %v3906_v15 = vpop.xlane.xlu0 %3905  ;;  %v3922_v32 = vsel %vm532_vm3, %v3921_v20, %v3917_v50 }
0x345f   :  { %v3926_v2 = vrot.slane %v3906_v15, %v5795_v47 }
0x3462   :  { %v3909_v61 = vpop.xlane.xlu0 %3908 }
0x3463   :  { %v3930_v7 = vrot.slane %v3909_v61, %v5792_v44 }
0x3465   :  { %v3931_v14 = vsel %vm532_vm3, %v3930_v7, %v3926_v2 }
0x3466   :  { %v3932_v63 = vsel %vm86_vm2, %v3931_v14, %v3922_v32 }
0x3467   :  { %v3934_v56 = vsel %vm545_vm4, %v3932_v63, -inf }
0x3468   :  { %3935 = vmax.xlane.f32.xlu0 %v3934_v56 }
0x34f5   :  { %v3936_v49 = vpop.xlane.xlu0 %3935 }
0x34f6   :  { %v3941_v24 = vrot.slane %v3936_v49, %v5760_v13  ;;  %v3945_v16 = vrot.slane %v3936_v49, %v5806_v62 }
0x34f8   :  { %v3948_v12 = vsub.f32 %v3900_v46, %v3941_v24  ;;  %v3949_v3 = vsub.f32 %v3903_v28, %v3941_v24  ;;  %v3950_v29 = vsub.f32 %v3906_v15, %v3945_v16  ;;  %v3951_v39 = vsub.f32 %v3909_v61, %v3945_v16 }
0x34fa   :  { %v3952_v30 = vmul.f32 1.442695, %v3948_v12  ;;  %v3954_v23 = vmul.f32 1.442695, %v3949_v3  ;;  %v3956_v31 = vmul.f32 1.442695, %v3950_v29 }
0x34fb   :  { %v3958_v36 = vmul.f32 1.442695, %v3951_v39 }
0x34fc   :  { %5483 = vpow2.f32 %v3952_v30 }
0x34fd   :  { %5485 = vpow2.f32 %v3954_v23 }
0x34fe   :  { %5487 = vpow2.f32 %v3956_v31 }
0x34ff   :  { %5489 = vpow2.f32 %v3958_v36 }
0x3506   :  { %v5484_v34 = vpop.eup %5483 }
0x3507   :  { %v5486_v53 = vpop.eup %5485  ;;  %3965 = vperm.xlu0 %5288, %v5484_v34  }
0x3508   :  { %3968 = vperm.xlu1 %5287, %v5486_v53   ;;  %v5488_v38 = vpop.eup %5487 }
0x3509   :  { %v5490_v45 = vpop.eup %5489 }
0x350b   :  { %3971 = vperm.xlu0 %5288, %v5488_v38  }
0x350c   :  { %3974 = vperm.xlu1 %5287, %v5490_v45  }
0x3586   :  { %v3966_v42 = vpop.permute.xlu0 %3965 }
0x3587   :  { %v3969_v5 = vpop.permute.xlu1 %3968  ;;  %v3979_v40 = vrot.slane %v3966_v42, %v5795_v47 }
0x3588   :  { %v3983_v48 = vrot.slane %v3969_v5, %v5792_v44 }
0x358a   :  { %v3972_v51 = vpop.permute.xlu0 %3971  ;;  %v3984_v21 = vsel %vm532_vm3, %v3983_v48, %v3979_v40 }
0x358b   :  { %v3975_v18 = vpop.permute.xlu1 %3974  ;;  %v3988_v17 = vrot.slane %v3972_v51, %v5795_v47 }
0x358c   :  { %v3992_v22 = vrot.slane %v3975_v18, %v5792_v44 }
0x358e   :  { %v3993_v57 = vsel %vm532_vm3, %v3992_v22, %v3988_v17 }
0x358f   :  { %v3994_v58 = vsel %vm86_vm2, %v3993_v57, %v3984_v21 }
0x3590   :  { %v3996_v46 = vsel %vm545_vm4, %v3994_v58, 0.0  ;;  %v6757_v58 = vld [vmem:[%s6900_s13] ss:$0 sm:$0xff] }
0x3591   :  { %3997 = vadd.xlane.f32.xlu0 %v3996_v46  ;;  %v6765_v46 = vadd.f32 %v6757_v58, %v6405_v33 }
0x361e   :  { %v3998_v28 = vpop.xlane.xlu0 %3997 }
0x361f   :  { %5491 = vrcp.f32 %v3998_v28 }
0x3629   :  { %v5492_v15 = vpop.eup %5491 }
0x362a   :  { %v4004_v20 = vrot.slane %v5492_v15, %v5760_v13  ;;  %v4008_v47 = vrot.slane %v5492_v15, %v5806_v62  ;;  %v6771_v15 = vadd.f32 %v6757_v58, %v6648_v25  ;;  %v6783_v25 = vadd.f32 %v6757_v58, %v5984_v43 }
0x362c   :  { %v4011_v50 = vmul.f32 %v5484_v34, %v4004_v20  ;;  %v4012_v61 = vmul.f32 %v5486_v53, %v4004_v20  ;;  %v4013_v44 = vmul.f32 %v5488_v38, %v4008_v47  ;;  %v4014_v2 = vmul.f32 %v5490_v45, %v4008_v47 }
0x362d   :  { %v2322_v20 = vsel %vm878_vm9, %v6765_v46, -inf }
0x362e   :  { %4017 = vperm.xlu1 %5287, %v4011_v50  }
0x3632   :  { %4022 = vperm.xlu1 %5287, %v4012_v61  }
0x3636   :  { %4027 = vperm.xlu1 %5287, %v4013_v44  }
0x363a   :  { %4032 = vperm.xlu1 %5287, %v4014_v2  }
0x363e   :  { %3688 = vrot.lane.b32.xlu1 %v6626_v10, %s5553_s26 }
0x36ad   :  { %v4018_v7 = vpop.permute.xlu1 %4017 }
0x36ae   :  { %v4035_v32 = vmul.f32 %v6475_v37, %v4018_v7  ;;  %v6787_v7 = vadd.f32 %v6757_v58, %v6291_v41 }
0x36b0   :  { %v4039_v13 = vsel %vm51_vm0, %v4035_v32, 0.0  ;;  %v6793_v32 = vadd.f32 %v6757_v58, %v6534_v26 }
0x36b1   :  { %v4023_v14 = vpop.permute.xlu1 %4022 }
0x36b2   :  { %v4036_v63 = vmul.f32 %v6481_v35, %v4023_v14  ;;  %v1841_v14 = vsel %vm878_vm9, %v6787_v7, -inf  ;;  %v2803_v43 = vsel %vm878_vm9, %v6793_v32, -inf }
0x36b4   :  { %v4040_v56 = vsel %vm51_vm0, %v4036_v63, 0.0 }
0x36b5   :  { %v4041_v49 = vadd.f32 %v4040_v56, %v4039_v13  ;;  %v4028_v62 = vpop.permute.xlu1 %4027 }
0x36b6   :  { %v4037_v16 = vmul.f32 %v6489_v52, %v4028_v62 }
0x36b7   :  { %v4042_v24 = vrot.slane %v4041_v49, 4 }
0x36b8   :  { %v4048_v10 = vsel %vm51_vm0, %v4037_v16, 0.0 }
0x36b9   :  { %v4043_v12 = vadd.f32 %v4042_v24, %v4041_v49  ;;  %v4033_v3 = vpop.permute.xlu1 %4032 }
0x36ba   :  { %v4038_v29 = vmul.f32 %v6495_v59, %v4033_v3 }
0x36bb   :  { %v4044_v39 = vrot.slane %v4043_v12, 2 }
0x36bc   :  { %v4049_v37 = vsel %vm51_vm0, %v4038_v29, 0.0 }
0x36bd   :  { %v4050_v30 = vadd.f32 %v4049_v37, %v4048_v10  ;;  %v3689_v35 = vpop.permute.xlu1 %3688  ;;  %v4045_v52 = vadd.f32 %v4044_v39, %v4043_v12 }
0x36be   :  { %v3691_v23 = vsel %vm51_vm0, %v6667_v27, %v3689_v35 }
0x36bf   :  { %v4051_v31 = vrot.slane %v4050_v30, 4  ;;  %4938 = vmatmul.mubr.msk.f32.vlgmr.msra.gmra.mrb[24].mxu0 %vm804_vm8, %v3691_v23  ;;  %v4046_v34 = vrot.slane %v4045_v52, 1 }
0x36c0   :  { %5252 = vmatpush3.bf16.msra.mxu0 %v5830_v54  ;;  %4971 = vmatprep.mubr.msk.f32.mxu0 %vm5546_vm1, %v5547_v4 }
0x36c1   :  { %v4052_v59 = vadd.f32 %v4051_v31, %v4050_v30  ;;  %5253 = vmatprep.subr.bf16.mxu0 %v5545_v0  ;;  %v4047_v38 = vadd.f32 %v4046_v34, %v4045_v52 }
0x36c3   :  { %v4053_v36 = vrot.slane %v4052_v59, 2 }
0x36c4   :  { %5255 = vmatpush3.bf16.msra.mxu0 %v5836_v55  ;;  %v4310_v55 = vld [vmem:[%s6896_s0 + $0xe] sm:$0x3] }
0x36c5   :  { %v4054_v53 = vadd.f32 %v4053_v36, %v4052_v59  ;;  %5256 = vmatprep.subr.bf16.mxu0 %v5545_v0 }
0x36c7   :  { %v4055_v27 = vrot.slane %v4054_v53, 1 }
0x36c8   :  { %5258 = vmatpush3.bf16.msra.mxu0 %v5846_v60 }
0x36c9   :  { %v4056_v45 = vadd.f32 %v4055_v27, %v4054_v53  ;;  %5259 = vmatprep.subr.bf16.mxu0 %v5545_v0 }
0x36cb   :  { %v4059_v4 = vsel %vm86_vm2, %v4056_v45, %v4047_v38 }
0x36cc   :  { %4060 = vrot.lane.b32.xlu1 %v4059_v4, %s5551_s10  ;;  %5261 = vmatpush3.bf16.msra.mxu0 %v5856_v1 }
0x36cd   :  { %5262 = vmatprep.subr.bf16.mxu0 %v5545_v0 }
0x36d0   :  { %4063 = vrot.lane.b32.xlu1 %v6663_v8, %s5554_s12  ;;  %5264 = vmatpush3.bf16.msra.mxu0 %v5866_v11 }
0x373e   :  { %v4061_v54 = vpop.permute.xlu1 %4060 }
0x373f   :  { %v4066_v60 = vsel %vm678_vm5, %v4310_v55, %v4061_v54 }
0x3742   :  { %v4064_v42 = vpop.permute.xlu1 %4063 }
0x3743   :  { %v4067_v5 = vsel %vm680_vm6, %v4066_v60, %v4064_v42 }
0x3744   :  { %4972 = vmatmul.mubr.msk.f32.vlgmr.msra.gmra.mrb[26].mxu0 %vm688_vm7, %v4067_v5 }
0x3792   :  { %v3761_v1 = vpop.f32.mrb[24].mxu0 }
0x3793   :  { %v4939_v48 = vpop.f32.mrb[25].mxu0  ;;  %v6798_v63 = vadd.f32 %v6757_v58, %v3761_v1 }
0x3795   :  { %v3765_v41 = vsel %vm878_vm9, %v6798_v63, -inf }
0x3817   :  { %v4137_v0 = vpop.f32.mrb[26].mxu0 }
0x3818   :  { %v4138_v40 = vadd.f32 %v6653_v6, %v4137_v0  ;;  %v4973_v8 = vpop.f32.mrb[27].mxu0  ;;  %v6761_v6 = vadd.f32 %v6757_v58, %v6177_v19  ;;  %v3284_v19 = vsel %vm878_vm9, %v6771_v15, -inf }
0x381a   :  { %5493 = vtanh.f32 %v4138_v40  ;;  %v4313_v51 = vmul.f32 -1.442695, %v4138_v40  ;;  %v1360_v28 = vsel %vm878_vm9, %v6761_v6, -inf }
0x381c   :  { %5495 = vpow2.f32 %v4313_v51 }
0x3824   :  { %v5494_v11 = vpop.eup %5493 }
0x3825   :  { %4150 = vrot.lane.b32.xlu1 %v5494_v11, %s5552_s25 }
0x3826   :  { %v5496_v18 = vpop.eup %5495 }
0x3827   :  { %v4144_v17 = vadd.f32 1.0, %v5496_v18 }
0x3829   :  { %5497 = vrcp.f32 %v4144_v17 }
0x3833   :  { %v5498_v22 = vpop.eup %5497 }
0x3834   :  { %v4148_v50 = vmul.f32 %v5498_v22, %v6659_v9  ;;  %v879_v9 = vsel %vm878_vm9, %v6783_v25, -inf }
0x3897   :  { %v4151_v21 = vpop.permute.xlu1 %4150 }
0x3898   :  { %v4153_v57 = vmul.f32 %v5498_v22, %v4151_v21 }
0x389a   :  { %4155 = vrot.lane.b32.xlu0 %v4153_v57, %s5553_s26 }
0x38b9   :  { %1361 = vmax.xlane.f32.xlu0 %v1360_v28 }
0x38bd   :  { %2323 = vmax.xlane.f32.xlu0 %v2322_v20 }
0x38c1   :  { %3285 = vmax.xlane.f32.xlu0 %v3284_v19 }
0x390c   :  { %v4156_v33 = vpop.permute.xlu0 %4155 }
0x390d   :  { %v4158_v61 = vadd.f32 %v4156_v33, %v4148_v50 }
0x390f   :  { %5499 = vtanh.f32 %v4158_v61 }
0x3919   :  { %v5500_v47 = vpop.eup %5499 }
0x391a   :  { %4161 = vrot.lane.b32.xlu1 %v5500_v47, %s5552_s25 }
0x3946   :  { %v6826_v38 = vpop.xlane.xlu0 %1361 }
0x394a   :  { %v6828_v45 = vpop.xlane.xlu0 %2323 }
0x394b   :  { %v2325_v55 = vsub.f32 %v6765_v46, %v6828_v45 }
0x394d   :  { %v2326_v42 = vmul.f32 1.442695, %v2325_v55 }
0x394e   :  { %v6834_v60 = vpop.xlane.xlu0 %3285 }
0x394f   :  { %v3287_v5 = vsub.f32 %v6771_v15, %v6834_v60 }
0x3951   :  { %v3288_v1 = vmul.f32 1.442695, %v3287_v5 }
0x398c   :  { %v4162_v44 = vpop.permute.xlu1 %4161 }
0x398d   :  { %v4164_v2 = vmul.f32 %v5498_v22, %v4162_v44 }
0x398f   :  { %4166 = vrot.lane.b32.xlu1 %v4164_v2, %s5553_s26 }
0x3993   :  { %4169 = vrot.lane.b32.xlu1 %v4059_v4, %s5553_s26  ;;  %v1363_v4 = vsub.f32 %v6761_v6, %v6826_v38 }
0x3995   :  { %v1364_v54 = vmul.f32 1.442695, %v1363_v4 }
0x39b7   :  { %880 = vmax.xlane.f32.xlu1 %v879_v9 }
0x39bb   :  { %1842 = vmax.xlane.f32.xlu1 %v1841_v14 }
0x39bf   :  { %2804 = vmax.xlane.f32.xlu1 %v2803_v43 }
0x39c3   :  { %3766 = vmax.xlane.f32.xlu1 %v3765_v41 }
0x3a01   :  { %v4167_v13 = vpop.permute.xlu1 %4166 }
0x3a05   :  { %v4170_v56 = vpop.permute.xlu1 %4169 }
0x3a06   :  { %v4172_v26 = vsel %vm51_vm0, %v4167_v13, %v4170_v56 }
0x3a07   :  { %4991 = vmatmul.mubr.msk.f32.vlgmr.msra.gmra.mrb[26].mxu1 %vm804_vm8, %v4172_v26 }
0x3a44   :  { %v6806_v49 = vpop.xlane.xlu1 %880 }
0x3a45   :  { %v882_v62 = vsub.f32 %v6783_v25, %v6806_v49 }
0x3a47   :  { %v883_v24 = vmul.f32 1.442695, %v882_v62 }
0x3a48   :  { %v6810_v16 = vpop.xlane.xlu1 %1842 }
0x3a49   :  { %5501 = vpow2.f32 %v883_v24  ;;  %v1844_v12 = vsub.f32 %v6787_v7, %v6810_v16 }
0x3a4b   :  { %v1845_v3 = vmul.f32 1.442695, %v1844_v12 }
0x3a4c   :  { %v6814_v29 = vpop.xlane.xlu1 %2804 }
0x3a4d   :  { %5503 = vpow2.f32 %v1845_v3  ;;  %v2806_v10 = vsub.f32 %v6793_v32, %v6814_v29 }
0x3a4f   :  { %v2807_v37 = vmul.f32 1.442695, %v2806_v10 }
0x3a50   :  { %v6818_v39 = vpop.xlane.xlu1 %3766 }
0x3a51   :  { %5505 = vpow2.f32 %v2807_v37  ;;  %v3768_v30 = vsub.f32 %v6798_v63, %v6818_v39 }
0x3a53   :  { %v5502_v35 = vpop.eup %5501  ;;  %v3769_v23 = vmul.f32 1.442695, %v3768_v30 }
0x3a54   :  { %v885_v31 = vsel %vm878_vm9, %v5502_v35, 0.0 }
0x3a55   :  { %5507 = vpow2.f32 %v3769_v23  ;;  %886 = vadd.xlane.f32.xlu1 %v885_v31 }
0x3a56   :  { %5509 = vpow2.f32 %v1364_v54 }
0x3a57   :  { %v5504_v52 = vpop.eup %5503  ;;  %5511 = vpow2.f32 %v2326_v42 }
0x3a58   :  { %v1847_v59 = vsel %vm878_vm9, %v5504_v52, 0.0  ;;  %5513 = vpow2.f32 %v3288_v1 }
0x3a59   :  { %1848 = vadd.xlane.f32.xlu1 %v1847_v59 }
0x3a5b   :  { %v5506_v36 = vpop.eup %5505 }
0x3a5c   :  { %v2809_v34 = vsel %vm878_vm9, %v5506_v36, 0.0 }
0x3a5d   :  { %2810 = vadd.xlane.f32.xlu1 %v2809_v34 }
0x3a5f   :  { %v5508_v53 = vpop.eup %5507 }
0x3a60   :  { %v3771_v27 = vsel %vm878_vm9, %v5508_v53, 0.0  ;;  %v5510_v11 = vpop.eup %5509 }
0x3a61   :  { %3772 = vadd.xlane.f32.xlu1 %v3771_v27  ;;  %v1366_v51 = vsel %vm878_vm9, %v5510_v11, 0.0  ;;  %v5512_v18 = vpop.eup %5511 }
0x3a62   :  { %v2328_v22 = vsel %vm878_vm9, %v5512_v18, 0.0  ;;  %v5514_v21 = vpop.eup %5513 }
0x3ada   :  { %v4242_v48 = vpop.f32.mrb[26].mxu1 }
0x3adb   :  { %v6839_v0 = vadd.f32 %v6757_v58, %v4242_v48  ;;  %v4992_v40 = vpop.f32.mrb[27].mxu1  ;;  %v3290_v58 = vsel %vm878_vm9, %v5514_v21, 0.0 }
0x3add   :  { %v4246_v8 = vsel %vm878_vm9, %v6839_v0, -inf }
0x3ade   :  { %4247 = vmax.xlane.f32.xlu0 %v4246_v8 }
0x3ae2   :  { %1367 = vadd.xlane.f32.xlu0 %v1366_v51  ;;  %v887_v17 = vpop.xlane.xlu1 %886 }
0x3ae3   :  { %5515 = vlog2.f32 %v887_v17 }
0x3ae6   :  { %2329 = vadd.xlane.f32.xlu0 %v2328_v22  ;;  %v1849_v57 = vpop.xlane.xlu1 %1848 }
0x3ae7   :  { %5517 = vlog2.f32 %v1849_v57 }
0x3aea   :  { %3291 = vadd.xlane.f32.xlu0 %v3290_v58  ;;  %v2811_v28 = vpop.xlane.xlu1 %2810 }
0x3aeb   :  { %5519 = vlog2.f32 %v2811_v28 }
0x3aed   :  { %v5516_v20 = vpop.eup %5515 }
0x3aee   :  { %v889_v19 = vmul.f32 0.6931472, %v5516_v20  ;;  %v3773_v50 = vpop.xlane.xlu1 %3772 }
0x3aef   :  { %5521 = vlog2.f32 %v3773_v50 }
0x3af0   :  { %v890_v33 = vadd.f32 %v889_v19, %v6806_v49 }
0x3af1   :  { %v5518_v61 = vpop.eup %5517 }
0x3af2   :  { %v891_v47 = vsub.f32 %v6783_v25, %v890_v33  ;;  %v1851_v44 = vmul.f32 0.6931472, %v5518_v61 }
0x3af4   :  { %892 = vst [vmem:[%s6901_s14] sm:$0x3] %v891_v47  ;;  %v1852_v2 = vadd.f32 %v1851_v44, %v6810_v16 }
0x3af5   :  { %v5520_v9 = vpop.eup %5519 }
0x3af6   :  { %v1853_v14 = vsub.f32 %v6787_v7, %v1852_v2  ;;  %v2813_v43 = vmul.f32 0.6931472, %v5520_v9 }
0x3af8   :  { %1854 = vst [vmem:[%s6901_s14 + $0x4] sm:$0x3] %v1853_v14  ;;  %v2814_v41 = vadd.f32 %v2813_v43, %v6814_v29 }
0x3af9   :  { %v5522_v13 = vpop.eup %5521 }
0x3afa   :  { %v2815_v25 = vsub.f32 %v6793_v32, %v2814_v41  ;;  %v3775_v56 = vmul.f32 0.6931472, %v5522_v13 }
0x3afc   :  { %2816 = vst [vmem:[%s6901_s14 + $0x8] sm:$0x3] %v2815_v25  ;;  %v3776_v26 = vadd.f32 %v3775_v56, %v6818_v39 }
0x3afe   :  { %v3777_v49 = vsub.f32 %v6798_v63, %v3776_v26 }
0x3b00   :  { %3778 = vst [vmem:[%s6901_s14 + $0xc] sm:$0x3] %v3777_v49 }
0x3b6b   :  { %v4248_v7 = vpop.xlane.xlu0 %4247 }
0x3b6c   :  { %v4249_v62 = vsub.f32 %v6839_v0, %v4248_v7 }
0x3b6e   :  { %v4250_v24 = vmul.f32 1.442695, %v4249_v62 }
0x3b6f   :  { %v1368_v16 = vpop.xlane.xlu0 %1367 }
0x3b70   :  { %5523 = vpow2.f32 %v4250_v24 }
0x3b71   :  { %5525 = vlog2.f32 %v1368_v16 }
0x3b73   :  { %v2330_v32 = vpop.xlane.xlu0 %2329 }
0x3b74   :  { %5527 = vlog2.f32 %v2330_v32 }
0x3b77   :  { %v3292_v12 = vpop.xlane.xlu0 %3291 }
0x3b78   :  { %5529 = vlog2.f32 %v3292_v12 }
0x3b7a   :  { %v5524_v3 = vpop.eup %5523 }
0x3b7b   :  { %v5526_v29 = vpop.eup %5525  ;;  %v4252_v10 = vsel %vm878_vm9, %v5524_v3, 0.0 }
0x3b7c   :  { %v1370_v63 = vmul.f32 0.6931472, %v5526_v29  ;;  %4253 = vadd.xlane.f32.xlu0 %v4252_v10 }
0x3b7e   :  { %v5528_v37 = vpop.eup %5527  ;;  %v1371_v39 = vadd.f32 %v1370_v63, %v6826_v38 }
0x3b7f   :  { %v2332_v30 = vmul.f32 0.6931472, %v5528_v37 }
0x3b80   :  { %v1372_v35 = vsub.f32 %v6761_v6, %v1371_v39 }
0x3b81   :  { %v2333_v23 = vadd.f32 %v2332_v30, %v6828_v45 }
0x3b82   :  { %v5530_v31 = vpop.eup %5529  ;;  %1373 = vst [vmem:[%s6901_s14 + $0x2] sm:$0x3] %v1372_v35 }
0x3b83   :  { %v2334_v52 = vsub.f32 %v6765_v46, %v2333_v23  ;;  %v3294_v59 = vmul.f32 0.6931472, %v5530_v31 }
0x3b85   :  { %2335 = vst [vmem:[%s6901_s14 + $0x6] sm:$0x3] %v2334_v52  ;;  %v3295_v36 = vadd.f32 %v3294_v59, %v6834_v60 }
0x3b87   :  { %v3296_v34 = vsub.f32 %v6771_v15, %v3295_v36 }
0x3b89   :  { %3297 = vst [vmem:[%s6901_s14 + $0xa] sm:$0x3] %v3296_v34 }
0x3c09   :  { %v4254_v6 = vpop.xlane.xlu0 %4253 }
0x3c0a   :  { %5531 = vlog2.f32 %v4254_v6 }
0x3c14   :  { %v5532_v53 = vpop.eup %5531 }
0x3c15   :  { %v4256_v27 = vmul.f32 0.6931472, %v5532_v53 }
0x3c17   :  { %v4257_v38 = vadd.f32 %v4256_v27, %v4248_v7 }
0x3c19   :  { %v4258_v46 = vsub.f32 %v6839_v0, %v4257_v38 }
0x3c1b   :  { %4259 = vst [vmem:[%s6901_s14 + $0xe] sm:$0x3] %v4258_v46 }

</bundles_post_ra>
